<compile_context>
chip_gen: v7x
topology: tpu7x:2x2x1
jax: 0.10.0
libtpu: 0.0.40
codegen_flags: <defaults>
</compile_context>

<pallas_src>
import functools

import jax
import jax.numpy as jnp
from jax.experimental import pallas as pl
from jax.experimental.pallas import tpu as pltpu

EPS = 1e-5          # nn.LayerNorm default eps
NUM_HEADS = 2       # Gen_TransformerEncoderBlock default (Generator never overrides it)
DEPTH = 3           # Generator default depth
FFN_EXP = 4         # FeedForwardBlock expansion
TAIL_PAD = 128      # lane-dense padded width for conv / (pre_out | fenlei_out) head outputs
NEG_BIG = -1e9      # additive mask value for cross-batch attention entries


# ----------------------------- kernel helpers ------------------------------

def _layernorm(x, g, b):
    mu = jnp.mean(x, axis=-1, keepdims=True)
    var = jnp.mean(jnp.square(x - mu), axis=-1, keepdims=True)
    return (x - mu) * jax.lax.rsqrt(var + EPS) * g + b


def _softmax(x):
    m = jnp.max(x, axis=-1, keepdims=True)
    e = jnp.exp(x - m)
    return e / jnp.sum(e, axis=-1, keepdims=True)   # exact divide (keeps 1e-4 tolerance safe)


def _erf(x):
    # Numerical-Recipes erfc approximation, |rel err| < 1.3e-7.
    ax = jnp.abs(x)
    t = 1.0 / (1.0 + 0.5 * ax)   # exact reciprocal (review: approx=True was too close to tol)
    poly = -1.26551223 + t * (1.00002368 + t * (0.37409196 + t * (0.09678418 +
           t * (-0.18628806 + t * (0.27886807 + t * (-1.13520398 + t * (1.48851587 +
           t * (-0.82215223 + t * 0.17087277))))))))
    erfc = t * jnp.exp(-ax * ax + poly)
    e = 1.0 - erfc
    return jnp.where(x >= 0.0, e, -e)


def _gelu_exact(x):
    # nn.GELU default ('none' approximation): 0.5 * x * (1 + erf(x / sqrt(2)))
    return 0.5 * x * (1.0 + _erf(x * 0.7071067811865476))


# --------------------------- fused forward kernel ---------------------------

def generator_fused_kernel(z_ref, pos_ref, mask_ref, sel_ref,
                           ln1_g, ln1_b, wqkv, bqkv, wproj, bproj,
                           ln2_g, ln2_b, w1, b1, w2, b2,
                           wconv, bconv, wtail, btail,
                           conv_ref, tail_ref,
                           *, num_heads, emb_size, depth):
    dh = emb_size // num_heads

    # Batch is folded into sublanes: z_ref / pos_ref are (B*S, E).
    x = z_ref[...] + pos_ref[...]
    mask = mask_ref[...]                      # (B*S, B*S) block-diagonal additive bias

    for blk in range(depth):                  # static unroll over DEPTH (weights stacked on axis 0)
        # ---- attention sublayer: LayerNorm -> MHA -> dropout(id) -> residual ----
        xn = _layernorm(x, ln1_g[blk], ln1_b[blk])
        # Single fused QKV matmul (scale already folded into the Q columns/bias).
        qkv = jnp.dot(xn, wqkv[blk], preferred_element_type=jnp.float32) + bqkv[blk]   # (B*S, 3E)
        heads = []
        for h in range(num_heads):            # per-head work is just slice + tiny matmuls
            qh = qkv[:, h * dh:(h + 1) * dh]
            kh = qkv[:, emb_size + h * dh: emb_size + (h + 1) * dh]
            vh = qkv[:, 2 * emb_size + h * dh: 2 * emb_size + (h + 1) * dh]
            energy = jax.lax.dot_general(qh, kh, (((1,), (1,)), ((), ())),
                                         preferred_element_type=jnp.float32) + mask
            att = _softmax(energy)                                             # (B*S, B*S)
            heads.append(jnp.dot(att, vh, preferred_element_type=jnp.float32)) # (B*S, dh)
        ho = jnp.concatenate(heads, axis=-1)                                   # (B*S, E)
        x = x + jnp.dot(ho, wproj[blk], preferred_element_type=jnp.float32) + bproj[blk]

        # ---- feed-forward sublayer: LayerNorm -> Linear -> GELU -> Linear -> residual ----
        xn2 = _layernorm(x, ln2_g[blk], ln2_b[blk])
        hh = _gelu_exact(jnp.dot(xn2, w1[blk], preferred_element_type=jnp.float32) + b1[blk])
        x = x + jnp.dot(hh, w2[blk], preferred_element_type=jnp.float32) + b2[blk]

    # ---- output head --------------------------------------------------------
    # 1x1 Conv2d(embed_dim -> channels) == per-position linear; weights padded to
    # 128 lanes so the store is unmasked (lane-dense).
    co = jnp.dot(x, wconv[...], preferred_element_type=jnp.float32) + bconv[...]   # (B*S, 128)
    conv_ref[...] = co
    # Pick out[:, -1, :] per batch element with a tiny selection matmul, then fuse
    # decoder_layer (col 0) + linear (cols 1:3) into one lane-dense matmul + store.
    last = jnp.dot(sel_ref[...], co, preferred_element_type=jnp.float32)            # (B, 128)
    tail_ref[...] = jnp.dot(last, wtail[...], preferred_element_type=jnp.float32) + btail[...]


# ----------------------------- weight packing --------------------------------

def pack_params(params, batch):
    """One-time host-side re-layout:
    - stack per-block weights over depth,
    - fuse Wq|Wk|Wv into one (E, 3E) matrix per block with 1/sqrt(E) folded
      into the Q columns/bias,
    - pad the conv / tail head weights to 128 lanes,
    - pre-tile the positional embedding to (B*S, E),
    - build the block-diagonal attention mask and the last-row selector."""
    pos = params["pos_embed"][0]                       # (S, E)
    S, E = pos.shape
    scale = 1.0 / (E ** 0.5)                           # module scales by sqrt(emb_size)

    ln1_g, ln1_b, ln2_g, ln2_b = [], [], [], []
    wqkv, bqkv, wproj, bproj = [], [], [], []
    w1s, b1s, w2s, b2s = [], [], [], []
    for (g1, be1, wq, bq, wk, bk, wv, bv, wp, bp, g2, be2, w1, b1, w2, b2) in params["blocks"]:
        ln1_g.append(g1); ln1_b.append(be1)
        ln2_g.append(g2); ln2_b.append(be2)
        wqkv.append(jnp.concatenate([wq * scale, wk, wv], axis=1))   # (E, 3E)
        bqkv.append(jnp.concatenate([bq * scale, bk, bv], axis=1))   # (1, 3E)
        wproj.append(wp); bproj.append(bp)
        w1s.append(w1); b1s.append(b1); w2s.append(w2); b2s.append(b2)

    C = params["wconv"].shape[1]
    wconv = jnp.zeros((E, TAIL_PAD), jnp.float32).at[:, :C].set(params["wconv"])
    bconv = jnp.zeros((1, TAIL_PAD), jnp.float32).at[:, :C].set(params["bconv"])
    wtail = jnp.zeros((TAIL_PAD, TAIL_PAD), jnp.float32)
    wtail = wtail.at[:C, 0:1].set(params["wdec"]).at[:C, 1:3].set(params["wlin"])
    btail = jnp.zeros((1, TAIL_PAD), jnp.float32)
    btail = btail.at[:, 0:1].set(params["bdec"]).at[:, 1:3].set(params["blin"])

    BS = batch * S
    bidx = jnp.arange(BS) // S
    mask = jnp.where(bidx[:, None] == bidx[None, :], 0.0, NEG_BIG).astype(jnp.float32)
    sel = jnp.zeros((batch, BS), jnp.float32)
    sel = sel.at[jnp.arange(batch), jnp.arange(batch) * S + S - 1].set(1.0)

    return dict(
        pos=jnp.tile(pos, (batch, 1)),                                # (B*S, E)
        mask=mask,                                                    # (B*S, B*S)
        sel=sel,                                                      # (B, B*S)
        ln1_g=jnp.stack(ln1_g), ln1_b=jnp.stack(ln1_b),               # (D, 1, E)
        ln2_g=jnp.stack(ln2_g), ln2_b=jnp.stack(ln2_b),
        wqkv=jnp.stack(wqkv), bqkv=jnp.stack(bqkv),                   # (D, E, 3E), (D, 1, 3E)
        wproj=jnp.stack(wproj), bproj=jnp.stack(bproj),               # (D, E, E), (D, 1, E)
        w1=jnp.stack(w1s), b1=jnp.stack(b1s),                         # (D, E, 4E), (D, 1, 4E)
        w2=jnp.stack(w2s), b2=jnp.stack(b2s),                         # (D, 4E, E), (D, 1, E)
        wconv=wconv, bconv=bconv,                                     # (E, 128), (1, 128)
        wtail=wtail, btail=btail,                                     # (128, 128), (1, 128)
        channels=C,
    )


# ------------------------------ full forward ---------------------------------

_WEIGHT_ORDER = ["pos", "mask", "sel",
                 "ln1_g", "ln1_b", "wqkv", "bqkv", "wproj", "bproj",
                 "ln2_g", "ln2_b", "w1", "b1", "w2", "b2",
                 "wconv", "bconv", "wtail", "btail"]


def generator_forward(z, packed):
    """z: (B, embed_dim, seq_len) float32 — the already-squeezed PyTorch input."""
    z = z.astype(jnp.float32)
    B, E, S = z.shape
    BS = B * S
    C = packed["channels"]
    D = packed["w1"].shape[0]

    # Layout plumbing only: transpose + fold batch into the sublane axis.
    zf = jnp.transpose(z, (0, 2, 1)).reshape(BS, E)

    weights = [packed[n] for n in _WEIGHT_ORDER]

    def full_spec(a):
        nd = a.ndim
        return pl.BlockSpec(a.shape, lambda i, _nd=nd: (0,) * _nd)

    conv_pad, tail = pl.pallas_call(
        functools.partial(generator_fused_kernel, num_heads=NUM_HEADS,
                          emb_size=E, depth=D),
        out_shape=(jax.ShapeDtypeStruct((BS, TAIL_PAD), jnp.float32),
                   jax.ShapeDtypeStruct((B, TAIL_PAD), jnp.float32)),
        grid=(1,),
        in_specs=[full_spec(zf)] + [full_spec(w) for w in weights],
        out_specs=(pl.BlockSpec((BS, TAIL_PAD), lambda i: (0, 0)),
                   pl.BlockSpec((B, TAIL_PAD), lambda i: (0, 0))),
        compiler_params=pltpu.CompilerParams(dimension_semantics=("arbitrary",)),
    )(zf, *weights)

    pre_out = tail[:, 0:1]                       # decoder_layer output (B, 1) == self.pre_out
    fenlei_out = tail[:, 1:3]                    # linear output        (B, 2) (returned tensor)
    conv_out = conv_pad[:, :C].reshape(B, S, C)  # self.saved_output (layout (B,S,C) vs NCHW (B,C,1,S))
    return fenlei_out, pre_out, conv_out


# ------------------------------ pure-JAX reference ----------------------------

def reference_forward(z, params):
    x = jnp.transpose(z.astype(jnp.float32), (0, 2, 1)) + params["pos_embed"]
    B, S, E = x.shape
    d = E // NUM_HEADS

    def ln(t, g, b):
        mu = t.mean(-1, keepdims=True)
        var = ((t - mu) ** 2).mean(-1, keepdims=True)
        return (t - mu) / jnp.sqrt(var + EPS) * g + b

    for (g1, b1, wq, bq, wk, bk, wv, bv, wp, bp, g2, b2, w1, bb1, w2, bb2) in params["blocks"]:
        xn = ln(x, g1, b1)
        q = (xn @ wq + bq).reshape(B, S, NUM_HEADS, d).transpose(0, 2, 1, 3)
        k = (xn @ wk + bk).reshape(B, S, NUM_HEADS, d).transpose(0, 2, 1, 3)
        v = (xn @ wv + bv).reshape(B, S, NUM_HEADS, d).transpose(0, 2, 1, 3)
        att = jax.nn.softmax(jnp.einsum('bhqd,bhkd->bhqk', q, k) / (E ** 0.5), axis=-1)
        out = jnp.einsum('bhqk,bhkd->bhqd', att, v).transpose(0, 2, 1, 3).reshape(B, S, E)
        x = x + (out @ wp + bp)
        xn2 = ln(x, g2, b2)
        h = jax.nn.gelu(xn2 @ w1 + bb1, approximate=False)
        x = x + (h @ w2 + bb2)

    conv = x @ params["wconv"] + params["bconv"]
    last = conv[:, -1, :]
    pre = last @ params["wdec"] + params["bdec"]
    fen = last @ params["wlin"] + params["blin"]
    return fen, pre, conv


# ---------------------------------- params -----------------------------------

def init_params(key, seq_len, emb, channels, depth):
    keys = iter(jax.random.split(key, 128))
    nxt = lambda shape, s=0.02: jax.random.normal(next(keys), shape, jnp.float32) * s
    params = {"pos_embed": nxt((1, seq_len, emb))}
    blocks = []
    for _ in range(depth):
        blocks.append((
            jnp.ones((1, emb), jnp.float32), jnp.zeros((1, emb), jnp.float32),   # LN1 gamma/beta
            nxt((emb, emb)), nxt((1, emb)),                                      # Wq, bq  (stored (in,out))
            nxt((emb, emb)), nxt((1, emb)),                                      # Wk, bk
            nxt((emb, emb)), nxt((1, emb)),                                      # Wv, bv
            nxt((emb, emb)), nxt((1, emb)),                                      # Wproj, bproj
            jnp.ones((1, emb), jnp.float32), jnp.zeros((1, emb), jnp.float32),   # LN2 gamma/beta
            nxt((emb, FFN_EXP * emb)), nxt((1, FFN_EXP * emb)),                  # FFN W1, b1
            nxt((FFN_EXP * emb, emb)), nxt((1, emb)),                            # FFN W2, b2
        ))
    params["blocks"] = blocks
    params["wconv"] = nxt((emb, channels))        # Conv2d(emb, channels, 1) weight, (in,out)
    params["bconv"] = nxt((1, channels))
    params["wdec"] = nxt((channels, 1))           # decoder_layer: Linear(channels, 1)
    params["bdec"] = nxt((1, 1))
    params["wlin"] = nxt((channels, 2))           # linear: Linear(channels, 2)
    params["blin"] = nxt((1, 2))
    return params


# ------------------------------------ main ------------------------------------

if __name__ == "__main__":
    B, SEQ, EMB, CH = 2, 8, 32, 32   # small shapes consistent with the module (channels == embed_dim)

    key = jax.random.PRNGKey(0)
    kz, kp = jax.random.split(key)
    z = jax.random.normal(kz, (B, EMB, SEQ), jnp.float32)   # (B, embed_dim, seq_len)
    params = init_params(kp, SEQ, EMB, CH, DEPTH)
    packed = pack_params(params, B)   # one-time host-side weight re-layout

    fen, pre, conv = generator_forward(z, packed)
    jax.block_until_ready((fen, pre, conv))

    fen_ref, pre_ref, conv_expected = reference_forward(z, params)
    assert fen.shape == (B, 2) and pre.shape == (B, 1) and conv.shape == (B, SEQ, CH)
    assert jnp.allclose(fen, fen_ref, atol=1e-4, rtol=1e-4)
    assert jnp.allclose(pre, pre_ref, atol=1e-4, rtol=1e-4)
    assert jnp.allclose(conv, conv_expected, atol=1e-4, rtol=1e-4)

    print("KERNEL_OK")
</pallas_src>

<mosaic_0001>
module attributes {stable_mosaic.version = 11 : i64} {
  func.func @generator_fused_kernel(%arg0: i32, %arg1: memref<16x32xf32, #tpu.memory_space<vmem>>, %arg2: memref<16x32xf32, #tpu.memory_space<vmem>>, %arg3: memref<16x16xf32, #tpu.memory_space<vmem>>, %arg4: memref<2x16xf32, #tpu.memory_space<vmem>>, %arg5: memref<3x1x32xf32, #tpu.memory_space<vmem>>, %arg6: memref<3x1x32xf32, #tpu.memory_space<vmem>>, %arg7: memref<3x32x96xf32, #tpu.memory_space<vmem>>, %arg8: memref<3x1x96xf32, #tpu.memory_space<vmem>>, %arg9: memref<3x32x32xf32, #tpu.memory_space<vmem>>, %arg10: memref<3x1x32xf32, #tpu.memory_space<vmem>>, %arg11: memref<3x1x32xf32, #tpu.memory_space<vmem>>, %arg12: memref<3x1x32xf32, #tpu.memory_space<vmem>>, %arg13: memref<3x32x128xf32, #tpu.memory_space<vmem>>, %arg14: memref<3x1x128xf32, #tpu.memory_space<vmem>>, %arg15: memref<3x128x32xf32, #tpu.memory_space<vmem>>, %arg16: memref<3x1x32xf32, #tpu.memory_space<vmem>>, %arg17: memref<32x128xf32, #tpu.memory_space<vmem>>, %arg18: memref<1x128xf32, #tpu.memory_space<vmem>>, %arg19: memref<128x128xf32, #tpu.memory_space<vmem>>, %arg20: memref<1x128xf32, #tpu.memory_space<vmem>>, %arg21: memref<16x128xf32, #tpu.memory_space<vmem>>, %arg22: memref<2x128xf32, #tpu.memory_space<vmem>>) attributes {dimension_semantics = [#tpu.dimension_semantics<arbitrary>], iteration_bounds = array<i64: 1>, scalar_prefetch = 0 : i64, scratch_operands = 0 : i64, tpu.core_type = #tpu.core_type<tc>, window_params = [{pipeline_mode = #tpu.pipeline_mode<synchronous>, transform_indices = @transform_0, window_bounds = array<i64: 16, 32>}, {pipeline_mode = #tpu.pipeline_mode<synchronous>, transform_indices = @transform_1, window_bounds = array<i64: 16, 32>}, {pipeline_mode = #tpu.pipeline_mode<synchronous>, transform_indices = @transform_2, window_bounds = array<i64: 16, 16>}, {pipeline_mode = #tpu.pipeline_mode<synchronous>, transform_indices = @transform_3, window_bounds = array<i64: 2, 16>}, {pipeline_mode = #tpu.pipeline_mode<synchronous>, transform_indices = @transform_4, window_bounds = array<i64: 3, 1, 32>}, {pipeline_mode = #tpu.pipeline_mode<synchronous>, transform_indices = @transform_5, window_bounds = array<i64: 3, 1, 32>}, {pipeline_mode = #tpu.pipeline_mode<synchronous>, transform_indices = @transform_6, window_bounds = array<i64: 3, 32, 96>}, {pipeline_mode = #tpu.pipeline_mode<synchronous>, transform_indices = @transform_7, window_bounds = array<i64: 3, 1, 96>}, {pipeline_mode = #tpu.pipeline_mode<synchronous>, transform_indices = @transform_8, window_bounds = array<i64: 3, 32, 32>}, {pipeline_mode = #tpu.pipeline_mode<synchronous>, transform_indices = @transform_9, window_bounds = array<i64: 3, 1, 32>}, {pipeline_mode = #tpu.pipeline_mode<synchronous>, transform_indices = @transform_10, window_bounds = array<i64: 3, 1, 32>}, {pipeline_mode = #tpu.pipeline_mode<synchronous>, transform_indices = @transform_11, window_bounds = array<i64: 3, 1, 32>}, {pipeline_mode = #tpu.pipeline_mode<synchronous>, transform_indices = @transform_12, window_bounds = array<i64: 3, 32, 128>}, {pipeline_mode = #tpu.pipeline_mode<synchronous>, transform_indices = @transform_13, window_bounds = array<i64: 3, 1, 128>}, {pipeline_mode = #tpu.pipeline_mode<synchronous>, transform_indices = @transform_14, window_bounds = array<i64: 3, 128, 32>}, {pipeline_mode = #tpu.pipeline_mode<synchronous>, transform_indices = @transform_15, window_bounds = array<i64: 3, 1, 32>}, {pipeline_mode = #tpu.pipeline_mode<synchronous>, transform_indices = @transform_16, window_bounds = array<i64: 32, 128>}, {pipeline_mode = #tpu.pipeline_mode<synchronous>, transform_indices = @transform_17, window_bounds = array<i64: 1, 128>}, {pipeline_mode = #tpu.pipeline_mode<synchronous>, transform_indices = @transform_18, window_bounds = array<i64: 128, 128>}, {pipeline_mode = #tpu.pipeline_mode<synchronous>, transform_indices = @transform_19, window_bounds = array<i64: 1, 128>}, {pipeline_mode = #tpu.pipeline_mode<synchronous>, transform_indices = @transform_20, window_bounds = array<i64: 16, 128>}, {pipeline_mode = #tpu.pipeline_mode<synchronous>, transform_indices = @transform_21, window_bounds = array<i64: 2, 128>}]} {
    %c0 = arith.constant 0 : index
    %c0_0 = arith.constant 0 : index
    %0 = vector.load %arg1[%c0, %c0_0] : memref<16x32xf32, #tpu.memory_space<vmem>>, vector<16x32xf32>
    %c0_1 = arith.constant 0 : index
    %c0_2 = arith.constant 0 : index
    %1 = vector.load %arg2[%c0_1, %c0_2] : memref<16x32xf32, #tpu.memory_space<vmem>>, vector<16x32xf32>
    %2 = arith.addf %0, %1 : vector<16x32xf32>
    %c0_3 = arith.constant 0 : index
    %c0_4 = arith.constant 0 : index
    %3 = vector.load %arg3[%c0_3, %c0_4] : memref<16x16xf32, #tpu.memory_space<vmem>>, vector<16x16xf32>
    %c0_5 = arith.constant 0 : index
    %c0_6 = arith.constant 0 : index
    %c0_7 = arith.constant 0 : index
    %4 = vector.load %arg5[%c0_5, %c0_6, %c0_7] : memref<3x1x32xf32, #tpu.memory_space<vmem>>, vector<1x1x32xf32>
    %5 = vector.shape_cast %4 : vector<1x1x32xf32> to vector<1x32xf32>
    %c0_8 = arith.constant 0 : index
    %c0_9 = arith.constant 0 : index
    %c0_10 = arith.constant 0 : index
    %6 = vector.load %arg6[%c0_8, %c0_9, %c0_10] : memref<3x1x32xf32, #tpu.memory_space<vmem>>, vector<1x1x32xf32>
    %7 = vector.shape_cast %6 : vector<1x1x32xf32> to vector<1x32xf32>
    %cst = arith.constant dense<0.000000e+00> : vector<16xf32>
    %8 = vector.multi_reduction <add>, %2, %cst [1] : vector<16x32xf32> to vector<16xf32>
    %9 = vector.shape_cast %8 : vector<16xf32> to vector<16x1xf32>
    %cst_11 = arith.constant 3.200000e+01 : f32
    %10 = vector.broadcast %cst_11 : f32 to vector<16x1xf32>
    %11 = arith.divf %9, %10 : vector<16x1xf32>
    %12 = vector.broadcast %11 : vector<16x1xf32> to vector<16x32xf32>
    %13 = arith.subf %2, %12 : vector<16x32xf32>
    %14 = arith.mulf %13, %13 : vector<16x32xf32>
    %cst_12 = arith.constant dense<0.000000e+00> : vector<16xf32>
    %15 = vector.multi_reduction <add>, %14, %cst_12 [1] : vector<16x32xf32> to vector<16xf32>
    %16 = vector.shape_cast %15 : vector<16xf32> to vector<16x1xf32>
    %cst_13 = arith.constant 3.200000e+01 : f32
    %17 = vector.broadcast %cst_13 : f32 to vector<16x1xf32>
    %18 = arith.divf %16, %17 : vector<16x1xf32>
    %19 = vector.broadcast %11 : vector<16x1xf32> to vector<16x32xf32>
    %20 = arith.subf %2, %19 : vector<16x32xf32>
    %cst_14 = arith.constant 9.99999974E-6 : f32
    %21 = vector.broadcast %cst_14 : f32 to vector<16x1xf32>
    %22 = arith.addf %18, %21 : vector<16x1xf32>
    %23 = math.rsqrt %22 : vector<16x1xf32>
    %24 = vector.broadcast %23 : vector<16x1xf32> to vector<16x32xf32>
    %25 = arith.mulf %20, %24 : vector<16x32xf32>
    %26 = vector.broadcast %5 : vector<1x32xf32> to vector<16x32xf32>
    %27 = arith.mulf %25, %26 : vector<16x32xf32>
    %28 = vector.broadcast %7 : vector<1x32xf32> to vector<16x32xf32>
    %29 = arith.addf %27, %28 : vector<16x32xf32>
    %c0_15 = arith.constant 0 : index
    %c0_16 = arith.constant 0 : index
    %c0_17 = arith.constant 0 : index
    %30 = vector.load %arg7[%c0_15, %c0_16, %c0_17] : memref<3x32x96xf32, #tpu.memory_space<vmem>>, vector<1x32x96xf32>
    %31 = vector.shape_cast %30 : vector<1x32x96xf32> to vector<32x96xf32>
    %cst_18 = arith.constant dense<0.000000e+00> : vector<16x96xf32>
    %32 = tpu.matmul %29, %31, %cst_18 {dimension_numbers = #tpu.dot_dimension_numbers<[1], [0], [0], [1], [0, 0, 1, 1], [], []>} : vector<16x32xf32>, vector<32x96xf32>, vector<16x96xf32> -> vector<16x96xf32>
    %c0_19 = arith.constant 0 : index
    %c0_20 = arith.constant 0 : index
    %c0_21 = arith.constant 0 : index
    %33 = vector.load %arg8[%c0_19, %c0_20, %c0_21] : memref<3x1x96xf32, #tpu.memory_space<vmem>>, vector<1x1x96xf32>
    %34 = vector.shape_cast %33 : vector<1x1x96xf32> to vector<1x96xf32>
    %35 = vector.broadcast %34 : vector<1x96xf32> to vector<16x96xf32>
    %36 = arith.addf %32, %35 : vector<16x96xf32>
    %37 = vector.extract_strided_slice %36 {offsets = [0, 0], sizes = [16, 16], strides = [1, 1]} : vector<16x96xf32> to vector<16x16xf32>
    %38 = vector.extract_strided_slice %36 {offsets = [0, 32], sizes = [16, 16], strides = [1, 1]} : vector<16x96xf32> to vector<16x16xf32>
    %39 = vector.extract_strided_slice %36 {offsets = [0, 64], sizes = [16, 16], strides = [1, 1]} : vector<16x96xf32> to vector<16x16xf32>
    %cst_22 = arith.constant dense<0.000000e+00> : vector<16x16xf32>
    %40 = tpu.matmul %37, %38, %cst_22 {dimension_numbers = #tpu.dot_dimension_numbers<[1], [1], [0], [0], [0, 0, 1, 0], [], []>} : vector<16x16xf32>, vector<16x16xf32>, vector<16x16xf32> -> vector<16x16xf32>
    %41 = arith.addf %40, %3 : vector<16x16xf32>
    %cst_23 = arith.constant dense<0xFF800000> : vector<16xf32>
    %42 = vector.multi_reduction <maximumf>, %41, %cst_23 [1] : vector<16x16xf32> to vector<16xf32>
    %43 = vector.shape_cast %42 : vector<16xf32> to vector<16x1xf32>
    %44 = vector.broadcast %43 : vector<16x1xf32> to vector<16x16xf32>
    %45 = arith.subf %41, %44 : vector<16x16xf32>
    %46 = math.exp %45 : vector<16x16xf32>
    %cst_24 = arith.constant dense<0.000000e+00> : vector<16xf32>
    %47 = vector.multi_reduction <add>, %46, %cst_24 [1] : vector<16x16xf32> to vector<16xf32>
    %48 = vector.shape_cast %47 : vector<16xf32> to vector<16x1xf32>
    %49 = vector.broadcast %48 : vector<16x1xf32> to vector<16x16xf32>
    %50 = arith.divf %46, %49 : vector<16x16xf32>
    %cst_25 = arith.constant dense<0.000000e+00> : vector<16x16xf32>
    %51 = tpu.matmul %50, %39, %cst_25 {dimension_numbers = #tpu.dot_dimension_numbers<[1], [0], [0], [1], [0, 0, 1, 1], [], []>} : vector<16x16xf32>, vector<16x16xf32>, vector<16x16xf32> -> vector<16x16xf32>
    %52 = vector.extract_strided_slice %36 {offsets = [0, 16], sizes = [16, 16], strides = [1, 1]} : vector<16x96xf32> to vector<16x16xf32>
    %53 = vector.extract_strided_slice %36 {offsets = [0, 48], sizes = [16, 16], strides = [1, 1]} : vector<16x96xf32> to vector<16x16xf32>
    %54 = vector.extract_strided_slice %36 {offsets = [0, 80], sizes = [16, 16], strides = [1, 1]} : vector<16x96xf32> to vector<16x16xf32>
    %cst_26 = arith.constant dense<0.000000e+00> : vector<16x16xf32>
    %55 = tpu.matmul %52, %53, %cst_26 {dimension_numbers = #tpu.dot_dimension_numbers<[1], [1], [0], [0], [0, 0, 1, 0], [], []>} : vector<16x16xf32>, vector<16x16xf32>, vector<16x16xf32> -> vector<16x16xf32>
    %56 = arith.addf %55, %3 : vector<16x16xf32>
    %cst_27 = arith.constant dense<0xFF800000> : vector<16xf32>
    %57 = vector.multi_reduction <maximumf>, %56, %cst_27 [1] : vector<16x16xf32> to vector<16xf32>
    %58 = vector.shape_cast %57 : vector<16xf32> to vector<16x1xf32>
    %59 = vector.broadcast %58 : vector<16x1xf32> to vector<16x16xf32>
    %60 = arith.subf %56, %59 : vector<16x16xf32>
    %61 = math.exp %60 : vector<16x16xf32>
    %cst_28 = arith.constant dense<0.000000e+00> : vector<16xf32>
    %62 = vector.multi_reduction <add>, %61, %cst_28 [1] : vector<16x16xf32> to vector<16xf32>
    %63 = vector.shape_cast %62 : vector<16xf32> to vector<16x1xf32>
    %64 = vector.broadcast %63 : vector<16x1xf32> to vector<16x16xf32>
    %65 = arith.divf %61, %64 : vector<16x16xf32>
    %cst_29 = arith.constant dense<0.000000e+00> : vector<16x16xf32>
    %66 = tpu.matmul %65, %54, %cst_29 {dimension_numbers = #tpu.dot_dimension_numbers<[1], [0], [0], [1], [0, 0, 1, 1], [], []>} : vector<16x16xf32>, vector<16x16xf32>, vector<16x16xf32> -> vector<16x16xf32>
    %67 = tpu.concatenate %51, %66 in 1 : vector<16x16xf32>, vector<16x16xf32> -> vector<16x32xf32>
    %c0_30 = arith.constant 0 : index
    %c0_31 = arith.constant 0 : index
    %c0_32 = arith.constant 0 : index
    %68 = vector.load %arg9[%c0_30, %c0_31, %c0_32] : memref<3x32x32xf32, #tpu.memory_space<vmem>>, vector<1x32x32xf32>
    %69 = vector.shape_cast %68 : vector<1x32x32xf32> to vector<32x32xf32>
    %cst_33 = arith.constant dense<0.000000e+00> : vector<16x32xf32>
    %70 = tpu.matmul %67, %69, %cst_33 {dimension_numbers = #tpu.dot_dimension_numbers<[1], [0], [0], [1], [0, 0, 1, 1], [], []>} : vector<16x32xf32>, vector<32x32xf32>, vector<16x32xf32> -> vector<16x32xf32>
    %71 = arith.addf %2, %70 : vector<16x32xf32>
    %c0_34 = arith.constant 0 : index
    %c0_35 = arith.constant 0 : index
    %c0_36 = arith.constant 0 : index
    %72 = vector.load %arg10[%c0_34, %c0_35, %c0_36] : memref<3x1x32xf32, #tpu.memory_space<vmem>>, vector<1x1x32xf32>
    %73 = vector.shape_cast %72 : vector<1x1x32xf32> to vector<1x32xf32>
    %74 = vector.broadcast %73 : vector<1x32xf32> to vector<16x32xf32>
    %75 = arith.addf %71, %74 : vector<16x32xf32>
    %c0_37 = arith.constant 0 : index
    %c0_38 = arith.constant 0 : index
    %c0_39 = arith.constant 0 : index
    %76 = vector.load %arg11[%c0_37, %c0_38, %c0_39] : memref<3x1x32xf32, #tpu.memory_space<vmem>>, vector<1x1x32xf32>
    %77 = vector.shape_cast %76 : vector<1x1x32xf32> to vector<1x32xf32>
    %c0_40 = arith.constant 0 : index
    %c0_41 = arith.constant 0 : index
    %c0_42 = arith.constant 0 : index
    %78 = vector.load %arg12[%c0_40, %c0_41, %c0_42] : memref<3x1x32xf32, #tpu.memory_space<vmem>>, vector<1x1x32xf32>
    %79 = vector.shape_cast %78 : vector<1x1x32xf32> to vector<1x32xf32>
    %cst_43 = arith.constant dense<0.000000e+00> : vector<16xf32>
    %80 = vector.multi_reduction <add>, %75, %cst_43 [1] : vector<16x32xf32> to vector<16xf32>
    %81 = vector.shape_cast %80 : vector<16xf32> to vector<16x1xf32>
    %cst_44 = arith.constant 3.200000e+01 : f32
    %82 = vector.broadcast %cst_44 : f32 to vector<16x1xf32>
    %83 = arith.divf %81, %82 : vector<16x1xf32>
    %84 = vector.broadcast %83 : vector<16x1xf32> to vector<16x32xf32>
    %85 = arith.subf %75, %84 : vector<16x32xf32>
    %86 = arith.mulf %85, %85 : vector<16x32xf32>
    %cst_45 = arith.constant dense<0.000000e+00> : vector<16xf32>
    %87 = vector.multi_reduction <add>, %86, %cst_45 [1] : vector<16x32xf32> to vector<16xf32>
    %88 = vector.shape_cast %87 : vector<16xf32> to vector<16x1xf32>
    %cst_46 = arith.constant 3.200000e+01 : f32
    %89 = vector.broadcast %cst_46 : f32 to vector<16x1xf32>
    %90 = arith.divf %88, %89 : vector<16x1xf32>
    %91 = vector.broadcast %83 : vector<16x1xf32> to vector<16x32xf32>
    %92 = arith.subf %75, %91 : vector<16x32xf32>
    %cst_47 = arith.constant 9.99999974E-6 : f32
    %93 = vector.broadcast %cst_47 : f32 to vector<16x1xf32>
    %94 = arith.addf %90, %93 : vector<16x1xf32>
    %95 = math.rsqrt %94 : vector<16x1xf32>
    %96 = vector.broadcast %95 : vector<16x1xf32> to vector<16x32xf32>
    %97 = arith.mulf %92, %96 : vector<16x32xf32>
    %98 = vector.broadcast %77 : vector<1x32xf32> to vector<16x32xf32>
    %99 = arith.mulf %97, %98 : vector<16x32xf32>
    %100 = vector.broadcast %79 : vector<1x32xf32> to vector<16x32xf32>
    %101 = arith.addf %99, %100 : vector<16x32xf32>
    %c0_48 = arith.constant 0 : index
    %c0_49 = arith.constant 0 : index
    %c0_50 = arith.constant 0 : index
    %102 = vector.load %arg13[%c0_48, %c0_49, %c0_50] : memref<3x32x128xf32, #tpu.memory_space<vmem>>, vector<1x32x128xf32>
    %103 = vector.shape_cast %102 : vector<1x32x128xf32> to vector<32x128xf32>
    %cst_51 = arith.constant dense<0.000000e+00> : vector<16x128xf32>
    %104 = tpu.matmul %101, %103, %cst_51 {dimension_numbers = #tpu.dot_dimension_numbers<[1], [0], [0], [1], [0, 0, 1, 1], [], []>} : vector<16x32xf32>, vector<32x128xf32>, vector<16x128xf32> -> vector<16x128xf32>
    %c0_52 = arith.constant 0 : index
    %c0_53 = arith.constant 0 : index
    %c0_54 = arith.constant 0 : index
    %105 = vector.load %arg14[%c0_52, %c0_53, %c0_54] : memref<3x1x128xf32, #tpu.memory_space<vmem>>, vector<1x1x128xf32>
    %106 = vector.shape_cast %105 : vector<1x1x128xf32> to vector<1x128xf32>
    %107 = vector.broadcast %106 : vector<1x128xf32> to vector<16x128xf32>
    %108 = arith.addf %104, %107 : vector<16x128xf32>
    %cst_55 = arith.constant 5.000000e-01 : f32
    %109 = vector.broadcast %cst_55 : f32 to vector<16x128xf32>
    %110 = arith.mulf %109, %108 : vector<16x128xf32>
    %cst_56 = arith.constant 0.707106769 : f32
    %111 = vector.broadcast %cst_56 : f32 to vector<16x128xf32>
    %112 = arith.mulf %108, %111 : vector<16x128xf32>
    %113 = math.absf %112 : vector<16x128xf32>
    %cst_57 = arith.constant 5.000000e-01 : f32
    %114 = vector.broadcast %cst_57 : f32 to vector<16x128xf32>
    %115 = arith.mulf %114, %113 : vector<16x128xf32>
    %cst_58 = arith.constant 1.000000e+00 : f32
    %116 = vector.broadcast %cst_58 : f32 to vector<16x128xf32>
    %117 = arith.addf %116, %115 : vector<16x128xf32>
    %cst_59 = arith.constant 1.000000e+00 : f32
    %118 = vector.broadcast %cst_59 : f32 to vector<16x128xf32>
    %119 = arith.divf %118, %117 : vector<16x128xf32>
    %cst_60 = arith.constant 0.170872763 : f32
    %120 = vector.broadcast %cst_60 : f32 to vector<16x128xf32>
    %121 = arith.mulf %119, %120 : vector<16x128xf32>
    %cst_61 = arith.constant -0.822152256 : f32
    %122 = vector.broadcast %cst_61 : f32 to vector<16x128xf32>
    %123 = arith.addf %122, %121 : vector<16x128xf32>
    %124 = arith.mulf %119, %123 : vector<16x128xf32>
    %cst_62 = arith.constant 1.48851585 : f32
    %125 = vector.broadcast %cst_62 : f32 to vector<16x128xf32>
    %126 = arith.addf %125, %124 : vector<16x128xf32>
    %127 = arith.mulf %119, %126 : vector<16x128xf32>
    %cst_63 = arith.constant -1.13520396 : f32
    %128 = vector.broadcast %cst_63 : f32 to vector<16x128xf32>
    %129 = arith.addf %128, %127 : vector<16x128xf32>
    %130 = arith.mulf %119, %129 : vector<16x128xf32>
    %cst_64 = arith.constant 0.278868079 : f32
    %131 = vector.broadcast %cst_64 : f32 to vector<16x128xf32>
    %132 = arith.addf %131, %130 : vector<16x128xf32>
    %133 = arith.mulf %119, %132 : vector<16x128xf32>
    %cst_65 = arith.constant -0.186288059 : f32
    %134 = vector.broadcast %cst_65 : f32 to vector<16x128xf32>
    %135 = arith.addf %134, %133 : vector<16x128xf32>
    %136 = arith.mulf %119, %135 : vector<16x128xf32>
    %cst_66 = arith.constant 0.0967841818 : f32
    %137 = vector.broadcast %cst_66 : f32 to vector<16x128xf32>
    %138 = arith.addf %137, %136 : vector<16x128xf32>
    %139 = arith.mulf %119, %138 : vector<16x128xf32>
    %cst_67 = arith.constant 0.374091953 : f32
    %140 = vector.broadcast %cst_67 : f32 to vector<16x128xf32>
    %141 = arith.addf %140, %139 : vector<16x128xf32>
    %142 = arith.mulf %119, %141 : vector<16x128xf32>
    %cst_68 = arith.constant 1.00002372 : f32
    %143 = vector.broadcast %cst_68 : f32 to vector<16x128xf32>
    %144 = arith.addf %143, %142 : vector<16x128xf32>
    %145 = arith.mulf %119, %144 : vector<16x128xf32>
    %cst_69 = arith.constant -1.26551223 : f32
    %146 = vector.broadcast %cst_69 : f32 to vector<16x128xf32>
    %147 = arith.addf %146, %145 : vector<16x128xf32>
    %cst_70 = arith.constant 0.000000e+00 : f32
    %148 = vector.broadcast %cst_70 : f32 to vector<16x128xf32>
    %149 = arith.subf %148, %113 : vector<16x128xf32>
    %150 = arith.mulf %149, %113 : vector<16x128xf32>
    %151 = arith.addf %150, %147 : vector<16x128xf32>
    %152 = math.exp %151 : vector<16x128xf32>
    %153 = arith.mulf %119, %152 : vector<16x128xf32>
    %cst_71 = arith.constant 1.000000e+00 : f32
    %154 = vector.broadcast %cst_71 : f32 to vector<16x128xf32>
    %155 = arith.subf %154, %153 : vector<16x128xf32>
    %cst_72 = arith.constant 0.000000e+00 : f32
    %156 = vector.broadcast %cst_72 : f32 to vector<16x128xf32>
    %157 = arith.cmpf oge, %112, %156 : vector<16x128xf32>
    %cst_73 = arith.constant 0.000000e+00 : f32
    %158 = vector.broadcast %cst_73 : f32 to vector<16x128xf32>
    %159 = arith.subf %158, %155 : vector<16x128xf32>
    %160 = arith.select %157, %155, %159 : vector<16x128xi1>, vector<16x128xf32>
    %cst_74 = arith.constant 1.000000e+00 : f32
    %161 = vector.broadcast %cst_74 : f32 to vector<16x128xf32>
    %162 = arith.addf %161, %160 : vector<16x128xf32>
    %163 = arith.mulf %110, %162 : vector<16x128xf32>
    %c0_75 = arith.constant 0 : index
    %c0_76 = arith.constant 0 : index
    %c0_77 = arith.constant 0 : index
    %164 = vector.load %arg15[%c0_75, %c0_76, %c0_77] : memref<3x128x32xf32, #tpu.memory_space<vmem>>, vector<1x128x32xf32>
    %165 = vector.shape_cast %164 : vector<1x128x32xf32> to vector<128x32xf32>
    %cst_78 = arith.constant dense<0.000000e+00> : vector<16x32xf32>
    %166 = tpu.matmul %163, %165, %cst_78 {dimension_numbers = #tpu.dot_dimension_numbers<[1], [0], [0], [1], [0, 0, 1, 1], [], []>} : vector<16x128xf32>, vector<128x32xf32>, vector<16x32xf32> -> vector<16x32xf32>
    %167 = arith.addf %75, %166 : vector<16x32xf32>
    %c0_79 = arith.constant 0 : index
    %c0_80 = arith.constant 0 : index
    %c0_81 = arith.constant 0 : index
    %168 = vector.load %arg16[%c0_79, %c0_80, %c0_81] : memref<3x1x32xf32, #tpu.memory_space<vmem>>, vector<1x1x32xf32>
    %169 = vector.shape_cast %168 : vector<1x1x32xf32> to vector<1x32xf32>
    %170 = vector.broadcast %169 : vector<1x32xf32> to vector<16x32xf32>
    %171 = arith.addf %167, %170 : vector<16x32xf32>
    %c1 = arith.constant 1 : index
    %c0_82 = arith.constant 0 : index
    %c0_83 = arith.constant 0 : index
    %172 = vector.load %arg5[%c1, %c0_82, %c0_83] : memref<3x1x32xf32, #tpu.memory_space<vmem>>, vector<1x1x32xf32>
    %173 = vector.shape_cast %172 : vector<1x1x32xf32> to vector<1x32xf32>
    %c1_84 = arith.constant 1 : index
    %c0_85 = arith.constant 0 : index
    %c0_86 = arith.constant 0 : index
    %174 = vector.load %arg6[%c1_84, %c0_85, %c0_86] : memref<3x1x32xf32, #tpu.memory_space<vmem>>, vector<1x1x32xf32>
    %175 = vector.shape_cast %174 : vector<1x1x32xf32> to vector<1x32xf32>
    %cst_87 = arith.constant dense<0.000000e+00> : vector<16xf32>
    %176 = vector.multi_reduction <add>, %171, %cst_87 [1] : vector<16x32xf32> to vector<16xf32>
    %177 = vector.shape_cast %176 : vector<16xf32> to vector<16x1xf32>
    %cst_88 = arith.constant 3.200000e+01 : f32
    %178 = vector.broadcast %cst_88 : f32 to vector<16x1xf32>
    %179 = arith.divf %177, %178 : vector<16x1xf32>
    %180 = vector.broadcast %179 : vector<16x1xf32> to vector<16x32xf32>
    %181 = arith.subf %171, %180 : vector<16x32xf32>
    %182 = arith.mulf %181, %181 : vector<16x32xf32>
    %cst_89 = arith.constant dense<0.000000e+00> : vector<16xf32>
    %183 = vector.multi_reduction <add>, %182, %cst_89 [1] : vector<16x32xf32> to vector<16xf32>
    %184 = vector.shape_cast %183 : vector<16xf32> to vector<16x1xf32>
    %cst_90 = arith.constant 3.200000e+01 : f32
    %185 = vector.broadcast %cst_90 : f32 to vector<16x1xf32>
    %186 = arith.divf %184, %185 : vector<16x1xf32>
    %187 = vector.broadcast %179 : vector<16x1xf32> to vector<16x32xf32>
    %188 = arith.subf %171, %187 : vector<16x32xf32>
    %cst_91 = arith.constant 9.99999974E-6 : f32
    %189 = vector.broadcast %cst_91 : f32 to vector<16x1xf32>
    %190 = arith.addf %186, %189 : vector<16x1xf32>
    %191 = math.rsqrt %190 : vector<16x1xf32>
    %192 = vector.broadcast %191 : vector<16x1xf32> to vector<16x32xf32>
    %193 = arith.mulf %188, %192 : vector<16x32xf32>
    %194 = vector.broadcast %173 : vector<1x32xf32> to vector<16x32xf32>
    %195 = arith.mulf %193, %194 : vector<16x32xf32>
    %196 = vector.broadcast %175 : vector<1x32xf32> to vector<16x32xf32>
    %197 = arith.addf %195, %196 : vector<16x32xf32>
    %c1_92 = arith.constant 1 : index
    %c0_93 = arith.constant 0 : index
    %c0_94 = arith.constant 0 : index
    %198 = vector.load %arg7[%c1_92, %c0_93, %c0_94] : memref<3x32x96xf32, #tpu.memory_space<vmem>>, vector<1x32x96xf32>
    %199 = vector.shape_cast %198 : vector<1x32x96xf32> to vector<32x96xf32>
    %cst_95 = arith.constant dense<0.000000e+00> : vector<16x96xf32>
    %200 = tpu.matmul %197, %199, %cst_95 {dimension_numbers = #tpu.dot_dimension_numbers<[1], [0], [0], [1], [0, 0, 1, 1], [], []>} : vector<16x32xf32>, vector<32x96xf32>, vector<16x96xf32> -> vector<16x96xf32>
    %c1_96 = arith.constant 1 : index
    %c0_97 = arith.constant 0 : index
    %c0_98 = arith.constant 0 : index
    %201 = vector.load %arg8[%c1_96, %c0_97, %c0_98] : memref<3x1x96xf32, #tpu.memory_space<vmem>>, vector<1x1x96xf32>
    %202 = vector.shape_cast %201 : vector<1x1x96xf32> to vector<1x96xf32>
    %203 = vector.broadcast %202 : vector<1x96xf32> to vector<16x96xf32>
    %204 = arith.addf %200, %203 : vector<16x96xf32>
    %205 = vector.extract_strided_slice %204 {offsets = [0, 0], sizes = [16, 16], strides = [1, 1]} : vector<16x96xf32> to vector<16x16xf32>
    %206 = vector.extract_strided_slice %204 {offsets = [0, 32], sizes = [16, 16], strides = [1, 1]} : vector<16x96xf32> to vector<16x16xf32>
    %207 = vector.extract_strided_slice %204 {offsets = [0, 64], sizes = [16, 16], strides = [1, 1]} : vector<16x96xf32> to vector<16x16xf32>
    %cst_99 = arith.constant dense<0.000000e+00> : vector<16x16xf32>
    %208 = tpu.matmul %205, %206, %cst_99 {dimension_numbers = #tpu.dot_dimension_numbers<[1], [1], [0], [0], [0, 0, 1, 0], [], []>} : vector<16x16xf32>, vector<16x16xf32>, vector<16x16xf32> -> vector<16x16xf32>
    %209 = arith.addf %208, %3 : vector<16x16xf32>
    %cst_100 = arith.constant dense<0xFF800000> : vector<16xf32>
    %210 = vector.multi_reduction <maximumf>, %209, %cst_100 [1] : vector<16x16xf32> to vector<16xf32>
    %211 = vector.shape_cast %210 : vector<16xf32> to vector<16x1xf32>
    %212 = vector.broadcast %211 : vector<16x1xf32> to vector<16x16xf32>
    %213 = arith.subf %209, %212 : vector<16x16xf32>
    %214 = math.exp %213 : vector<16x16xf32>
    %cst_101 = arith.constant dense<0.000000e+00> : vector<16xf32>
    %215 = vector.multi_reduction <add>, %214, %cst_101 [1] : vector<16x16xf32> to vector<16xf32>
    %216 = vector.shape_cast %215 : vector<16xf32> to vector<16x1xf32>
    %217 = vector.broadcast %216 : vector<16x1xf32> to vector<16x16xf32>
    %218 = arith.divf %214, %217 : vector<16x16xf32>
    %cst_102 = arith.constant dense<0.000000e+00> : vector<16x16xf32>
    %219 = tpu.matmul %218, %207, %cst_102 {dimension_numbers = #tpu.dot_dimension_numbers<[1], [0], [0], [1], [0, 0, 1, 1], [], []>} : vector<16x16xf32>, vector<16x16xf32>, vector<16x16xf32> -> vector<16x16xf32>
    %220 = vector.extract_strided_slice %204 {offsets = [0, 16], sizes = [16, 16], strides = [1, 1]} : vector<16x96xf32> to vector<16x16xf32>
    %221 = vector.extract_strided_slice %204 {offsets = [0, 48], sizes = [16, 16], strides = [1, 1]} : vector<16x96xf32> to vector<16x16xf32>
    %222 = vector.extract_strided_slice %204 {offsets = [0, 80], sizes = [16, 16], strides = [1, 1]} : vector<16x96xf32> to vector<16x16xf32>
    %cst_103 = arith.constant dense<0.000000e+00> : vector<16x16xf32>
    %223 = tpu.matmul %220, %221, %cst_103 {dimension_numbers = #tpu.dot_dimension_numbers<[1], [1], [0], [0], [0, 0, 1, 0], [], []>} : vector<16x16xf32>, vector<16x16xf32>, vector<16x16xf32> -> vector<16x16xf32>
    %224 = arith.addf %223, %3 : vector<16x16xf32>
    %cst_104 = arith.constant dense<0xFF800000> : vector<16xf32>
    %225 = vector.multi_reduction <maximumf>, %224, %cst_104 [1] : vector<16x16xf32> to vector<16xf32>
    %226 = vector.shape_cast %225 : vector<16xf32> to vector<16x1xf32>
    %227 = vector.broadcast %226 : vector<16x1xf32> to vector<16x16xf32>
    %228 = arith.subf %224, %227 : vector<16x16xf32>
    %229 = math.exp %228 : vector<16x16xf32>
    %cst_105 = arith.constant dense<0.000000e+00> : vector<16xf32>
    %230 = vector.multi_reduction <add>, %229, %cst_105 [1] : vector<16x16xf32> to vector<16xf32>
    %231 = vector.shape_cast %230 : vector<16xf32> to vector<16x1xf32>
    %232 = vector.broadcast %231 : vector<16x1xf32> to vector<16x16xf32>
    %233 = arith.divf %229, %232 : vector<16x16xf32>
    %cst_106 = arith.constant dense<0.000000e+00> : vector<16x16xf32>
    %234 = tpu.matmul %233, %222, %cst_106 {dimension_numbers = #tpu.dot_dimension_numbers<[1], [0], [0], [1], [0, 0, 1, 1], [], []>} : vector<16x16xf32>, vector<16x16xf32>, vector<16x16xf32> -> vector<16x16xf32>
    %235 = tpu.concatenate %219, %234 in 1 : vector<16x16xf32>, vector<16x16xf32> -> vector<16x32xf32>
    %c1_107 = arith.constant 1 : index
    %c0_108 = arith.constant 0 : index
    %c0_109 = arith.constant 0 : index
    %236 = vector.load %arg9[%c1_107, %c0_108, %c0_109] : memref<3x32x32xf32, #tpu.memory_space<vmem>>, vector<1x32x32xf32>
    %237 = vector.shape_cast %236 : vector<1x32x32xf32> to vector<32x32xf32>
    %cst_110 = arith.constant dense<0.000000e+00> : vector<16x32xf32>
    %238 = tpu.matmul %235, %237, %cst_110 {dimension_numbers = #tpu.dot_dimension_numbers<[1], [0], [0], [1], [0, 0, 1, 1], [], []>} : vector<16x32xf32>, vector<32x32xf32>, vector<16x32xf32> -> vector<16x32xf32>
    %239 = arith.addf %171, %238 : vector<16x32xf32>
    %c1_111 = arith.constant 1 : index
    %c0_112 = arith.constant 0 : index
    %c0_113 = arith.constant 0 : index
    %240 = vector.load %arg10[%c1_111, %c0_112, %c0_113] : memref<3x1x32xf32, #tpu.memory_space<vmem>>, vector<1x1x32xf32>
    %241 = vector.shape_cast %240 : vector<1x1x32xf32> to vector<1x32xf32>
    %242 = vector.broadcast %241 : vector<1x32xf32> to vector<16x32xf32>
    %243 = arith.addf %239, %242 : vector<16x32xf32>
    %c1_114 = arith.constant 1 : index
    %c0_115 = arith.constant 0 : index
    %c0_116 = arith.constant 0 : index
    %244 = vector.load %arg11[%c1_114, %c0_115, %c0_116] : memref<3x1x32xf32, #tpu.memory_space<vmem>>, vector<1x1x32xf32>
    %245 = vector.shape_cast %244 : vector<1x1x32xf32> to vector<1x32xf32>
    %c1_117 = arith.constant 1 : index
    %c0_118 = arith.constant 0 : index
    %c0_119 = arith.constant 0 : index
    %246 = vector.load %arg12[%c1_117, %c0_118, %c0_119] : memref<3x1x32xf32, #tpu.memory_space<vmem>>, vector<1x1x32xf32>
    %247 = vector.shape_cast %246 : vector<1x1x32xf32> to vector<1x32xf32>
    %cst_120 = arith.constant dense<0.000000e+00> : vector<16xf32>
    %248 = vector.multi_reduction <add>, %243, %cst_120 [1] : vector<16x32xf32> to vector<16xf32>
    %249 = vector.shape_cast %248 : vector<16xf32> to vector<16x1xf32>
    %cst_121 = arith.constant 3.200000e+01 : f32
    %250 = vector.broadcast %cst_121 : f32 to vector<16x1xf32>
    %251 = arith.divf %249, %250 : vector<16x1xf32>
    %252 = vector.broadcast %251 : vector<16x1xf32> to vector<16x32xf32>
    %253 = arith.subf %243, %252 : vector<16x32xf32>
    %254 = arith.mulf %253, %253 : vector<16x32xf32>
    %cst_122 = arith.constant dense<0.000000e+00> : vector<16xf32>
    %255 = vector.multi_reduction <add>, %254, %cst_122 [1] : vector<16x32xf32> to vector<16xf32>
    %256 = vector.shape_cast %255 : vector<16xf32> to vector<16x1xf32>
    %cst_123 = arith.constant 3.200000e+01 : f32
    %257 = vector.broadcast %cst_123 : f32 to vector<16x1xf32>
    %258 = arith.divf %256, %257 : vector<16x1xf32>
    %259 = vector.broadcast %251 : vector<16x1xf32> to vector<16x32xf32>
    %260 = arith.subf %243, %259 : vector<16x32xf32>
    %cst_124 = arith.constant 9.99999974E-6 : f32
    %261 = vector.broadcast %cst_124 : f32 to vector<16x1xf32>
    %262 = arith.addf %258, %261 : vector<16x1xf32>
    %263 = math.rsqrt %262 : vector<16x1xf32>
    %264 = vector.broadcast %263 : vector<16x1xf32> to vector<16x32xf32>
    %265 = arith.mulf %260, %264 : vector<16x32xf32>
    %266 = vector.broadcast %245 : vector<1x32xf32> to vector<16x32xf32>
    %267 = arith.mulf %265, %266 : vector<16x32xf32>
    %268 = vector.broadcast %247 : vector<1x32xf32> to vector<16x32xf32>
    %269 = arith.addf %267, %268 : vector<16x32xf32>
    %c1_125 = arith.constant 1 : index
    %c0_126 = arith.constant 0 : index
    %c0_127 = arith.constant 0 : index
    %270 = vector.load %arg13[%c1_125, %c0_126, %c0_127] : memref<3x32x128xf32, #tpu.memory_space<vmem>>, vector<1x32x128xf32>
    %271 = vector.shape_cast %270 : vector<1x32x128xf32> to vector<32x128xf32>
    %cst_128 = arith.constant dense<0.000000e+00> : vector<16x128xf32>
    %272 = tpu.matmul %269, %271, %cst_128 {dimension_numbers = #tpu.dot_dimension_numbers<[1], [0], [0], [1], [0, 0, 1, 1], [], []>} : vector<16x32xf32>, vector<32x128xf32>, vector<16x128xf32> -> vector<16x128xf32>
    %c1_129 = arith.constant 1 : index
    %c0_130 = arith.constant 0 : index
    %c0_131 = arith.constant 0 : index
    %273 = vector.load %arg14[%c1_129, %c0_130, %c0_131] : memref<3x1x128xf32, #tpu.memory_space<vmem>>, vector<1x1x128xf32>
    %274 = vector.shape_cast %273 : vector<1x1x128xf32> to vector<1x128xf32>
    %275 = vector.broadcast %274 : vector<1x128xf32> to vector<16x128xf32>
    %276 = arith.addf %272, %275 : vector<16x128xf32>
    %cst_132 = arith.constant 5.000000e-01 : f32
    %277 = vector.broadcast %cst_132 : f32 to vector<16x128xf32>
    %278 = arith.mulf %277, %276 : vector<16x128xf32>
    %cst_133 = arith.constant 0.707106769 : f32
    %279 = vector.broadcast %cst_133 : f32 to vector<16x128xf32>
    %280 = arith.mulf %276, %279 : vector<16x128xf32>
    %281 = math.absf %280 : vector<16x128xf32>
    %cst_134 = arith.constant 5.000000e-01 : f32
    %282 = vector.broadcast %cst_134 : f32 to vector<16x128xf32>
    %283 = arith.mulf %282, %281 : vector<16x128xf32>
    %cst_135 = arith.constant 1.000000e+00 : f32
    %284 = vector.broadcast %cst_135 : f32 to vector<16x128xf32>
    %285 = arith.addf %284, %283 : vector<16x128xf32>
    %cst_136 = arith.constant 1.000000e+00 : f32
    %286 = vector.broadcast %cst_136 : f32 to vector<16x128xf32>
    %287 = arith.divf %286, %285 : vector<16x128xf32>
    %cst_137 = arith.constant 0.170872763 : f32
    %288 = vector.broadcast %cst_137 : f32 to vector<16x128xf32>
    %289 = arith.mulf %287, %288 : vector<16x128xf32>
    %cst_138 = arith.constant -0.822152256 : f32
    %290 = vector.broadcast %cst_138 : f32 to vector<16x128xf32>
    %291 = arith.addf %290, %289 : vector<16x128xf32>
    %292 = arith.mulf %287, %291 : vector<16x128xf32>
    %cst_139 = arith.constant 1.48851585 : f32
    %293 = vector.broadcast %cst_139 : f32 to vector<16x128xf32>
    %294 = arith.addf %293, %292 : vector<16x128xf32>
    %295 = arith.mulf %287, %294 : vector<16x128xf32>
    %cst_140 = arith.constant -1.13520396 : f32
    %296 = vector.broadcast %cst_140 : f32 to vector<16x128xf32>
    %297 = arith.addf %296, %295 : vector<16x128xf32>
    %298 = arith.mulf %287, %297 : vector<16x128xf32>
    %cst_141 = arith.constant 0.278868079 : f32
    %299 = vector.broadcast %cst_141 : f32 to vector<16x128xf32>
    %300 = arith.addf %299, %298 : vector<16x128xf32>
    %301 = arith.mulf %287, %300 : vector<16x128xf32>
    %cst_142 = arith.constant -0.186288059 : f32
    %302 = vector.broadcast %cst_142 : f32 to vector<16x128xf32>
    %303 = arith.addf %302, %301 : vector<16x128xf32>
    %304 = arith.mulf %287, %303 : vector<16x128xf32>
    %cst_143 = arith.constant 0.0967841818 : f32
    %305 = vector.broadcast %cst_143 : f32 to vector<16x128xf32>
    %306 = arith.addf %305, %304 : vector<16x128xf32>
    %307 = arith.mulf %287, %306 : vector<16x128xf32>
    %cst_144 = arith.constant 0.374091953 : f32
    %308 = vector.broadcast %cst_144 : f32 to vector<16x128xf32>
    %309 = arith.addf %308, %307 : vector<16x128xf32>
    %310 = arith.mulf %287, %309 : vector<16x128xf32>
    %cst_145 = arith.constant 1.00002372 : f32
    %311 = vector.broadcast %cst_145 : f32 to vector<16x128xf32>
    %312 = arith.addf %311, %310 : vector<16x128xf32>
    %313 = arith.mulf %287, %312 : vector<16x128xf32>
    %cst_146 = arith.constant -1.26551223 : f32
    %314 = vector.broadcast %cst_146 : f32 to vector<16x128xf32>
    %315 = arith.addf %314, %313 : vector<16x128xf32>
    %cst_147 = arith.constant 0.000000e+00 : f32
    %316 = vector.broadcast %cst_147 : f32 to vector<16x128xf32>
    %317 = arith.subf %316, %281 : vector<16x128xf32>
    %318 = arith.mulf %317, %281 : vector<16x128xf32>
    %319 = arith.addf %318, %315 : vector<16x128xf32>
    %320 = math.exp %319 : vector<16x128xf32>
    %321 = arith.mulf %287, %320 : vector<16x128xf32>
    %cst_148 = arith.constant 1.000000e+00 : f32
    %322 = vector.broadcast %cst_148 : f32 to vector<16x128xf32>
    %323 = arith.subf %322, %321 : vector<16x128xf32>
    %cst_149 = arith.constant 0.000000e+00 : f32
    %324 = vector.broadcast %cst_149 : f32 to vector<16x128xf32>
    %325 = arith.cmpf oge, %280, %324 : vector<16x128xf32>
    %cst_150 = arith.constant 0.000000e+00 : f32
    %326 = vector.broadcast %cst_150 : f32 to vector<16x128xf32>
    %327 = arith.subf %326, %323 : vector<16x128xf32>
    %328 = arith.select %325, %323, %327 : vector<16x128xi1>, vector<16x128xf32>
    %cst_151 = arith.constant 1.000000e+00 : f32
    %329 = vector.broadcast %cst_151 : f32 to vector<16x128xf32>
    %330 = arith.addf %329, %328 : vector<16x128xf32>
    %331 = arith.mulf %278, %330 : vector<16x128xf32>
    %c1_152 = arith.constant 1 : index
    %c0_153 = arith.constant 0 : index
    %c0_154 = arith.constant 0 : index
    %332 = vector.load %arg15[%c1_152, %c0_153, %c0_154] : memref<3x128x32xf32, #tpu.memory_space<vmem>>, vector<1x128x32xf32>
    %333 = vector.shape_cast %332 : vector<1x128x32xf32> to vector<128x32xf32>
    %cst_155 = arith.constant dense<0.000000e+00> : vector<16x32xf32>
    %334 = tpu.matmul %331, %333, %cst_155 {dimension_numbers = #tpu.dot_dimension_numbers<[1], [0], [0], [1], [0, 0, 1, 1], [], []>} : vector<16x128xf32>, vector<128x32xf32>, vector<16x32xf32> -> vector<16x32xf32>
    %335 = arith.addf %243, %334 : vector<16x32xf32>
    %c1_156 = arith.constant 1 : index
    %c0_157 = arith.constant 0 : index
    %c0_158 = arith.constant 0 : index
    %336 = vector.load %arg16[%c1_156, %c0_157, %c0_158] : memref<3x1x32xf32, #tpu.memory_space<vmem>>, vector<1x1x32xf32>
    %337 = vector.shape_cast %336 : vector<1x1x32xf32> to vector<1x32xf32>
    %338 = vector.broadcast %337 : vector<1x32xf32> to vector<16x32xf32>
    %339 = arith.addf %335, %338 : vector<16x32xf32>
    %c2 = arith.constant 2 : index
    %c0_159 = arith.constant 0 : index
    %c0_160 = arith.constant 0 : index
    %340 = vector.load %arg5[%c2, %c0_159, %c0_160] : memref<3x1x32xf32, #tpu.memory_space<vmem>>, vector<1x1x32xf32>
    %341 = vector.shape_cast %340 : vector<1x1x32xf32> to vector<1x32xf32>
    %c2_161 = arith.constant 2 : index
    %c0_162 = arith.constant 0 : index
    %c0_163 = arith.constant 0 : index
    %342 = vector.load %arg6[%c2_161, %c0_162, %c0_163] : memref<3x1x32xf32, #tpu.memory_space<vmem>>, vector<1x1x32xf32>
    %343 = vector.shape_cast %342 : vector<1x1x32xf32> to vector<1x32xf32>
    %cst_164 = arith.constant dense<0.000000e+00> : vector<16xf32>
    %344 = vector.multi_reduction <add>, %339, %cst_164 [1] : vector<16x32xf32> to vector<16xf32>
    %345 = vector.shape_cast %344 : vector<16xf32> to vector<16x1xf32>
    %cst_165 = arith.constant 3.200000e+01 : f32
    %346 = vector.broadcast %cst_165 : f32 to vector<16x1xf32>
    %347 = arith.divf %345, %346 : vector<16x1xf32>
    %348 = vector.broadcast %347 : vector<16x1xf32> to vector<16x32xf32>
    %349 = arith.subf %339, %348 : vector<16x32xf32>
    %350 = arith.mulf %349, %349 : vector<16x32xf32>
    %cst_166 = arith.constant dense<0.000000e+00> : vector<16xf32>
    %351 = vector.multi_reduction <add>, %350, %cst_166 [1] : vector<16x32xf32> to vector<16xf32>
    %352 = vector.shape_cast %351 : vector<16xf32> to vector<16x1xf32>
    %cst_167 = arith.constant 3.200000e+01 : f32
    %353 = vector.broadcast %cst_167 : f32 to vector<16x1xf32>
    %354 = arith.divf %352, %353 : vector<16x1xf32>
    %355 = vector.broadcast %347 : vector<16x1xf32> to vector<16x32xf32>
    %356 = arith.subf %339, %355 : vector<16x32xf32>
    %cst_168 = arith.constant 9.99999974E-6 : f32
    %357 = vector.broadcast %cst_168 : f32 to vector<16x1xf32>
    %358 = arith.addf %354, %357 : vector<16x1xf32>
    %359 = math.rsqrt %358 : vector<16x1xf32>
    %360 = vector.broadcast %359 : vector<16x1xf32> to vector<16x32xf32>
    %361 = arith.mulf %356, %360 : vector<16x32xf32>
    %362 = vector.broadcast %341 : vector<1x32xf32> to vector<16x32xf32>
    %363 = arith.mulf %361, %362 : vector<16x32xf32>
    %364 = vector.broadcast %343 : vector<1x32xf32> to vector<16x32xf32>
    %365 = arith.addf %363, %364 : vector<16x32xf32>
    %c2_169 = arith.constant 2 : index
    %c0_170 = arith.constant 0 : index
    %c0_171 = arith.constant 0 : index
    %366 = vector.load %arg7[%c2_169, %c0_170, %c0_171] : memref<3x32x96xf32, #tpu.memory_space<vmem>>, vector<1x32x96xf32>
    %367 = vector.shape_cast %366 : vector<1x32x96xf32> to vector<32x96xf32>
    %cst_172 = arith.constant dense<0.000000e+00> : vector<16x96xf32>
    %368 = tpu.matmul %365, %367, %cst_172 {dimension_numbers = #tpu.dot_dimension_numbers<[1], [0], [0], [1], [0, 0, 1, 1], [], []>} : vector<16x32xf32>, vector<32x96xf32>, vector<16x96xf32> -> vector<16x96xf32>
    %c2_173 = arith.constant 2 : index
    %c0_174 = arith.constant 0 : index
    %c0_175 = arith.constant 0 : index
    %369 = vector.load %arg8[%c2_173, %c0_174, %c0_175] : memref<3x1x96xf32, #tpu.memory_space<vmem>>, vector<1x1x96xf32>
    %370 = vector.shape_cast %369 : vector<1x1x96xf32> to vector<1x96xf32>
    %371 = vector.broadcast %370 : vector<1x96xf32> to vector<16x96xf32>
    %372 = arith.addf %368, %371 : vector<16x96xf32>
    %373 = vector.extract_strided_slice %372 {offsets = [0, 0], sizes = [16, 16], strides = [1, 1]} : vector<16x96xf32> to vector<16x16xf32>
    %374 = vector.extract_strided_slice %372 {offsets = [0, 32], sizes = [16, 16], strides = [1, 1]} : vector<16x96xf32> to vector<16x16xf32>
    %375 = vector.extract_strided_slice %372 {offsets = [0, 64], sizes = [16, 16], strides = [1, 1]} : vector<16x96xf32> to vector<16x16xf32>
    %cst_176 = arith.constant dense<0.000000e+00> : vector<16x16xf32>
    %376 = tpu.matmul %373, %374, %cst_176 {dimension_numbers = #tpu.dot_dimension_numbers<[1], [1], [0], [0], [0, 0, 1, 0], [], []>} : vector<16x16xf32>, vector<16x16xf32>, vector<16x16xf32> -> vector<16x16xf32>
    %377 = arith.addf %376, %3 : vector<16x16xf32>
    %cst_177 = arith.constant dense<0xFF800000> : vector<16xf32>
    %378 = vector.multi_reduction <maximumf>, %377, %cst_177 [1] : vector<16x16xf32> to vector<16xf32>
    %379 = vector.shape_cast %378 : vector<16xf32> to vector<16x1xf32>
    %380 = vector.broadcast %379 : vector<16x1xf32> to vector<16x16xf32>
    %381 = arith.subf %377, %380 : vector<16x16xf32>
    %382 = math.exp %381 : vector<16x16xf32>
    %cst_178 = arith.constant dense<0.000000e+00> : vector<16xf32>
    %383 = vector.multi_reduction <add>, %382, %cst_178 [1] : vector<16x16xf32> to vector<16xf32>
    %384 = vector.shape_cast %383 : vector<16xf32> to vector<16x1xf32>
    %385 = vector.broadcast %384 : vector<16x1xf32> to vector<16x16xf32>
    %386 = arith.divf %382, %385 : vector<16x16xf32>
    %cst_179 = arith.constant dense<0.000000e+00> : vector<16x16xf32>
    %387 = tpu.matmul %386, %375, %cst_179 {dimension_numbers = #tpu.dot_dimension_numbers<[1], [0], [0], [1], [0, 0, 1, 1], [], []>} : vector<16x16xf32>, vector<16x16xf32>, vector<16x16xf32> -> vector<16x16xf32>
    %388 = vector.extract_strided_slice %372 {offsets = [0, 16], sizes = [16, 16], strides = [1, 1]} : vector<16x96xf32> to vector<16x16xf32>
    %389 = vector.extract_strided_slice %372 {offsets = [0, 48], sizes = [16, 16], strides = [1, 1]} : vector<16x96xf32> to vector<16x16xf32>
    %390 = vector.extract_strided_slice %372 {offsets = [0, 80], sizes = [16, 16], strides = [1, 1]} : vector<16x96xf32> to vector<16x16xf32>
    %cst_180 = arith.constant dense<0.000000e+00> : vector<16x16xf32>
    %391 = tpu.matmul %388, %389, %cst_180 {dimension_numbers = #tpu.dot_dimension_numbers<[1], [1], [0], [0], [0, 0, 1, 0], [], []>} : vector<16x16xf32>, vector<16x16xf32>, vector<16x16xf32> -> vector<16x16xf32>
    %392 = arith.addf %391, %3 : vector<16x16xf32>
    %cst_181 = arith.constant dense<0xFF800000> : vector<16xf32>
    %393 = vector.multi_reduction <maximumf>, %392, %cst_181 [1] : vector<16x16xf32> to vector<16xf32>
    %394 = vector.shape_cast %393 : vector<16xf32> to vector<16x1xf32>
    %395 = vector.broadcast %394 : vector<16x1xf32> to vector<16x16xf32>
    %396 = arith.subf %392, %395 : vector<16x16xf32>
    %397 = math.exp %396 : vector<16x16xf32>
    %cst_182 = arith.constant dense<0.000000e+00> : vector<16xf32>
    %398 = vector.multi_reduction <add>, %397, %cst_182 [1] : vector<16x16xf32> to vector<16xf32>
    %399 = vector.shape_cast %398 : vector<16xf32> to vector<16x1xf32>
    %400 = vector.broadcast %399 : vector<16x1xf32> to vector<16x16xf32>
    %401 = arith.divf %397, %400 : vector<16x16xf32>
    %cst_183 = arith.constant dense<0.000000e+00> : vector<16x16xf32>
    %402 = tpu.matmul %401, %390, %cst_183 {dimension_numbers = #tpu.dot_dimension_numbers<[1], [0], [0], [1], [0, 0, 1, 1], [], []>} : vector<16x16xf32>, vector<16x16xf32>, vector<16x16xf32> -> vector<16x16xf32>
    %403 = tpu.concatenate %387, %402 in 1 : vector<16x16xf32>, vector<16x16xf32> -> vector<16x32xf32>
    %c2_184 = arith.constant 2 : index
    %c0_185 = arith.constant 0 : index
    %c0_186 = arith.constant 0 : index
    %404 = vector.load %arg9[%c2_184, %c0_185, %c0_186] : memref<3x32x32xf32, #tpu.memory_space<vmem>>, vector<1x32x32xf32>
    %405 = vector.shape_cast %404 : vector<1x32x32xf32> to vector<32x32xf32>
    %cst_187 = arith.constant dense<0.000000e+00> : vector<16x32xf32>
    %406 = tpu.matmul %403, %405, %cst_187 {dimension_numbers = #tpu.dot_dimension_numbers<[1], [0], [0], [1], [0, 0, 1, 1], [], []>} : vector<16x32xf32>, vector<32x32xf32>, vector<16x32xf32> -> vector<16x32xf32>
    %407 = arith.addf %339, %406 : vector<16x32xf32>
    %c2_188 = arith.constant 2 : index
    %c0_189 = arith.constant 0 : index
    %c0_190 = arith.constant 0 : index
    %408 = vector.load %arg10[%c2_188, %c0_189, %c0_190] : memref<3x1x32xf32, #tpu.memory_space<vmem>>, vector<1x1x32xf32>
    %409 = vector.shape_cast %408 : vector<1x1x32xf32> to vector<1x32xf32>
    %410 = vector.broadcast %409 : vector<1x32xf32> to vector<16x32xf32>
    %411 = arith.addf %407, %410 : vector<16x32xf32>
    %c2_191 = arith.constant 2 : index
    %c0_192 = arith.constant 0 : index
    %c0_193 = arith.constant 0 : index
    %412 = vector.load %arg11[%c2_191, %c0_192, %c0_193] : memref<3x1x32xf32, #tpu.memory_space<vmem>>, vector<1x1x32xf32>
    %413 = vector.shape_cast %412 : vector<1x1x32xf32> to vector<1x32xf32>
    %c2_194 = arith.constant 2 : index
    %c0_195 = arith.constant 0 : index
    %c0_196 = arith.constant 0 : index
    %414 = vector.load %arg12[%c2_194, %c0_195, %c0_196] : memref<3x1x32xf32, #tpu.memory_space<vmem>>, vector<1x1x32xf32>
    %415 = vector.shape_cast %414 : vector<1x1x32xf32> to vector<1x32xf32>
    %cst_197 = arith.constant dense<0.000000e+00> : vector<16xf32>
    %416 = vector.multi_reduction <add>, %411, %cst_197 [1] : vector<16x32xf32> to vector<16xf32>
    %417 = vector.shape_cast %416 : vector<16xf32> to vector<16x1xf32>
    %cst_198 = arith.constant 3.200000e+01 : f32
    %418 = vector.broadcast %cst_198 : f32 to vector<16x1xf32>
    %419 = arith.divf %417, %418 : vector<16x1xf32>
    %420 = vector.broadcast %419 : vector<16x1xf32> to vector<16x32xf32>
    %421 = arith.subf %411, %420 : vector<16x32xf32>
    %422 = arith.mulf %421, %421 : vector<16x32xf32>
    %cst_199 = arith.constant dense<0.000000e+00> : vector<16xf32>
    %423 = vector.multi_reduction <add>, %422, %cst_199 [1] : vector<16x32xf32> to vector<16xf32>
    %424 = vector.shape_cast %423 : vector<16xf32> to vector<16x1xf32>
    %cst_200 = arith.constant 3.200000e+01 : f32
    %425 = vector.broadcast %cst_200 : f32 to vector<16x1xf32>
    %426 = arith.divf %424, %425 : vector<16x1xf32>
    %427 = vector.broadcast %419 : vector<16x1xf32> to vector<16x32xf32>
    %428 = arith.subf %411, %427 : vector<16x32xf32>
    %cst_201 = arith.constant 9.99999974E-6 : f32
    %429 = vector.broadcast %cst_201 : f32 to vector<16x1xf32>
    %430 = arith.addf %426, %429 : vector<16x1xf32>
    %431 = math.rsqrt %430 : vector<16x1xf32>
    %432 = vector.broadcast %431 : vector<16x1xf32> to vector<16x32xf32>
    %433 = arith.mulf %428, %432 : vector<16x32xf32>
    %434 = vector.broadcast %413 : vector<1x32xf32> to vector<16x32xf32>
    %435 = arith.mulf %433, %434 : vector<16x32xf32>
    %436 = vector.broadcast %415 : vector<1x32xf32> to vector<16x32xf32>
    %437 = arith.addf %435, %436 : vector<16x32xf32>
    %c2_202 = arith.constant 2 : index
    %c0_203 = arith.constant 0 : index
    %c0_204 = arith.constant 0 : index
    %438 = vector.load %arg13[%c2_202, %c0_203, %c0_204] : memref<3x32x128xf32, #tpu.memory_space<vmem>>, vector<1x32x128xf32>
    %439 = vector.shape_cast %438 : vector<1x32x128xf32> to vector<32x128xf32>
    %cst_205 = arith.constant dense<0.000000e+00> : vector<16x128xf32>
    %440 = tpu.matmul %437, %439, %cst_205 {dimension_numbers = #tpu.dot_dimension_numbers<[1], [0], [0], [1], [0, 0, 1, 1], [], []>} : vector<16x32xf32>, vector<32x128xf32>, vector<16x128xf32> -> vector<16x128xf32>
    %c2_206 = arith.constant 2 : index
    %c0_207 = arith.constant 0 : index
    %c0_208 = arith.constant 0 : index
    %441 = vector.load %arg14[%c2_206, %c0_207, %c0_208] : memref<3x1x128xf32, #tpu.memory_space<vmem>>, vector<1x1x128xf32>
    %442 = vector.shape_cast %441 : vector<1x1x128xf32> to vector<1x128xf32>
    %443 = vector.broadcast %442 : vector<1x128xf32> to vector<16x128xf32>
    %444 = arith.addf %440, %443 : vector<16x128xf32>
    %cst_209 = arith.constant 5.000000e-01 : f32
    %445 = vector.broadcast %cst_209 : f32 to vector<16x128xf32>
    %446 = arith.mulf %445, %444 : vector<16x128xf32>
    %cst_210 = arith.constant 0.707106769 : f32
    %447 = vector.broadcast %cst_210 : f32 to vector<16x128xf32>
    %448 = arith.mulf %444, %447 : vector<16x128xf32>
    %449 = math.absf %448 : vector<16x128xf32>
    %cst_211 = arith.constant 5.000000e-01 : f32
    %450 = vector.broadcast %cst_211 : f32 to vector<16x128xf32>
    %451 = arith.mulf %450, %449 : vector<16x128xf32>
    %cst_212 = arith.constant 1.000000e+00 : f32
    %452 = vector.broadcast %cst_212 : f32 to vector<16x128xf32>
    %453 = arith.addf %452, %451 : vector<16x128xf32>
    %cst_213 = arith.constant 1.000000e+00 : f32
    %454 = vector.broadcast %cst_213 : f32 to vector<16x128xf32>
    %455 = arith.divf %454, %453 : vector<16x128xf32>
    %cst_214 = arith.constant 0.170872763 : f32
    %456 = vector.broadcast %cst_214 : f32 to vector<16x128xf32>
    %457 = arith.mulf %455, %456 : vector<16x128xf32>
    %cst_215 = arith.constant -0.822152256 : f32
    %458 = vector.broadcast %cst_215 : f32 to vector<16x128xf32>
    %459 = arith.addf %458, %457 : vector<16x128xf32>
    %460 = arith.mulf %455, %459 : vector<16x128xf32>
    %cst_216 = arith.constant 1.48851585 : f32
    %461 = vector.broadcast %cst_216 : f32 to vector<16x128xf32>
    %462 = arith.addf %461, %460 : vector<16x128xf32>
    %463 = arith.mulf %455, %462 : vector<16x128xf32>
    %cst_217 = arith.constant -1.13520396 : f32
    %464 = vector.broadcast %cst_217 : f32 to vector<16x128xf32>
    %465 = arith.addf %464, %463 : vector<16x128xf32>
    %466 = arith.mulf %455, %465 : vector<16x128xf32>
    %cst_218 = arith.constant 0.278868079 : f32
    %467 = vector.broadcast %cst_218 : f32 to vector<16x128xf32>
    %468 = arith.addf %467, %466 : vector<16x128xf32>
    %469 = arith.mulf %455, %468 : vector<16x128xf32>
    %cst_219 = arith.constant -0.186288059 : f32
    %470 = vector.broadcast %cst_219 : f32 to vector<16x128xf32>
    %471 = arith.addf %470, %469 : vector<16x128xf32>
    %472 = arith.mulf %455, %471 : vector<16x128xf32>
    %cst_220 = arith.constant 0.0967841818 : f32
    %473 = vector.broadcast %cst_220 : f32 to vector<16x128xf32>
    %474 = arith.addf %473, %472 : vector<16x128xf32>
    %475 = arith.mulf %455, %474 : vector<16x128xf32>
    %cst_221 = arith.constant 0.374091953 : f32
    %476 = vector.broadcast %cst_221 : f32 to vector<16x128xf32>
    %477 = arith.addf %476, %475 : vector<16x128xf32>
    %478 = arith.mulf %455, %477 : vector<16x128xf32>
    %cst_222 = arith.constant 1.00002372 : f32
    %479 = vector.broadcast %cst_222 : f32 to vector<16x128xf32>
    %480 = arith.addf %479, %478 : vector<16x128xf32>
    %481 = arith.mulf %455, %480 : vector<16x128xf32>
    %cst_223 = arith.constant -1.26551223 : f32
    %482 = vector.broadcast %cst_223 : f32 to vector<16x128xf32>
    %483 = arith.addf %482, %481 : vector<16x128xf32>
    %cst_224 = arith.constant 0.000000e+00 : f32
    %484 = vector.broadcast %cst_224 : f32 to vector<16x128xf32>
    %485 = arith.subf %484, %449 : vector<16x128xf32>
    %486 = arith.mulf %485, %449 : vector<16x128xf32>
    %487 = arith.addf %486, %483 : vector<16x128xf32>
    %488 = math.exp %487 : vector<16x128xf32>
    %489 = arith.mulf %455, %488 : vector<16x128xf32>
    %cst_225 = arith.constant 1.000000e+00 : f32
    %490 = vector.broadcast %cst_225 : f32 to vector<16x128xf32>
    %491 = arith.subf %490, %489 : vector<16x128xf32>
    %cst_226 = arith.constant 0.000000e+00 : f32
    %492 = vector.broadcast %cst_226 : f32 to vector<16x128xf32>
    %493 = arith.cmpf oge, %448, %492 : vector<16x128xf32>
    %cst_227 = arith.constant 0.000000e+00 : f32
    %494 = vector.broadcast %cst_227 : f32 to vector<16x128xf32>
    %495 = arith.subf %494, %491 : vector<16x128xf32>
    %496 = arith.select %493, %491, %495 : vector<16x128xi1>, vector<16x128xf32>
    %cst_228 = arith.constant 1.000000e+00 : f32
    %497 = vector.broadcast %cst_228 : f32 to vector<16x128xf32>
    %498 = arith.addf %497, %496 : vector<16x128xf32>
    %499 = arith.mulf %446, %498 : vector<16x128xf32>
    %c2_229 = arith.constant 2 : index
    %c0_230 = arith.constant 0 : index
    %c0_231 = arith.constant 0 : index
    %500 = vector.load %arg15[%c2_229, %c0_230, %c0_231] : memref<3x128x32xf32, #tpu.memory_space<vmem>>, vector<1x128x32xf32>
    %501 = vector.shape_cast %500 : vector<1x128x32xf32> to vector<128x32xf32>
    %cst_232 = arith.constant dense<0.000000e+00> : vector<16x32xf32>
    %502 = tpu.matmul %499, %501, %cst_232 {dimension_numbers = #tpu.dot_dimension_numbers<[1], [0], [0], [1], [0, 0, 1, 1], [], []>} : vector<16x128xf32>, vector<128x32xf32>, vector<16x32xf32> -> vector<16x32xf32>
    %503 = arith.addf %411, %502 : vector<16x32xf32>
    %c2_233 = arith.constant 2 : index
    %c0_234 = arith.constant 0 : index
    %c0_235 = arith.constant 0 : index
    %504 = vector.load %arg16[%c2_233, %c0_234, %c0_235] : memref<3x1x32xf32, #tpu.memory_space<vmem>>, vector<1x1x32xf32>
    %505 = vector.shape_cast %504 : vector<1x1x32xf32> to vector<1x32xf32>
    %506 = vector.broadcast %505 : vector<1x32xf32> to vector<16x32xf32>
    %507 = arith.addf %503, %506 : vector<16x32xf32>
    %c0_236 = arith.constant 0 : index
    %c0_237 = arith.constant 0 : index
    %508 = vector.load %arg17[%c0_236, %c0_237] : memref<32x128xf32, #tpu.memory_space<vmem>>, vector<32x128xf32>
    %cst_238 = arith.constant dense<0.000000e+00> : vector<16x128xf32>
    %509 = tpu.matmul %507, %508, %cst_238 {dimension_numbers = #tpu.dot_dimension_numbers<[1], [0], [0], [1], [0, 0, 1, 1], [], []>} : vector<16x32xf32>, vector<32x128xf32>, vector<16x128xf32> -> vector<16x128xf32>
    %c0_239 = arith.constant 0 : index
    %c0_240 = arith.constant 0 : index
    %510 = vector.load %arg18[%c0_239, %c0_240] : memref<1x128xf32, #tpu.memory_space<vmem>>, vector<1x128xf32>
    %511 = vector.broadcast %510 : vector<1x128xf32> to vector<16x128xf32>
    %512 = arith.addf %509, %511 : vector<16x128xf32>
    %c0_241 = arith.constant 0 : index
    %c0_242 = arith.constant 0 : index
    %513 = vector.load %arg21[%c0_241, %c0_242] : memref<16x128xf32, #tpu.memory_space<vmem>>, vector<16x128xf32>
    tpu.vector_store %arg21[%c0_241, %c0_242], %512 {strides = array<i32>} : memref<16x128xf32, #tpu.memory_space<vmem>>, vector<16x128xf32>,
    %c0_243 = arith.constant 0 : index
    %c0_244 = arith.constant 0 : index
    %514 = vector.load %arg4[%c0_243, %c0_244] : memref<2x16xf32, #tpu.memory_space<vmem>>, vector<2x16xf32>
    %cst_245 = arith.constant dense<0.000000e+00> : vector<2x128xf32>
    %515 = tpu.matmul %514, %512, %cst_245 {dimension_numbers = #tpu.dot_dimension_numbers<[1], [0], [0], [1], [0, 0, 1, 1], [], []>} : vector<2x16xf32>, vector<16x128xf32>, vector<2x128xf32> -> vector<2x128xf32>
    %c0_246 = arith.constant 0 : index
    %c0_247 = arith.constant 0 : index
    %516 = vector.load %arg19[%c0_246, %c0_247] : memref<128x128xf32, #tpu.memory_space<vmem>>, vector<128x128xf32>
    %cst_248 = arith.constant dense<0.000000e+00> : vector<2x128xf32>
    %517 = tpu.matmul %515, %516, %cst_248 {dimension_numbers = #tpu.dot_dimension_numbers<[1], [0], [0], [1], [0, 0, 1, 1], [], []>} : vector<2x128xf32>, vector<128x128xf32>, vector<2x128xf32> -> vector<2x128xf32>
    %c0_249 = arith.constant 0 : index
    %c0_250 = arith.constant 0 : index
    %518 = vector.load %arg20[%c0_249, %c0_250] : memref<1x128xf32, #tpu.memory_space<vmem>>, vector<1x128xf32>
    %519 = vector.broadcast %518 : vector<1x128xf32> to vector<2x128xf32>
    %520 = arith.addf %517, %519 : vector<2x128xf32>
    %c0_251 = arith.constant 0 : index
    %c0_252 = arith.constant 0 : index
    %521 = vector.load %arg22[%c0_251, %c0_252] : memref<2x128xf32, #tpu.memory_space<vmem>>, vector<2x128xf32>
    tpu.vector_store %arg22[%c0_251, %c0_252], %520 {strides = array<i32>} : memref<2x128xf32, #tpu.memory_space<vmem>>, vector<2x128xf32>,
    return
  }
  func.func @transform_0(%arg0: i32) -> (i32, i32) {
    %c0_i32 = arith.constant 0 : i32
    %c0_i32_0 = arith.constant 0 : i32
    %c0_i32_1 = arith.constant 0 : i32
    return %c0_i32, %c0_i32_0 : i32, i32
  }
  func.func @transform_1(%arg0: i32) -> (i32, i32) {
    %c0_i32 = arith.constant 0 : i32
    %c0_i32_0 = arith.constant 0 : i32
    %c0_i32_1 = arith.constant 0 : i32
    return %c0_i32, %c0_i32_0 : i32, i32
  }
  func.func @transform_2(%arg0: i32) -> (i32, i32) {
    %c0_i32 = arith.constant 0 : i32
    %c0_i32_0 = arith.constant 0 : i32
    %c0_i32_1 = arith.constant 0 : i32
    return %c0_i32, %c0_i32_0 : i32, i32
  }
  func.func @transform_3(%arg0: i32) -> (i32, i32) {
    %c0_i32 = arith.constant 0 : i32
    %c0_i32_0 = arith.constant 0 : i32
    %c0_i32_1 = arith.constant 0 : i32
    return %c0_i32, %c0_i32_0 : i32, i32
  }
  func.func @transform_4(%arg0: i32) -> (i32, i32, i32) {
    %c0_i32 = arith.constant 0 : i32
    %c0_i32_0 = arith.constant 0 : i32
    %c0_i32_1 = arith.constant 0 : i32
    %c0_i32_2 = arith.constant 0 : i32
    return %c0_i32, %c0_i32_0, %c0_i32_1 : i32, i32, i32
  }
  func.func @transform_5(%arg0: i32) -> (i32, i32, i32) {
    %c0_i32 = arith.constant 0 : i32
    %c0_i32_0 = arith.constant 0 : i32
    %c0_i32_1 = arith.constant 0 : i32
    %c0_i32_2 = arith.constant 0 : i32
    return %c0_i32, %c0_i32_0, %c0_i32_1 : i32, i32, i32
  }
  func.func @transform_6(%arg0: i32) -> (i32, i32, i32) {
    %c0_i32 = arith.constant 0 : i32
    %c0_i32_0 = arith.constant 0 : i32
    %c0_i32_1 = arith.constant 0 : i32
    %c0_i32_2 = arith.constant 0 : i32
    return %c0_i32, %c0_i32_0, %c0_i32_1 : i32, i32, i32
  }
  func.func @transform_7(%arg0: i32) -> (i32, i32, i32) {
    %c0_i32 = arith.constant 0 : i32
    %c0_i32_0 = arith.constant 0 : i32
    %c0_i32_1 = arith.constant 0 : i32
    %c0_i32_2 = arith.constant 0 : i32
    return %c0_i32, %c0_i32_0, %c0_i32_1 : i32, i32, i32
  }
  func.func @transform_8(%arg0: i32) -> (i32, i32, i32) {
    %c0_i32 = arith.constant 0 : i32
    %c0_i32_0 = arith.constant 0 : i32
    %c0_i32_1 = arith.constant 0 : i32
    %c0_i32_2 = arith.constant 0 : i32
    return %c0_i32, %c0_i32_0, %c0_i32_1 : i32, i32, i32
  }
  func.func @transform_9(%arg0: i32) -> (i32, i32, i32) {
    %c0_i32 = arith.constant 0 : i32
    %c0_i32_0 = arith.constant 0 : i32
    %c0_i32_1 = arith.constant 0 : i32
    %c0_i32_2 = arith.constant 0 : i32
    return %c0_i32, %c0_i32_0, %c0_i32_1 : i32, i32, i32
  }
  func.func @transform_10(%arg0: i32) -> (i32, i32, i32) {
    %c0_i32 = arith.constant 0 : i32
    %c0_i32_0 = arith.constant 0 : i32
    %c0_i32_1 = arith.constant 0 : i32
    %c0_i32_2 = arith.constant 0 : i32
    return %c0_i32, %c0_i32_0, %c0_i32_1 : i32, i32, i32
  }
  func.func @transform_11(%arg0: i32) -> (i32, i32, i32) {
    %c0_i32 = arith.constant 0 : i32
    %c0_i32_0 = arith.constant 0 : i32
    %c0_i32_1 = arith.constant 0 : i32
    %c0_i32_2 = arith.constant 0 : i32
    return %c0_i32, %c0_i32_0, %c0_i32_1 : i32, i32, i32
  }
  func.func @transform_12(%arg0: i32) -> (i32, i32, i32) {
    %c0_i32 = arith.constant 0 : i32
    %c0_i32_0 = arith.constant 0 : i32
    %c0_i32_1 = arith.constant 0 : i32
    %c0_i32_2 = arith.constant 0 : i32
    return %c0_i32, %c0_i32_0, %c0_i32_1 : i32, i32, i32
  }
  func.func @transform_13(%arg0: i32) -> (i32, i32, i32) {
    %c0_i32 = arith.constant 0 : i32
    %c0_i32_0 = arith.constant 0 : i32
    %c0_i32_1 = arith.constant 0 : i32
    %c0_i32_2 = arith.constant 0 : i32
    return %c0_i32, %c0_i32_0, %c0_i32_1 : i32, i32, i32
  }
  func.func @transform_14(%arg0: i32) -> (i32, i32, i32) {
    %c0_i32 = arith.constant 0 : i32
    %c0_i32_0 = arith.constant 0 : i32
    %c0_i32_1 = arith.constant 0 : i32
    %c0_i32_2 = arith.constant 0 : i32
    return %c0_i32, %c0_i32_0, %c0_i32_1 : i32, i32, i32
  }
  func.func @transform_15(%arg0: i32) -> (i32, i32, i32) {
    %c0_i32 = arith.constant 0 : i32
    %c0_i32_0 = arith.constant 0 : i32
    %c0_i32_1 = arith.constant 0 : i32
    %c0_i32_2 = arith.constant 0 : i32
    return %c0_i32, %c0_i32_0, %c0_i32_1 : i32, i32, i32
  }
  func.func @transform_16(%arg0: i32) -> (i32, i32) {
    %c0_i32 = arith.constant 0 : i32
    %c0_i32_0 = arith.constant 0 : i32
    %c0_i32_1 = arith.constant 0 : i32
    return %c0_i32, %c0_i32_0 : i32, i32
  }
  func.func @transform_17(%arg0: i32) -> (i32, i32) {
    %c0_i32 = arith.constant 0 : i32
    %c0_i32_0 = arith.constant 0 : i32
    %c0_i32_1 = arith.constant 0 : i32
    return %c0_i32, %c0_i32_0 : i32, i32
  }
  func.func @transform_18(%arg0: i32) -> (i32, i32) {
    %c0_i32 = arith.constant 0 : i32
    %c0_i32_0 = arith.constant 0 : i32
    %c0_i32_1 = arith.constant 0 : i32
    return %c0_i32, %c0_i32_0 : i32, i32
  }
  func.func @transform_19(%arg0: i32) -> (i32, i32) {
    %c0_i32 = arith.constant 0 : i32
    %c0_i32_0 = arith.constant 0 : i32
    %c0_i32_1 = arith.constant 0 : i32
    return %c0_i32, %c0_i32_0 : i32, i32
  }
  func.func @transform_20(%arg0: i32) -> (i32, i32) {
    %c0_i32 = arith.constant 0 : i32
    %c0_i32_0 = arith.constant 0 : i32
    %c0_i32_1 = arith.constant 0 : i32
    return %c0_i32, %c0_i32_0 : i32, i32
  }
  func.func @transform_21(%arg0: i32) -> (i32, i32) {
    %c0_i32 = arith.constant 0 : i32
    %c0_i32_0 = arith.constant 0 : i32
    %c0_i32_1 = arith.constant 0 : i32
    return %c0_i32, %c0_i32_0 : i32, i32
  }
}

</mosaic_0001>

<bundles_post_ra>
// kernel: tpu_custom_call.1
= control target key start
LH: loop header
LB: loop body
LE: loop exit
PB: predicated region body
PF: predicated region fallthrough
CT: control target
= control target key end

     0   :  { %s5364_s0 = inlined_call_operand.vmem [shape: f32[16,32], index: 0, kind: input, shape index: {}]   ;;  %s5365_s1 = inlined_call_operand.vmem [shape: f32[16,32], index: 1, kind: input, shape index: {}]   ;;  %s5366_s2 = inlined_call_operand.hbm [shape: f32[16,16], index: 2, kind: input, shape index: {}]   ;;  %s5367_s3 = inlined_call_operand.hbm [shape: f32[2,16], index: 3, kind: input, shape index: {}]   ;;  %s5368_s4 = inlined_call_operand.vmem [shape: f32[3,1,32], index: 4, kind: input, shape index: {}]   ;;  %s5369_s5 = inlined_call_operand.vmem [shape: f32[3,1,32], index: 5, kind: input, shape index: {}]   ;;  %s5370_s6 = inlined_call_operand.vmem [shape: f32[3,32,96], index: 6, kind: input, shape index: {}]   ;;  %s5371_s7 = inlined_call_operand.vmem [shape: f32[3,1,96], index: 7, kind: input, shape index: {}]   ;;  %s5372_s8 = inlined_call_operand.vmem [shape: f32[3,32,32], index: 8, kind: input, shape index: {}]   ;;  %s5373_s9 = inlined_call_operand.vmem [shape: f32[3,1,32], index: 9, kind: input, shape index: {}]   ;;  %s5374_s10 = inlined_call_operand.vmem [shape: f32[3,1,32], index: 10, kind: input, shape index: {}]   ;;  %s5375_s11 = inlined_call_operand.vmem [shape: f32[3,1,32], index: 11, kind: input, shape index: {}]   ;;  %s5376_s12 = inlined_call_operand.vmem [shape: f32[3,32,128], index: 12, kind: input, shape index: {}]   ;;  %s5377_s13 = inlined_call_operand.vmem [shape: f32[3,1,128], index: 13, kind: input, shape index: {}]   ;;  %s5378_s14 = inlined_call_operand.vmem [shape: f32[3,128,32], index: 14, kind: input, shape index: {}]   ;;  %s5379_s15 = inlined_call_operand.vmem [shape: f32[3,1,32], index: 15, kind: input, shape index: {}]   ;;  %s5380_s16 = inlined_call_operand.vmem [shape: f32[32,128], index: 16, kind: input, shape index: {}]   ;;  %s5381_s17 = inlined_call_operand.vmem [shape: f32[1,128], index: 17, kind: input, shape index: {}]   ;;  %s5382_s18 = inlined_call_operand.vmem [shape: f32[128,128], index: 18, kind: input, shape index: {}]   ;;  %s5383_s19 = inlined_call_operand.vmem [shape: f32[1,128], index: 19, kind: input, shape index: {}]   ;;  %s5384_s20 = inlined_call_operand.hbm [shape: f32[16,128], index: 20, kind: output, shape index: {0}]   ;;  %s5385_s21 = inlined_call_operand.hbm [shape: f32[2,128], index: 21, kind: output, shape index: {1}]  }
   0x1   :  { %5394 = sst [smem:[#allocation14_spill]] %s5364_s0 }
   0x2   :  { %5395 = sst [smem:[#allocation15_spill]] %s5365_s1 }
   0x3   :  { %5396 = sst [smem:[#allocation16_spill]] %s5366_s2 }
   0x4   :  { %5397 = sst [smem:[#allocation17_spill]] %s5367_s3 }
   0x5   :  { %5398 = sst [smem:[#allocation18_spill]] %s5368_s4 }
   0x6   :  { %5399 = sst [smem:[#allocation19_spill]] %s5369_s5 }
   0x7   :  { %5400 = sst [smem:[#allocation20_spill]] %s5383_s19 }
   0x8   :  { %5401 = sst [smem:[#allocation21_spill]] %s5385_s21 }
   0x9   :  { %27 = vsyncpa [#allocation3], 0 }
   0xa   :  { %28 = vsyncpa [#allocation6], 0 }
   0xb   :  { %29 = vsyncpa [#allocation4], 0 }
   0xc   :  { %30 = vsyncpa [#allocation9], 0  ;;  %s4490_s2 = smov [#allocation2]   ;;  %s5402_s3 = sld [smem:[#allocation16_spill]] }
   0xd   :  { %s40_s25 = sshll.u32 %s4490_s2, 4  ;;  %s41_s25 = int_to_ptr.vmem [resolvable:$true] %s40_s25 }
  0x12   :  { %s4394_s28 = scalar_lea.hbm %s5402_s3, 256 }
  0x13   :  { %p4395_p0 = scmp.ne.s32.totalorder %s5402_s3, %s4394_s28  ;;  %p4398_p1 = scmp.lt.u32.totalorder %s4394_s28, %s5402_s3 }
  0x15   :  { %p4400_p2 = pnand %p4398_p1, %p4395_p0 }
  0x17   :  { %4403 = shalt.err (!%p4400_p2)
}
  0x18   :  { %s4404_s5 = scalar_lea.vmem %s41_s25, 256  ;;  %p4409_p4 = scmp.lt.s32.totalorder %s41_s25, %s41_s25 }
  0x19   :  { %p4405_p3 = scmp.ne.s32.totalorder %s41_s25, %s4404_s5  ;;  %p4410_p5 = scmp.lt.s32.totalorder %s4404_s5, %s4404_s5 }
  0x1b   :  { %p4411_p6 = por %p4410_p5, %p4409_p4 }
  0x1d   :  { %p4412_p7 = pnand %p4411_p6, %p4405_p3 }
  0x1f   :  { %4415 = shalt.err (!%p4412_p7)
}
  0x20   :  { %s5393_s22 = smov 128   ;;  %s4492_s23 = smov 8  }
  0x21   :  { %46 = dma.hbm_to_vmem [thread:$0]  %s5402_s3, 256, %s41_s25, [#allocation3], %s5393_s22, %s5393_s22, %s4492_s23  }
  0x22   :  { %s4493_s2 = smov [#allocation5]   ;;  %s5403_s29 = sld [smem:[#allocation17_spill]] }
  0x23   :  { %s53_s26 = sshll.u32 %s4493_s2, 4  ;;  %s54_s26 = int_to_ptr.vmem [resolvable:$true] %s53_s26 }
  0x28   :  { %s4416_s0 = scalar_lea.hbm %s5403_s29, 32 }
  0x29   :  { %p4417_p8 = scmp.ne.s32.totalorder %s5403_s29, %s4416_s0  ;;  %p4420_p9 = scmp.lt.u32.totalorder %s4416_s0, %s5403_s29 }
  0x2b   :  { %p4422_p10 = pnand %p4420_p9, %p4417_p8 }
  0x2d   :  { %4425 = shalt.err (!%p4422_p10)
}
  0x2e   :  { %s4426_s19 = scalar_lea.vmem %s54_s26, 32  ;;  %p4431_p12 = scmp.lt.s32.totalorder %s54_s26, %s54_s26 }
  0x2f   :  { %p4427_p11 = scmp.ne.s32.totalorder %s54_s26, %s4426_s19  ;;  %p4432_p13 = scmp.lt.s32.totalorder %s4426_s19, %s4426_s19 }
  0x31   :  { %p4433_p0 = por %p4432_p13, %p4431_p12 }
  0x33   :  { %p4434_p1 = pnand %p4433_p0, %p4427_p11 }
  0x35   :  { %4437 = shalt.err (!%p4434_p1)
}
  0x36   :  { %56 = dma.hbm_to_vmem [thread:$0]  %s5403_s29, 32, %s54_s26, [#allocation6]  }
  0x37   :  { %4482 = dma.done.wait [#allocation3], 256  }
  0x38   :  { %4483 = vsyncadd [#allocation3], 4294967040 }
  0x39   :  { %4484 = dma.done.wait [#allocation6], 32  }
  0x3a   :  { %4485 = vsyncadd [#allocation6], 4294967264  ;;  %s5404_s24 = sld [smem:[#allocation14_spill]]  ;;  %s5405_s28 = sld [smem:[#allocation15_spill]]  ;;  %vm105_vm0 = vcmask 261120   ;;  %v149_v18 = vld [vmem:[%s5370_s6] sm:$0xff] }
  0x3b   :  { %v150_v19 = vld [vmem:[%s5370_s6 + $0x8] sm:$0xff]  ;;  %v151_v20 = vld [vmem:[%s5370_s6 + $0x10] sm:$0xff]  ;;  %v152_v22 = vld [vmem:[%s5370_s6 + $0x18] sm:$0xff]  ;;  %s5407_s26 = sld [smem:[#allocation19_spill]]  ;;  %vm247_vm1 = vcmask 130048   ;;  %s4494_s30 = smov 80  }
  0x3c   :  { %v3958_v21 = vpack.c.bf16 %v150_v19, %v149_v18  ;;  %v3962_v23 = vpack.c.bf16 %v152_v22, %v151_v20  ;;  %v3282_v40 = vld [vmem:[%s5371_s7] ss:$0 sm:$0xff]  ;;  %s4495_s5 = smov 96   ;;  %s4496_s25 = smov 112   ;;  %vm4700_vm2 = vmpackc.low %vm247_vm1, %vm247_vm1  ;;  %v4715_v57 = vld [vmem:[#allocation2 + $0x8] sm:$0xff]  ;;  %vm4501_vm9 = vmmov 0  }
  0x3d   :  { %v4717_v58 = vld [vmem:[#allocation2] sm:$0xff]  ;;  %s4497_s3 = smov 48   ;;  %s4498_s1 = smov 64  }
  0x3e   :  { %3959 = vmatprep.subr.bf16.mxu0 %v3958_v21  ;;  %s4499_s21 = smov 16  }
  0x3f   :  { %3961 = vmatpush3.bf16.msra.mxu0 %v3958_v21 }
  0x40   :  { %v95_v0 = vld [vmem:[%s5404_s24] sm:$0xff]  ;;  %v96_v2 = vld [vmem:[%s5404_s24 + $0x8] sm:$0xff]  ;;  %3963 = vmatprep.subr.bf16.mxu0 %v3962_v23 }
  0x41   :  { %v97_v1 = vld [vmem:[%s5405_s28] sm:$0xff]  ;;  %v98_v4 = vld [vmem:[%s5405_s28 + $0x8] sm:$0xff]  ;;  %s5406_s28 = sld [smem:[#allocation18_spill]] }
  0x42   :  { %v4651_v3 = vadd.f32 %v97_v1, %v95_v0  ;;  %v4656_v5 = vadd.f32 %v98_v4, %v96_v2  ;;  %v3281_v33 = vld [vmem:[%s5407_s26] ss:$0 sm:$0xff] }
  0x43   :  { %3965 = vmatpush3.bf16.msra.mxu0 %v3962_v23 }
  0x44   :  { %v106_v6 = vsel %vm105_vm0, %v4651_v3, 0.0  ;;  %v109_v7 = vsel %vm105_vm0, %v4656_v5, 0.0 }
  0x45   :  { %107 = vadd.xlane.f32.xlu0 %v106_v6 }
  0x47   :  { %v3280_v31 = vld [vmem:[%s5406_s28] ss:$0 sm:$0xff] }
  0x49   :  { %110 = vadd.xlane.f32.xlu0 %v109_v7 }
  0xd2   :  { %v108_v8 = vpop.xlane.xlu0 %107 }
  0xd3   :  { %v113_v9 = vmul.f32 0.03125, %v108_v8 }
  0xd5   :  { %v115_v10 = vsub.f32 %v4651_v3, %v113_v9 }
  0xd6   :  { %v111_v11 = vpop.xlane.xlu0 %110 }
  0xd7   :  { %v114_v12 = vmul.f32 0.03125, %v111_v11  ;;  %v117_v13 = vmul.f32 %v115_v10, %v115_v10 }
  0xd9   :  { %v116_v14 = vsub.f32 %v4656_v5, %v114_v12  ;;  %v119_v15 = vsel %vm105_vm0, %v117_v13, 0.0 }
  0xda   :  { %120 = vadd.xlane.f32.xlu1 %v119_v15 }
  0xdb   :  { %v118_v16 = vmul.f32 %v116_v14, %v116_v14 }
  0xdd   :  { %v122_v17 = vsel %vm105_vm0, %v118_v16, 0.0 }
  0xde   :  { %123 = vadd.xlane.f32.xlu1 %v122_v17 }
 0x167   :  { %v121_v24 = vpop.xlane.xlu1 %120 }
 0x168   :  { %v125_v25 = vmul.f32 0.03125, %v121_v24 }
 0x16a   :  { %v127_v26 = vadd.f32 1e-05, %v125_v25 }
 0x16b   :  { %v124_v27 = vpop.xlane.xlu1 %123 }
 0x16c   :  { %4296 = vrsqrt.f32 %v127_v26  ;;  %v126_v28 = vmul.f32 0.03125, %v124_v27 }
 0x16e   :  { %v128_v29 = vadd.f32 1e-05, %v126_v28 }
 0x170   :  { %4298 = vrsqrt.f32 %v128_v29 }
 0x176   :  { %v4297_v30 = vpop.eup %4296 }
 0x177   :  { %v131_v32 = vmul.f32 %v4297_v30, %v115_v10 }
 0x179   :  { %v139_v34 = vmul.f32 %v3280_v31, %v131_v32 }
 0x17a   :  { %v4299_v35 = vpop.eup %4298 }
 0x17b   :  { %v132_v36 = vmul.f32 %v4299_v35, %v116_v14  ;;  %v147_v37 = vadd.f32 %v3281_v33, %v139_v34 }
 0x17d   :  { %v140_v38 = vmul.f32 %v3280_v31, %v132_v36  ;;  %3625 = vmatprep.mubr.msk.f32.mxu0 %vm105_vm0, %v147_v37 }
 0x17f   :  { %v148_v39 = vadd.f32 %v3281_v33, %v140_v38 }
 0x181   :  { %3626 = vmatmul.mubr.msk.f32.vlgmr.msra.gmra.mrb[0].mxu0 %vm105_vm0, %v148_v39 }
 0x254   :  { %v3627_v41 = vpop.f32.mrb[0].mxu0 }
 0x255   :  { %v238_v42 = vadd.f32 %v3627_v41, %v3282_v40  ;;  %v232_v43 = vpop.f32.mrb[1].mxu0 }
 0x256   :  { %v233_v44 = vadd.f32 %v3282_v40, %v232_v43 }
 0x258   :  { %3632 = vmatprep.mubr.msk.f32.mxu0 %vm247_vm1, %v233_v44  ;;  %v4690_v45 = vpack.i.bf16 %v238_v42, %v233_v44 }
 0x25a   :  { %4242 = vrot.lane.b32.xlu1 %v4690_v45, %s4494_s30  ;;  %4237 = vrot.lane.b32.xlu0 %v4690_v45, %s4495_s5 }
 0x25e   :  { %440 = vrot.lane.b32.xlu1 %v233_v44, %s4496_s25 }
 0x262   :  { %442 = vrot.lane.b32.xlu1 %v238_v42, %s4496_s25 }
 0x2cc   :  { %v4243_v46 = vpop.permute.xlu1 %4242  ;;  %v4238_v47 = vpop.permute.xlu0 %4237 }
 0x2cd   :  { %v4245_v48 = vunpack.i.h.bf16 %v4243_v46  ;;  %v4244_v49 = vunpack.i.l.bf16 %v4243_v46  ;;  %v4240_v50 = vunpack.i.h.bf16 %v4238_v47  ;;  %v4239_v51 = vunpack.i.l.bf16 %v4238_v47 }
 0x2cf   :  { %v3966_v53 = vpack.c.bf16 %v4240_v50, %v4239_v51  ;;  %v3976_v54 = vpack.c.bf16 %v4245_v48, %v4244_v49  ;;  %v650_v49 = vld [vmem:[%s5372_s8] sm:$0xff]  ;;  %v651_v50 = vld [vmem:[%s5372_s8 + $0x8] sm:$0xff] }
 0x2d0   :  { %v441_v55 = vpop.permute.xlu1 %440  ;;  %v3986_v51 = vpack.c.bf16 %v651_v50, %v650_v49  ;;  %v960_v49 = vld [vmem:[%s5378_s14 + $0x20] sm:$0xff]  ;;  %v961_v50 = vld [vmem:[%s5378_s14 + $0x28] sm:$0xff] }
 0x2d1   :  { %3968 = vmatprep.subr.msk.bf16.mxu0 %vm4700_vm2, %v3966_v53  ;;  %3978 = vmatprep.subr.msk.bf16.mxu1 %vm4700_vm2, %v3976_v54 }
 0x2d2   :  { %3646 = vmatprep.mubr.msk.f32.mxu1 %vm247_vm1, %v441_v55  ;;  %3971 = vmatpush3.bf16.xpose.msk.msra.mxu0 %vm4700_vm2, %v3966_v53  ;;  %v652_v53 = vld [vmem:[%s5372_s8 + $0x10] sm:$0xff] }
 0x2d3   :  { %3981 = vmatpush3.bf16.xpose.msk.msra.mxu1 %vm4700_vm2, %v3976_v54  ;;  %v653_v54 = vld [vmem:[%s5372_s8 + $0x18] sm:$0xff] }
 0x2d4   :  { %v443_v56 = vpop.permute.xlu1 %442  ;;  %v3990_v55 = vpack.c.bf16 %v653_v54, %v652_v53  ;;  %v962_v53 = vld [vmem:[%s5378_s14 + $0x30] sm:$0xff]  ;;  %v963_v54 = vld [vmem:[%s5378_s14 + $0x38] sm:$0xff] }
 0x2d9   :  { %3633 = vmatmul.mubr.msk.f32.vlgmr.msra.gmra.mrb[2].mxu0 %vm247_vm1, %v238_v42 }
 0x2da   :  { %3647 = vmatmul.mubr.msk.f32.vlgmr.msra.gmra.mrb[0].mxu1 %vm247_vm1, %v443_v56 }
 0x3ac   :  { %v3634_v59 = vpop.f32.mrb[2].mxu0 }
 0x3ad   :  { %v328_v60 = vadd.f32 %v3634_v59, %v4715_v57  ;;  %v3648_v61 = vpop.f32.mrb[0].mxu1  ;;  %v322_v62 = vpop.f32.mrb[3].mxu0 }
 0x3ae   :  { %v323_v63 = vadd.f32 %v322_v62, %v4717_v58  ;;  %v522_v0 = vpop.f32.mrb[1].mxu1  ;;  %v528_v6 = vadd.f32 %v3648_v61, %v4715_v57 }
 0x3af   :  { %v334_v1 = vsel %vm247_vm1, %v328_v60, -inf  ;;  %v523_v2 = vadd.f32 %v522_v0, %v4717_v58 }
 0x3b0   :  { %335 = vmax.xlane.f32.xlu1 %v334_v1  ;;  %v331_v4 = vsel %vm247_vm1, %v323_v63, -inf  ;;  %v534_v8 = vsel %vm247_vm1, %v528_v6, -inf }
 0x3b1   :  { %332 = vmax.xlane.f32.xlu0 %v331_v4  ;;  %v531_v7 = vsel %vm247_vm1, %v523_v2, -inf  ;;  %v3299_v4 = vld [vmem:[%s5373_s9] ss:$0 sm:$0xff] }
 0x3b5   :  { %532 = vmax.xlane.f32.xlu0 %v531_v7 }
 0x3b9   :  { %535 = vmax.xlane.f32.xlu0 %v534_v8 }
 0x43d   :  { %v336_v9 = vpop.xlane.xlu1 %335 }
 0x43e   :  { %v338_v10 = vsub.f32 %v328_v60, %v336_v9  ;;  %v333_v11 = vpop.xlane.xlu0 %332 }
 0x43f   :  { %v337_v12 = vsub.f32 %v323_v63, %v333_v11 }
 0x440   :  { %v341_v13 = vmul.f32 1.442695, %v338_v10 }
 0x441   :  { %v339_v14 = vmul.f32 1.442695, %v337_v12 }
 0x442   :  { %4300 = vpow2.f32 %v341_v13  ;;  %v533_v15 = vpop.xlane.xlu0 %532 }
 0x443   :  { %4302 = vpow2.f32 %v339_v14  ;;  %v537_v16 = vsub.f32 %v523_v2, %v533_v15 }
 0x445   :  { %v539_v17 = vmul.f32 1.442695, %v537_v16 }
 0x446   :  { %v536_v18 = vpop.xlane.xlu0 %535 }
 0x447   :  { %4304 = vpow2.f32 %v539_v17  ;;  %v538_v19 = vsub.f32 %v528_v6, %v536_v18 }
 0x449   :  { %v541_v20 = vmul.f32 1.442695, %v538_v19 }
 0x44b   :  { %4306 = vpow2.f32 %v541_v20 }
 0x44c   :  { %v4301_v21 = vpop.eup %4300 }
 0x44d   :  { %v4303_v22 = vpop.eup %4302  ;;  %v346_v23 = vsel %vm247_vm1, %v4301_v21, 0.0 }
 0x44e   :  { %347 = vadd.xlane.f32.xlu1 %v346_v23  ;;  %v343_v24 = vsel %vm247_vm1, %v4303_v22, 0.0 }
 0x44f   :  { %344 = vadd.xlane.f32.xlu0 %v343_v24  ;;  %v792_v24 = vld [vmem:[%s5376_s12 + $0x10] sm:$0xff] }
 0x451   :  { %v4305_v25 = vpop.eup %4304 }
 0x452   :  { %v543_v26 = vsel %vm247_vm1, %v4305_v25, 0.0 }
 0x453   :  { %544 = vadd.xlane.f32.xlu0 %v543_v26 }
 0x455   :  { %v4307_v27 = vpop.eup %4306 }
 0x456   :  { %v546_v28 = vsel %vm247_vm1, %v4307_v27, 0.0 }
 0x457   :  { %547 = vadd.xlane.f32.xlu1 %v546_v28 }
 0x468   :  { %4252 = vrot.lane.b32.xlu1 %v4690_v45, %s4497_s3 }
 0x469   :  { %4247 = vrot.lane.b32.xlu0 %v4690_v45, %s4498_s1 }
 0x4db   :  { %v348_v29 = vpop.xlane.xlu1 %347 }
 0x4dc   :  { %v345_v30 = vpop.xlane.xlu0 %344 }
 0x4dd   :  { %4308 = vrcp.f32 %v345_v30 }
 0x4de   :  { %4310 = vrcp.f32 %v348_v29 }
 0x4e0   :  { %v545_v31 = vpop.xlane.xlu0 %544 }
 0x4e1   :  { %4312 = vrcp.f32 %v545_v31 }
 0x4e4   :  { %v548_v32 = vpop.xlane.xlu1 %547  ;;  %v4248_v33 = vpop.permute.xlu0 %4247 }
 0x4e5   :  { %4314 = vrcp.f32 %v548_v32  ;;  %v4250_v34 = vunpack.i.h.bf16 %v4248_v33  ;;  %v4249_v35 = vunpack.i.l.bf16 %v4248_v33 }
 0x4e7   :  { %v4309_v36 = vpop.eup %4308  ;;  %v3972_v37 = vpack.c.bf16 %v4250_v34, %v4249_v35  ;;  %v3300_v34 = vld [vmem:[%s5374_s10] ss:$0 sm:$0xff] }
 0x4e8   :  { %v4311_v38 = vpop.eup %4310  ;;  %v4253_v39 = vpop.permute.xlu1 %4252  ;;  %v350_v40 = vmul.f32 %v4309_v36, %v4303_v22  ;;  %v791_v22 = vld [vmem:[%s5376_s12 + $0x8] sm:$0xff]  ;;  %v3301_v36 = vld [vmem:[%s5375_s11] ss:$0 sm:$0xff] }
 0x4e9   :  { %v4255_v41 = vunpack.i.h.bf16 %v4253_v39  ;;  %v4254_v42 = vunpack.i.l.bf16 %v4253_v39  ;;  %3973 = vmatprep.subr.bf16.mxu0 %v3972_v37  ;;  %v352_v44 = vmul.f32 %v4311_v38, %v4301_v21  ;;  %v790_v21 = vld [vmem:[%s5376_s12] sm:$0xff] }
 0x4ea   :  { %3975 = vmatpush3.bf16.msra.mxu0 %v3972_v37  ;;  %3639 = vmatprep.mubr.msk.f32.mxu0 %vm247_vm1, %v350_v40  ;;  %v3994_v23 = vpack.c.bf16 %v791_v22, %v790_v21 }
 0x4eb   :  { %v4313_v43 = vpop.eup %4312  ;;  %v3982_v45 = vpack.c.bf16 %v4255_v41, %v4254_v42 }
 0x4ec   :  { %v550_v46 = vmul.f32 %v4313_v43, %v4305_v25  ;;  %3995 = vmatprep.subr.bf16.mxu1 %v3994_v23  ;;  %v793_v25 = vld [vmem:[%s5376_s12 + $0x18] sm:$0xff]  ;;  %v956_v43 = vld [vmem:[%s5378_s14] sm:$0xff] }
 0x4ed   :  { %3640 = vmatmul.mubr.msk.f32.vlgmr.msra.gmra.mrb[4].mxu0 %vm247_vm1, %v352_v44  ;;  %3983 = vmatprep.subr.bf16.mxu0 %v3982_v45  ;;  %v3998_v26 = vpack.c.bf16 %v793_v25, %v792_v24  ;;  %v957_v44 = vld [vmem:[%s5378_s14 + $0x8] sm:$0xff] }
 0x4ee   :  { %3985 = vmatpush3.bf16.msra.mxu0 %v3982_v45  ;;  %3653 = vmatprep.mubr.msk.f32.mxu0 %vm247_vm1, %v550_v46  ;;  %v4002_v45 = vpack.c.bf16 %v957_v44, %v956_v43  ;;  %v958_v46 = vld [vmem:[%s5378_s14 + $0x10] sm:$0xff] }
 0x4ef   :  { %v4315_v47 = vpop.eup %4314  ;;  %3987 = vmatprep.subr.bf16.mxu0 %v3986_v51  ;;  %3997 = vmatpush3.bf16.msra.mxu1 %v3994_v23 }
 0x4f0   :  { %v552_v48 = vmul.f32 %v4315_v47, %v4307_v27  ;;  %3999 = vmatprep.subr.bf16.mxu1 %v3998_v26  ;;  %v959_v47 = vld [vmem:[%s5378_s14 + $0x18] sm:$0xff] }
 0x4f2   :  { %3654 = vmatmul.mubr.msk.f32.vlgmr.msra.gmra.mrb[6].mxu0 %vm247_vm1, %v552_v48  ;;  %v4006_v48 = vpack.c.bf16 %v959_v47, %v958_v46 }
 0x4f3   :  { %3989 = vmatpush3.bf16.msra.mxu0 %v3986_v51  ;;  %4001 = vmatpush3.bf16.msra.mxu1 %v3998_v26  ;;  %v4010_v51 = vpack.c.bf16 %v961_v50, %v960_v49 }
 0x4f4   :  { %3991 = vmatprep.subr.bf16.mxu0 %v3990_v55 }
 0x4f7   :  { %3993 = vmatpush3.bf16.msra.mxu0 %v3990_v55  ;;  %v4014_v55 = vpack.c.bf16 %v963_v54, %v962_v53 }
 0x4f8   :  { %4003 = vmatprep.subr.bf16.mxu0 %v4002_v45 }
 0x5c0   :  { %v3641_v56 = vpop.f32.mrb[4].mxu0 }
 0x5c1   :  { %v431_v59 = vpop.f32.mrb[5].mxu0 }
 0x5c5   :  { %v3655_v60 = vpop.f32.mrb[6].mxu0 }
 0x5c6   :  { %v631_v61 = vpop.f32.mrb[7].mxu0 }
 0x5c7   :  { %642 = vrot.lane.b32.xlu1 %v631_v61, %s4499_s21  ;;  %v966_v61 = vld [vmem:[%s5378_s14 + $0x50] sm:$0xff] }
 0x5cb   :  { %644 = vrot.lane.b32.xlu1 %v3655_v60, %s4499_s21 }
 0x639   :  { %v643_v62 = vpop.permute.xlu1 %642 }
 0x63a   :  { %v648_v63 = vsel %vm247_vm1, %v431_v59, %v643_v62  ;;  %v965_v59 = vld [vmem:[%s5378_s14 + $0x48] sm:$0xff]  ;;  %v967_v62 = vld [vmem:[%s5378_s14 + $0x58] sm:$0xff] }
 0x63b   :  { %3664 = vmatprep.mubr.msk.f32.mxu0 %vm105_vm0, %v648_v63  ;;  %v4022_v63 = vpack.c.bf16 %v967_v62, %v966_v61 }
 0x63d   :  { %v645_v0 = vpop.permute.xlu1 %644 }
 0x63e   :  { %v649_v1 = vsel %vm247_vm1, %v3641_v56, %v645_v0  ;;  %v964_v56 = vld [vmem:[%s5378_s14 + $0x40] sm:$0xff] }
 0x63f   :  { %3665 = vmatmul.mubr.msk.f32.vlgmr.msra.gmra.mrb[8].mxu0 %vm105_vm0, %v649_v1  ;;  %v4018_v60 = vpack.c.bf16 %v965_v59, %v964_v56  ;;  %v968_v0 = vld [vmem:[%s5378_s14 + $0x60] sm:$0xff]  ;;  %v969_v1 = vld [vmem:[%s5378_s14 + $0x68] sm:$0xff] }
 0x640   :  { %4005 = vmatpush3.bf16.msra.mxu0 %v4002_v45 }
 0x641   :  { %4007 = vmatprep.subr.bf16.mxu0 %v4006_v48 }
 0x644   :  { %4009 = vmatpush3.bf16.msra.mxu0 %v4006_v48 }
 0x645   :  { %4011 = vmatprep.subr.bf16.mxu0 %v4010_v51 }
 0x648   :  { %4013 = vmatpush3.bf16.msra.mxu0 %v4010_v51 }
 0x649   :  { %4015 = vmatprep.subr.bf16.mxu0 %v4014_v55 }
 0x64c   :  { %4017 = vmatpush3.bf16.msra.mxu0 %v4014_v55 }
 0x64d   :  { %4019 = vmatprep.subr.bf16.mxu0 %v4018_v60 }
 0x650   :  { %4021 = vmatpush3.bf16.msra.mxu0 %v4018_v60 }
 0x651   :  { %4023 = vmatprep.subr.bf16.mxu0 %v4022_v63 }
 0x654   :  { %4025 = vmatpush3.bf16.msra.mxu0 %v4022_v63 }
 0x712   :  { %v3666_v2 = vpop.f32.mrb[8].mxu0 }
 0x713   :  { %v736_v6 = vadd.f32 %v3666_v2, %v4656_v5  ;;  %v726_v7 = vpop.f32.mrb[9].mxu0  ;;  %v4026_v2 = vpack.c.bf16 %v969_v1, %v968_v0 }
 0x714   :  { %v735_v8 = vadd.f32 %v726_v7, %v4651_v3 }
 0x715   :  { %v4762_v9 = vadd.f32 %v3299_v4, %v736_v6  ;;  %4027 = vmatprep.subr.bf16.mxu0 %v4026_v2  ;;  %v971_v6 = vld [vmem:[%s5378_s14 + $0x78] sm:$0xff] }
 0x716   :  { %v4764_v10 = vadd.f32 %v3299_v4, %v735_v8  ;;  %4029 = vmatpush3.bf16.msra.mxu0 %v4026_v2  ;;  %v970_v4 = vld [vmem:[%s5378_s14 + $0x70] sm:$0xff]  ;;  %v3302_v8 = vld [vmem:[%s5377_s13] ss:$0 sm:$0xff] }
 0x717   :  { %v751_v11 = vsel %vm105_vm0, %v4762_v9, 0.0  ;;  %v4030_v7 = vpack.c.bf16 %v971_v6, %v970_v4 }
 0x718   :  { %752 = vadd.xlane.f32.xlu1 %v751_v11  ;;  %v748_v12 = vsel %vm105_vm0, %v4764_v10, 0.0 }
 0x719   :  { %749 = vadd.xlane.f32.xlu0 %v748_v12  ;;  %4031 = vmatprep.subr.bf16.mxu0 %v4030_v7 }
 0x71a   :  { %4033 = vmatpush3.bf16.msra.mxu0 %v4030_v7 }
 0x7a5   :  { %v753_v13 = vpop.xlane.xlu1 %752 }
 0x7a6   :  { %v755_v14 = vmul.f32 0.03125, %v753_v13  ;;  %v750_v15 = vpop.xlane.xlu0 %749 }
 0x7a7   :  { %v754_v16 = vmul.f32 0.03125, %v750_v15 }
 0x7a8   :  { %v757_v5 = vsub.f32 %v4762_v9, %v755_v14 }
 0x7a9   :  { %v756_v3 = vsub.f32 %v4764_v10, %v754_v16 }
 0x7aa   :  { %v759_v19 = vmul.f32 %v757_v5, %v757_v5 }
 0x7ab   :  { %v758_v17 = vmul.f32 %v756_v3, %v756_v3 }
 0x7ac   :  { %v763_v20 = vsel %vm105_vm0, %v759_v19, 0.0 }
 0x7ad   :  { %v760_v18 = vsel %vm105_vm0, %v758_v17, 0.0 }
 0x7ae   :  { %761 = vadd.xlane.f32.xlu0 %v760_v18 }
 0x7b2   :  { %764 = vadd.xlane.f32.xlu0 %v763_v20 }
 0x83b   :  { %v762_v27 = vpop.xlane.xlu0 %761 }
 0x83c   :  { %v766_v28 = vmul.f32 0.03125, %v762_v27 }
 0x83e   :  { %v768_v29 = vadd.f32 1e-05, %v766_v28 }
 0x83f   :  { %v765_v30 = vpop.xlane.xlu0 %764 }
 0x840   :  { %4316 = vrsqrt.f32 %v768_v29  ;;  %v767_v31 = vmul.f32 0.03125, %v765_v30 }
 0x842   :  { %v769_v32 = vadd.f32 1e-05, %v767_v31 }
 0x844   :  { %4318 = vrsqrt.f32 %v769_v32 }
 0x84a   :  { %v4317_v33 = vpop.eup %4316 }
 0x84b   :  { %v772_v35 = vmul.f32 %v4317_v33, %v756_v3 }
 0x84d   :  { %v780_v37 = vmul.f32 %v3300_v34, %v772_v35 }
 0x84e   :  { %v4319_v38 = vpop.eup %4318 }
 0x84f   :  { %v773_v39 = vmul.f32 %v4319_v38, %v757_v5  ;;  %v788_v40 = vadd.f32 %v3301_v36, %v780_v37 }
 0x851   :  { %v781_v41 = vmul.f32 %v3300_v34, %v773_v39  ;;  %3675 = vmatprep.mubr.msk.f32.mxu1 %vm105_vm0, %v788_v40 }
 0x853   :  { %v789_v42 = vadd.f32 %v3301_v36, %v781_v41 }
 0x855   :  { %3676 = vmatmul.mubr.msk.f32.vlgmr.msra.gmra.mrb[2].mxu1 %vm105_vm0, %v789_v42 }
 0x928   :  { %v3677_v11 = vpop.f32.mrb[2].mxu1 }
 0x929   :  { %v4845_v12 = vadd.f32 %v3677_v11, %v3302_v8  ;;  %v873_v13 = vpop.f32.mrb[3].mxu1 }
 0x92a   :  { %v4847_v14 = vadd.f32 %v3302_v8, %v873_v13 }
 0x92b   :  { %v4850_v15 = vmul.f32 0.70710677, %v4845_v12 }
 0x92c   :  { %v4853_v16 = vmul.f32 0.70710677, %v4847_v14 }
 0x92d   :  { %v887_v5 = vand.u32 2147483647, %v4850_v15  ;;  %vm947_vm3 = vcmp.ge.f32.partialorder %v4850_v15, 0.0  ;;  %v3305_v15 = vld [vmem:[%s5379_s15] ss:$0 sm:$0xff] }
 0x92e   :  { %v886_v3 = vand.u32 2147483647, %v4853_v16  ;;  %vm946_vm4 = vcmp.ge.f32.partialorder %v4853_v16, 0.0 }
 0x92f   :  { %v889_v17 = vmul.f32 0.5, %v887_v5  ;;  %v933_v55 = vsub.f32 0.0, %v887_v5 }
 0x930   :  { %v888_v18 = vmul.f32 0.5, %v886_v3  ;;  %v932_v59 = vsub.f32 0.0, %v886_v3 }
 0x931   :  { %v891_v19 = vadd.f32 1.0, %v889_v17  ;;  %v935_v63 = vmul.f32 %v933_v55, %v887_v5  ;;  %v883_v5 = vmul.f32 0.5, %v4845_v12  ;;  %v3308_v55 = vld [vmem:[%s5406_s28 + $0x1] ss:$0 sm:$0xff] }
 0x932   :  { %v890_v20 = vadd.f32 1.0, %v888_v18  ;;  %v934_v1 = vmul.f32 %v932_v59, %v886_v3 }
 0x933   :  { %4320 = vrcp.f32 %v891_v19 }
 0x934   :  { %4322 = vrcp.f32 %v890_v20 }
 0x93d   :  { %v4321_v21 = vpop.eup %4320 }
 0x93e   :  { %v4323_v22 = vpop.eup %4322  ;;  %v897_v23 = vmul.f32 0.17087276, %v4321_v21 }
 0x93f   :  { %v896_v24 = vmul.f32 0.17087276, %v4323_v22 }
 0x940   :  { %v899_v25 = vadd.f32 -0.82215226, %v897_v23 }
 0x941   :  { %v898_v26 = vadd.f32 -0.82215226, %v896_v24 }
 0x942   :  { %v901_v27 = vmul.f32 %v4321_v21, %v899_v25 }
 0x943   :  { %v900_v28 = vmul.f32 %v4323_v22, %v898_v26  ;;  %v882_v26 = vmul.f32 0.5, %v4847_v14 }
 0x944   :  { %v903_v29 = vadd.f32 1.4885159, %v901_v27 }
 0x945   :  { %v902_v30 = vadd.f32 1.4885159, %v900_v28 }
 0x946   :  { %v905_v31 = vmul.f32 %v4321_v21, %v903_v29 }
 0x947   :  { %v904_v32 = vmul.f32 %v4323_v22, %v902_v30 }
 0x948   :  { %v907_v33 = vadd.f32 -1.135204, %v905_v31 }
 0x949   :  { %v906_v34 = vadd.f32 -1.135204, %v904_v32 }
 0x94a   :  { %v909_v35 = vmul.f32 %v4321_v21, %v907_v33 }
 0x94b   :  { %v908_v36 = vmul.f32 %v4323_v22, %v906_v34 }
 0x94c   :  { %v911_v37 = vadd.f32 0.27886808, %v909_v35 }
 0x94d   :  { %v910_v38 = vadd.f32 0.27886808, %v908_v36 }
 0x94e   :  { %v913_v39 = vmul.f32 %v4321_v21, %v911_v37 }
 0x94f   :  { %v912_v40 = vmul.f32 %v4323_v22, %v910_v38 }
 0x950   :  { %v915_v41 = vadd.f32 -0.18628806, %v913_v39 }
 0x951   :  { %v914_v42 = vadd.f32 -0.18628806, %v912_v40 }
 0x952   :  { %v917_v43 = vmul.f32 %v4321_v21, %v915_v41  ;;  %v3310_v41 = vld [vmem:[%s5370_s6 + $0x20] sm:$0xff] }
 0x953   :  { %v916_v44 = vmul.f32 %v4323_v22, %v914_v42  ;;  %v3311_v42 = vld [vmem:[%s5370_s6 + $0x28] sm:$0xff] }
 0x954   :  { %v919_v45 = vadd.f32 0.09678418, %v917_v43  ;;  %v4034_v43 = vpack.c.bf16 %v3311_v42, %v3310_v41 }
 0x955   :  { %v918_v46 = vadd.f32 0.09678418, %v916_v44  ;;  %v3312_v44 = vld [vmem:[%s5370_s6 + $0x30] sm:$0xff] }
 0x956   :  { %v921_v47 = vmul.f32 %v4321_v21, %v919_v45  ;;  %v3313_v45 = vld [vmem:[%s5370_s6 + $0x38] sm:$0xff]  ;;  %4035 = vmatprep.subr.bf16.mxu1 %v4034_v43 }
 0x957   :  { %v920_v48 = vmul.f32 %v4323_v22, %v918_v46  ;;  %v4038_v46 = vpack.c.bf16 %v3313_v45, %v3312_v44  ;;  %4037 = vmatpush3.bf16.msra.mxu1 %v4034_v43 }
 0x958   :  { %v923_v49 = vadd.f32 0.37409195, %v921_v47 }
 0x959   :  { %v922_v50 = vadd.f32 0.37409195, %v920_v48  ;;  %4039 = vmatprep.subr.bf16.mxu1 %v4038_v46 }
 0x95a   :  { %v925_v51 = vmul.f32 %v4321_v21, %v923_v49 }
 0x95b   :  { %v924_v53 = vmul.f32 %v4323_v22, %v922_v50  ;;  %4041 = vmatpush3.bf16.msra.mxu1 %v4038_v46 }
 0x95c   :  { %v927_v54 = vadd.f32 1.0000237, %v925_v51 }
 0x95d   :  { %v926_v56 = vadd.f32 1.0000237, %v924_v53 }
 0x95e   :  { %v929_v60 = vmul.f32 %v4321_v21, %v927_v54 }
 0x95f   :  { %v928_v61 = vmul.f32 %v4323_v22, %v926_v56 }
 0x960   :  { %v931_v62 = vadd.f32 -1.2655122, %v929_v60 }
 0x961   :  { %v930_v0 = vadd.f32 -1.2655122, %v928_v61  ;;  %v3309_v61 = vld [vmem:[%s5407_s26 + $0x1] ss:$0 sm:$0xff] }
 0x962   :  { %v937_v2 = vadd.f32 %v935_v63, %v931_v62 }
 0x963   :  { %v936_v4 = vadd.f32 %v934_v1, %v930_v0 }
 0x964   :  { %v940_v6 = vmul.f32 1.442695, %v937_v2  ;;  %v3315_v2 = vld [vmem:[%s5371_s7 + $0x1] ss:$0 sm:$0xff] }
 0x965   :  { %v938_v7 = vmul.f32 1.442695, %v936_v4 }
 0x966   :  { %4324 = vpow2.f32 %v940_v6 }
 0x967   :  { %4326 = vpow2.f32 %v938_v7 }
 0x970   :  { %v4325_v8 = vpop.eup %4324 }
 0x971   :  { %v4327_v11 = vpop.eup %4326  ;;  %v943_v13 = vmul.f32 %v4325_v8, %v4321_v21 }
 0x972   :  { %v942_v17 = vmul.f32 %v4327_v11, %v4323_v22 }
 0x973   :  { %v945_v18 = vsub.f32 1.0, %v943_v13 }
 0x974   :  { %v944_v19 = vsub.f32 1.0, %v942_v17 }
 0x975   :  { %v949_v20 = vsub.f32 0.0, %v945_v18 }
 0x976   :  { %v948_v23 = vsub.f32 0.0, %v944_v19 }
 0x977   :  { %v951_v24 = vsel %vm947_vm3, %v945_v18, %v949_v20 }
 0x978   :  { %v953_v3 = vadd.f32 1.0, %v951_v24  ;;  %v950_v25 = vsel %vm946_vm4, %v944_v19, %v948_v23 }
 0x979   :  { %v952_v27 = vadd.f32 1.0, %v950_v25 }
 0x97a   :  { %v955_v28 = vmul.f32 %v953_v3, %v883_v5 }
 0x97b   :  { %v954_v29 = vmul.f32 %v952_v27, %v882_v26 }
 0x97d   :  { %3710 = vmatprep.mubr.f32.mxu0 %v954_v29 }
 0x97e   :  { %3711 = vmatmul.mubr.f32.vlgmr.msra.gmra.mrb[10].mxu0 %v955_v28 }
 0xa51   :  { %v3712_v21 = vpop.f32.mrb[10].mxu0 }
 0xa52   :  { %v1048_v22 = vadd.f32 %v3712_v21, %v4762_v9  ;;  %v1038_v30 = vpop.f32.mrb[11].mxu0 }
 0xa53   :  { %v1047_v16 = vadd.f32 %v1038_v30, %v4764_v10 }
 0xa54   :  { %v4866_v12 = vadd.f32 %v3305_v15, %v1048_v22 }
 0xa55   :  { %v4868_v31 = vadd.f32 %v3305_v15, %v1047_v16 }
 0xa56   :  { %v1065_v14 = vsel %vm105_vm0, %v4866_v12, 0.0 }
 0xa57   :  { %1066 = vadd.xlane.f32.xlu1 %v1065_v14  ;;  %v1062_v32 = vsel %vm105_vm0, %v4868_v31, 0.0 }
 0xa58   :  { %1063 = vadd.xlane.f32.xlu0 %v1062_v32 }
 0xae4   :  { %v1067_v33 = vpop.xlane.xlu1 %1066 }
 0xae5   :  { %v1069_v34 = vmul.f32 0.03125, %v1067_v33  ;;  %v1064_v35 = vpop.xlane.xlu0 %1063 }
 0xae6   :  { %v1068_v36 = vmul.f32 0.03125, %v1064_v35 }
 0xae7   :  { %v1071_v9 = vsub.f32 %v4866_v12, %v1069_v34 }
 0xae8   :  { %v1070_v10 = vsub.f32 %v4868_v31, %v1068_v36 }
 0xae9   :  { %v1073_v37 = vmul.f32 %v1071_v9, %v1071_v9 }
 0xaea   :  { %v1072_v38 = vmul.f32 %v1070_v10, %v1070_v10 }
 0xaeb   :  { %v1077_v39 = vsel %vm105_vm0, %v1073_v37, 0.0 }
 0xaec   :  { %1078 = vadd.xlane.f32.xlu1 %v1077_v39  ;;  %v1074_v40 = vsel %vm105_vm0, %v1072_v38, 0.0 }
 0xaed   :  { %1075 = vadd.xlane.f32.xlu0 %v1074_v40 }
 0xb79   :  { %v1079_v47 = vpop.xlane.xlu1 %1078 }
 0xb7a   :  { %v1081_v48 = vmul.f32 0.03125, %v1079_v47  ;;  %v1076_v49 = vpop.xlane.xlu0 %1075 }
 0xb7b   :  { %v1080_v50 = vmul.f32 0.03125, %v1076_v49 }
 0xb7c   :  { %v1083_v51 = vadd.f32 1e-05, %v1081_v48 }
 0xb7d   :  { %v1082_v53 = vadd.f32 1e-05, %v1080_v50 }
 0xb7e   :  { %4328 = vrsqrt.f32 %v1083_v51 }
 0xb7f   :  { %4330 = vrsqrt.f32 %v1082_v53 }
 0xb88   :  { %v4329_v54 = vpop.eup %4328 }
 0xb89   :  { %v4331_v56 = vpop.eup %4330  ;;  %v1087_v59 = vmul.f32 %v4329_v54, %v1071_v9 }
 0xb8a   :  { %v1086_v60 = vmul.f32 %v4331_v56, %v1070_v10 }
 0xb8b   :  { %v1095_v62 = vmul.f32 %v3308_v55, %v1087_v59 }
 0xb8c   :  { %v1094_v63 = vmul.f32 %v3308_v55, %v1086_v60 }
 0xb8d   :  { %v1103_v1 = vadd.f32 %v3309_v61, %v1095_v62 }
 0xb8e   :  { %v1102_v0 = vadd.f32 %v3309_v61, %v1094_v63 }
 0xb90   :  { %3721 = vmatprep.mubr.msk.f32.mxu1 %vm105_vm0, %v1102_v0 }
 0xb91   :  { %3722 = vmatmul.mubr.msk.f32.vlgmr.msra.gmra.mrb[4].mxu1 %vm105_vm0, %v1103_v1 }
 0xc64   :  { %v3723_v4 = vpop.f32.mrb[4].mxu1 }
 0xc65   :  { %v1195_v6 = vadd.f32 %v3723_v4, %v3315_v2  ;;  %v1189_v7 = vpop.f32.mrb[5].mxu1 }
 0xc66   :  { %v1190_v8 = vadd.f32 %v3315_v2, %v1189_v7 }
 0xc68   :  { %3728 = vmatprep.mubr.msk.f32.mxu1 %vm247_vm1, %v1190_v8  ;;  %v4902_v11 = vpack.i.bf16 %v1195_v6, %v1190_v8 }
 0xc6a   :  { %4257 = vrot.lane.b32.xlu0 %v4902_v11, %s4495_s5 }
 0xc6e   :  { %4267 = vrot.lane.b32.xlu0 %v4902_v11, %s4494_s30 }
 0xc72   :  { %1396 = vrot.lane.b32.xlu0 %v1190_v8, %s4496_s25 }
 0xc76   :  { %1398 = vrot.lane.b32.xlu0 %v1195_v6, %s4496_s25 }
 0xcdc   :  { %v4258_v13 = vpop.permute.xlu0 %4257 }
 0xcdd   :  { %v4260_v17 = vunpack.i.h.bf16 %v4258_v13  ;;  %v4259_v18 = vunpack.i.l.bf16 %v4258_v13 }
 0xcdf   :  { %v4042_v19 = vpack.c.bf16 %v4260_v17, %v4259_v18 }
 0xce0   :  { %v4268_v34 = vpop.permute.xlu0 %4267 }
 0xce1   :  { %4044 = vmatprep.subr.msk.bf16.mxu1 %vm4700_vm2, %v4042_v19  ;;  %v4270_v36 = vunpack.i.h.bf16 %v4268_v34  ;;  %v4269_v9 = vunpack.i.l.bf16 %v4268_v34 }
 0xce2   :  { %4047 = vmatpush3.bf16.xpose.msk.msra.mxu1 %vm4700_vm2, %v4042_v19  ;;  %v3330_v19 = vld [vmem:[%s5372_s8 + $0x20] sm:$0xff] }
 0xce3   :  { %v4052_v39 = vpack.c.bf16 %v4270_v36, %v4269_v9 }
 0xce4   :  { %v1397_v44 = vpop.permute.xlu0 %1396 }
 0xce8   :  { %v1399_v45 = vpop.permute.xlu0 %1398 }
 0xce9   :  { %3729 = vmatmul.mubr.msk.f32.vlgmr.msra.gmra.mrb[6].mxu1 %vm247_vm1, %v1195_v6 }
 0xdbc   :  { %v3730_v20 = vpop.f32.mrb[6].mxu1 }
 0xdbd   :  { %v1278_v23 = vpop.f32.mrb[7].mxu1  ;;  %v1284_v5 = vadd.f32 %v3730_v20, %v4715_v57  ;;  %v3331_v20 = vld [vmem:[%s5372_s8 + $0x28] sm:$0xff] }
 0xdbe   :  { %v1279_v24 = vadd.f32 %v1278_v23, %v4717_v58  ;;  %v3332_v23 = vld [vmem:[%s5372_s8 + $0x30] sm:$0xff] }
 0xdbf   :  { %v1290_v25 = vsel %vm247_vm1, %v1284_v5, -inf }
 0xdc0   :  { %v1287_v3 = vsel %vm247_vm1, %v1279_v24, -inf }
 0xdc1   :  { %1288 = vmax.xlane.f32.xlu1 %v1287_v3 }
 0xdc5   :  { %1291 = vmax.xlane.f32.xlu1 %v1290_v25 }
 0xe4e   :  { %v1289_v26 = vpop.xlane.xlu1 %1288 }
 0xe4f   :  { %v1293_v27 = vsub.f32 %v1279_v24, %v1289_v26  ;;  %v4062_v24 = vpack.c.bf16 %v3331_v20, %v3330_v19  ;;  %v3357_v19 = vld [vmem:[%s5378_s14 + $0xb8] sm:$0xff] }
 0xe51   :  { %v1295_v21 = vmul.f32 1.442695, %v1293_v27  ;;  %4063 = vmatprep.subr.bf16.mxu0 %v4062_v24 }
 0xe52   :  { %v1292_v28 = vpop.xlane.xlu1 %1291  ;;  %4065 = vmatpush3.bf16.msra.mxu0 %v4062_v24  ;;  %v3359_v24 = vld [vmem:[%s5378_s14 + $0xc8] sm:$0xff] }
 0xe53   :  { %v1294_v29 = vsub.f32 %v1284_v5, %v1292_v28  ;;  %v3333_v5 = vld [vmem:[%s5372_s8 + $0x38] sm:$0xff] }
 0xe54   :  { %v4066_v3 = vpack.c.bf16 %v3333_v5, %v3332_v23  ;;  %v3358_v23 = vld [vmem:[%s5378_s14 + $0xc0] sm:$0xff] }
 0xe55   :  { %v1297_v15 = vmul.f32 1.442695, %v1294_v29  ;;  %v4094_v5 = vpack.c.bf16 %v3359_v24, %v3358_v23 }
 0xe56   :  { %4067 = vmatprep.subr.bf16.mxu0 %v4066_v3 }
 0xe57   :  { %4332 = vpow2.f32 %v1297_v15  ;;  %4069 = vmatpush3.bf16.msra.mxu0 %v4066_v3  ;;  %v3360_v3 = vld [vmem:[%s5378_s14 + $0xd0] sm:$0xff] }
 0xe58   :  { %4334 = vpow2.f32 %v1295_v21 }
 0xe61   :  { %v4333_v22 = vpop.eup %4332 }
 0xe62   :  { %v1302_v30 = vsel %vm247_vm1, %v4333_v22, 0.0  ;;  %v4335_v16 = vpop.eup %4334 }
 0xe63   :  { %1303 = vadd.xlane.f32.xlu1 %v1302_v30  ;;  %v1299_v14 = vsel %vm247_vm1, %v4335_v16, 0.0 }
 0xe67   :  { %1300 = vadd.xlane.f32.xlu1 %v1299_v14 }
 0xe78   :  { %4262 = vrot.lane.b32.xlu1 %v4902_v11, %s4498_s1 }
 0xef0   :  { %v1304_v32 = vpop.xlane.xlu1 %1303 }
 0xef1   :  { %4336 = vrcp.f32 %v1304_v32 }
 0xef4   :  { %v1301_v33 = vpop.xlane.xlu1 %1300 }
 0xef5   :  { %4338 = vrcp.f32 %v1301_v33 }
 0xef8   :  { %v4263_v35 = vpop.permute.xlu1 %4262 }
 0xef9   :  { %v4265_v10 = vunpack.i.h.bf16 %v4263_v35  ;;  %v4264_v37 = vunpack.i.l.bf16 %v4263_v35 }
 0xefb   :  { %v4048_v38 = vpack.c.bf16 %v4265_v10, %v4264_v37  ;;  %v4337_v40 = vpop.eup %4336 }
 0xefc   :  { %v1308_v43 = vmul.f32 %v4337_v40, %v4333_v22  ;;  %v3337_v22 = vld [vmem:[%s5373_s9 + $0x1] ss:$0 sm:$0xff] }
 0xefd   :  { %4049 = vmatprep.subr.bf16.mxu1 %v4048_v38 }
 0xefe   :  { %4051 = vmatpush3.bf16.msra.mxu1 %v4048_v38 }
 0xeff   :  { %v4339_v41 = vpop.eup %4338  ;;  %4054 = vmatprep.subr.msk.bf16.mxu1 %vm4700_vm2, %v4052_v39 }
 0xf00   :  { %v1306_v42 = vmul.f32 %v4339_v41, %v4335_v16 }
 0xf02   :  { %3735 = vmatprep.mubr.msk.f32.mxu1 %vm247_vm1, %v1306_v42  ;;  %v3342_v42 = vld [vmem:[%s5376_s12 + $0x20] sm:$0xff] }
 0xf03   :  { %3736 = vmatmul.mubr.msk.f32.vlgmr.msra.gmra.mrb[8].mxu1 %vm247_vm1, %v1308_v43  ;;  %v3343_v43 = vld [vmem:[%s5376_s12 + $0x28] sm:$0xff] }
 0xf04   :  { %3742 = vmatprep.mubr.msk.f32.mxu1 %vm247_vm1, %v1397_v44  ;;  %v4070_v44 = vpack.c.bf16 %v3343_v43, %v3342_v42 }
 0xf07   :  { %4057 = vmatpush3.bf16.xpose.msk.msra.mxu1 %vm4700_vm2, %v4052_v39 }
 0xf0e   :  { %3743 = vmatmul.mubr.msk.f32.vlgmr.msra.gmra.mrb[10].mxu1 %vm247_vm1, %v1399_v45  ;;  %v3344_v45 = vld [vmem:[%s5376_s12 + $0x30] sm:$0xff] }
 0xfd6   :  { %v3737_v46 = vpop.f32.mrb[8].mxu1 }
 0xfd7   :  { %v1387_v47 = vpop.f32.mrb[9].mxu1 }
 0xfe1   :  { %v3744_v48 = vpop.f32.mrb[10].mxu1 }
 0xfe2   :  { %v1484_v49 = vadd.f32 %v3744_v48, %v4715_v57  ;;  %v1478_v50 = vpop.f32.mrb[11].mxu1 }
 0xfe3   :  { %v1479_v51 = vadd.f32 %v1478_v50, %v4717_v58 }
 0xfe4   :  { %v1490_v53 = vsel %vm247_vm1, %v1484_v49, -inf }
 0xfe5   :  { %1491 = vmax.xlane.f32.xlu0 %v1490_v53  ;;  %v1487_v54 = vsel %vm247_vm1, %v1479_v51, -inf }
 0xfe6   :  { %1488 = vmax.xlane.f32.xlu1 %v1487_v54 }
 0xff7   :  { %4272 = vrot.lane.b32.xlu1 %v4902_v11, %s4497_s3 }
0x1072   :  { %v1492_v55 = vpop.xlane.xlu0 %1491 }
0x1073   :  { %v1494_v56 = vsub.f32 %v1484_v49, %v1492_v55  ;;  %v1489_v59 = vpop.xlane.xlu1 %1488 }
0x1074   :  { %v1493_v60 = vsub.f32 %v1479_v51, %v1489_v59 }
0x1075   :  { %v1497_v61 = vmul.f32 1.442695, %v1494_v56  ;;  %v3340_v56 = vld [vmem:[%s5374_s10 + $0x1] ss:$0 sm:$0xff] }
0x1076   :  { %v1495_v62 = vmul.f32 1.442695, %v1493_v60 }
0x1077   :  { %v4273_v63 = vpop.permute.xlu1 %4272 }
0x1078   :  { %4340 = vpow2.f32 %v1495_v62  ;;  %v4275_v57 = vunpack.i.h.bf16 %v4273_v63  ;;  %v4274_v0 = vunpack.i.l.bf16 %v4273_v63  ;;  %v3341_v62 = vld [vmem:[%s5375_s11 + $0x1] ss:$0 sm:$0xff] }
0x1079   :  { %4342 = vpow2.f32 %v1497_v61 }
0x107a   :  { %v4058_v58 = vpack.c.bf16 %v4275_v57, %v4274_v0 }
0x107c   :  { %4059 = vmatprep.subr.bf16.mxu1 %v4058_v58 }
0x107d   :  { %4061 = vmatpush3.bf16.msra.mxu1 %v4058_v58 }
0x107e   :  { %4071 = vmatprep.subr.bf16.mxu1 %v4070_v44 }
0x1082   :  { %v4341_v1 = vpop.eup %4340 }
0x1083   :  { %v1499_v2 = vsel %vm247_vm1, %v4341_v1, 0.0  ;;  %v4343_v4 = vpop.eup %4342 }
0x1084   :  { %1500 = vadd.xlane.f32.xlu0 %v1499_v2  ;;  %v1502_v6 = vsel %vm247_vm1, %v4343_v4, 0.0  ;;  %v3351_v2 = vld [vmem:[%s5378_s14 + $0x88] sm:$0xff] }
0x1088   :  { %1503 = vadd.xlane.f32.xlu0 %v1502_v6  ;;  %v3352_v6 = vld [vmem:[%s5378_s14 + $0x90] sm:$0xff] }
0x1111   :  { %v1501_v7 = vpop.xlane.xlu0 %1500 }
0x1112   :  { %4344 = vrcp.f32 %v1501_v7  ;;  %v3353_v7 = vld [vmem:[%s5378_s14 + $0x98] sm:$0xff] }
0x1115   :  { %v1504_v8 = vpop.xlane.xlu0 %1503 }
0x1116   :  { %4346 = vrcp.f32 %v1504_v8  ;;  %v4082_v8 = vpack.c.bf16 %v3353_v7, %v3352_v6 }
0x111c   :  { %v4345_v11 = vpop.eup %4344 }
0x111d   :  { %v1506_v13 = vmul.f32 %v4345_v11, %v4341_v1  ;;  %v3350_v1 = vld [vmem:[%s5378_s14 + $0x80] sm:$0xff] }
0x111e   :  { %v3354_v11 = vld [vmem:[%s5378_s14 + $0xa0] sm:$0xff] }
0x111f   :  { %3749 = vmatprep.mubr.msk.f32.mxu1 %vm247_vm1, %v1506_v13  ;;  %v3355_v13 = vld [vmem:[%s5378_s14 + $0xa8] sm:$0xff] }
0x1120   :  { %v4347_v17 = vpop.eup %4346 }
0x1121   :  { %v1508_v18 = vmul.f32 %v4347_v17, %v4343_v4  ;;  %v4078_v4 = vpack.c.bf16 %v3351_v2, %v3350_v1  ;;  %v4086_v17 = vpack.c.bf16 %v3355_v13, %v3354_v11 }
0x1123   :  { %3750 = vmatmul.mubr.msk.f32.vlgmr.msra.gmra.mrb[12].mxu1 %vm247_vm1, %v1508_v18  ;;  %4079 = vmatprep.subr.bf16.mxu0 %v4078_v4  ;;  %v3356_v18 = vld [vmem:[%s5378_s14 + $0xb0] sm:$0xff] }
0x1124   :  { %4073 = vmatpush3.bf16.msra.mxu1 %v4070_v44  ;;  %v4090_v20 = vpack.c.bf16 %v3357_v19, %v3356_v18 }
0x11f6   :  { %v3751_v25 = vpop.f32.mrb[12].mxu1 }
0x11f7   :  { %1600 = vrot.lane.b32.xlu1 %v3751_v25, %s4499_s21  ;;  %v1587_v26 = vpop.f32.mrb[13].mxu1  ;;  %v3361_v25 = vld [vmem:[%s5378_s14 + $0xd8] sm:$0xff] }
0x11f8   :  { %1598 = vrot.lane.b32.xlu0 %v1587_v26, %s4499_s21  ;;  %v4098_v26 = vpack.c.bf16 %v3361_v25, %v3360_v3 }
0x1269   :  { %v1601_v27 = vpop.permute.xlu1 %1600 }
0x126a   :  { %v1599_v28 = vpop.permute.xlu0 %1598  ;;  %v1605_v21 = vsel %vm247_vm1, %v3737_v46, %v1601_v27  ;;  %v3345_v46 = vld [vmem:[%s5376_s12 + $0x38] sm:$0xff]  ;;  %v3362_v27 = vld [vmem:[%s5378_s14 + $0xe0] sm:$0xff] }
0x126b   :  { %v1604_v29 = vsel %vm247_vm1, %v1387_v47, %v1599_v28  ;;  %v4074_v47 = vpack.c.bf16 %v3345_v46, %v3344_v45  ;;  %v3363_v28 = vld [vmem:[%s5378_s14 + $0xe8] sm:$0xff] }
0x126c   :  { %3760 = vmatprep.mubr.msk.f32.mxu0 %vm105_vm0, %v1604_v29  ;;  %v4102_v29 = vpack.c.bf16 %v3363_v28, %v3362_v27 }
0x126d   :  { %3761 = vmatmul.mubr.msk.f32.vlgmr.msra.gmra.mrb[12].mxu0 %vm105_vm0, %v1605_v21  ;;  %4075 = vmatprep.subr.bf16.mxu1 %v4074_v47  ;;  %v3364_v21 = vld [vmem:[%s5378_s14 + $0xf0] sm:$0xff] }
0x126e   :  { %4077 = vmatpush3.bf16.msra.mxu1 %v4074_v47  ;;  %4081 = vmatpush3.bf16.msra.mxu0 %v4078_v4 }
0x126f   :  { %4083 = vmatprep.subr.bf16.mxu0 %v4082_v8 }
0x1272   :  { %4085 = vmatpush3.bf16.msra.mxu0 %v4082_v8 }
0x1273   :  { %4087 = vmatprep.subr.bf16.mxu0 %v4086_v17 }
0x1276   :  { %4089 = vmatpush3.bf16.msra.mxu0 %v4086_v17 }
0x1277   :  { %4091 = vmatprep.subr.bf16.mxu0 %v4090_v20 }
0x127a   :  { %4093 = vmatpush3.bf16.msra.mxu0 %v4090_v20 }
0x127b   :  { %4095 = vmatprep.subr.bf16.mxu0 %v4094_v5 }
0x127e   :  { %4097 = vmatpush3.bf16.msra.mxu0 %v4094_v5 }
0x127f   :  { %4099 = vmatprep.subr.bf16.mxu0 %v4098_v26 }
0x1282   :  { %4101 = vmatpush3.bf16.msra.mxu0 %v4098_v26 }
0x1283   :  { %4103 = vmatprep.subr.bf16.mxu0 %v4102_v29 }
0x1286   :  { %4105 = vmatpush3.bf16.msra.mxu0 %v4102_v29 }
0x1340   :  { %v3762_v15 = vpop.f32.mrb[12].mxu0 }
0x1341   :  { %v1693_v30 = vadd.f32 %v3762_v15, %v4866_v12  ;;  %v1683_v16 = vpop.f32.mrb[13].mxu0  ;;  %v3365_v15 = vld [vmem:[%s5378_s14 + $0xf8] sm:$0xff] }
0x1342   :  { %v1692_v14 = vadd.f32 %v1683_v16, %v4868_v31 }
0x1343   :  { %v4964_v32 = vadd.f32 %v3337_v22, %v1693_v30  ;;  %v3347_v30 = vld [vmem:[%s5377_s13 + $0x1] ss:$0 sm:$0xff] }
0x1344   :  { %v4966_v33 = vadd.f32 %v3337_v22, %v1692_v14  ;;  %v4106_v22 = vpack.c.bf16 %v3365_v15, %v3364_v21 }
0x1345   :  { %v1711_v34 = vsel %vm105_vm0, %v4964_v32, 0.0 }
0x1346   :  { %1712 = vadd.xlane.f32.xlu0 %v1711_v34  ;;  %v1708_v35 = vsel %vm105_vm0, %v4966_v33, 0.0  ;;  %4107 = vmatprep.subr.bf16.mxu0 %v4106_v22 }
0x1347   :  { %1709 = vadd.xlane.f32.xlu1 %v1708_v35  ;;  %4109 = vmatpush3.bf16.msra.mxu0 %v4106_v22 }
0x13d3   :  { %v1713_v36 = vpop.xlane.xlu0 %1712 }
0x13d4   :  { %v1715_v9 = vmul.f32 0.03125, %v1713_v36  ;;  %v1710_v10 = vpop.xlane.xlu1 %1709 }
0x13d5   :  { %v1714_v37 = vmul.f32 0.03125, %v1710_v10 }
0x13d6   :  { %v1717_v12 = vsub.f32 %v4964_v32, %v1715_v9 }
0x13d7   :  { %v1716_v31 = vsub.f32 %v4966_v33, %v1714_v37 }
0x13d8   :  { %v1719_v38 = vmul.f32 %v1717_v12, %v1717_v12 }
0x13d9   :  { %v1718_v39 = vmul.f32 %v1716_v31, %v1716_v31 }
0x13da   :  { %v1723_v40 = vsel %vm105_vm0, %v1719_v38, 0.0 }
0x13db   :  { %1724 = vadd.xlane.f32.xlu1 %v1723_v40  ;;  %v1720_v41 = vsel %vm105_vm0, %v1718_v39, 0.0 }
0x13dc   :  { %1721 = vadd.xlane.f32.xlu0 %v1720_v41 }
0x1468   :  { %v1725_v48 = vpop.xlane.xlu1 %1724 }
0x1469   :  { %v1727_v49 = vmul.f32 0.03125, %v1725_v48  ;;  %v1722_v50 = vpop.xlane.xlu0 %1721 }
0x146a   :  { %v1726_v51 = vmul.f32 0.03125, %v1722_v50 }
0x146b   :  { %v1729_v53 = vadd.f32 1e-05, %v1727_v49 }
0x146c   :  { %v1728_v54 = vadd.f32 1e-05, %v1726_v51 }
0x146d   :  { %4348 = vrsqrt.f32 %v1729_v53 }
0x146e   :  { %4350 = vrsqrt.f32 %v1728_v54 }
0x1477   :  { %v4349_v55 = vpop.eup %4348 }
0x1478   :  { %v4351_v59 = vpop.eup %4350  ;;  %v1733_v60 = vmul.f32 %v4349_v55, %v1717_v12 }
0x1479   :  { %v1732_v61 = vmul.f32 %v4351_v59, %v1716_v31 }
0x147a   :  { %v1741_v63 = vmul.f32 %v3340_v56, %v1733_v60 }
0x147b   :  { %v1740_v57 = vmul.f32 %v3340_v56, %v1732_v61 }
0x147c   :  { %v1749_v58 = vadd.f32 %v3341_v62, %v1741_v63 }
0x147d   :  { %v1748_v0 = vadd.f32 %v3341_v62, %v1740_v57 }
0x147f   :  { %3771 = vmatprep.mubr.msk.f32.mxu1 %vm105_vm0, %v1748_v0 }
0x1480   :  { %3772 = vmatmul.mubr.msk.f32.vlgmr.msra.gmra.mrb[14].mxu1 %vm105_vm0, %v1749_v58 }
0x1553   :  { %v3773_v16 = vpop.f32.mrb[14].mxu1 }
0x1554   :  { %v5047_v14 = vadd.f32 %v3773_v16, %v3347_v30  ;;  %v1835_v34 = vpop.f32.mrb[15].mxu1 }
0x1555   :  { %v5049_v35 = vadd.f32 %v3347_v30, %v1835_v34 }
0x1556   :  { %v5052_v36 = vmul.f32 0.70710677, %v5047_v14 }
0x1557   :  { %v5055_v9 = vmul.f32 0.70710677, %v5049_v35 }
0x1558   :  { %v1849_v10 = vand.u32 2147483647, %v5052_v36  ;;  %vm1909_vm5 = vcmp.ge.f32.partialorder %v5052_v36, 0.0  ;;  %v3367_v36 = vld [vmem:[%s5379_s15 + $0x1] ss:$0 sm:$0xff] }
0x1559   :  { %v1848_v37 = vand.u32 2147483647, %v5055_v9  ;;  %vm1908_vm6 = vcmp.ge.f32.partialorder %v5055_v9, 0.0 }
0x155a   :  { %v1851_v12 = vmul.f32 0.5, %v1849_v10  ;;  %v1895_v18 = vsub.f32 0.0, %v1849_v10 }
0x155b   :  { %v1850_v31 = vmul.f32 0.5, %v1848_v37  ;;  %v1894_v20 = vsub.f32 0.0, %v1848_v37 }
0x155c   :  { %v1853_v38 = vadd.f32 1.0, %v1851_v12  ;;  %v1897_v3 = vmul.f32 %v1895_v18, %v1849_v10  ;;  %v1845_v10 = vmul.f32 0.5, %v5047_v14 }
0x155d   :  { %v1852_v39 = vadd.f32 1.0, %v1850_v31  ;;  %v1896_v26 = vmul.f32 %v1894_v20, %v1848_v37  ;;  %v3371_v20 = vld [vmem:[%s5407_s26 + $0x2] ss:$0 sm:$0xff] }
0x155e   :  { %4352 = vrcp.f32 %v1853_v38 }
0x155f   :  { %4354 = vrcp.f32 %v1852_v39 }
0x1568   :  { %v4353_v40 = vpop.eup %4352 }
0x1569   :  { %v4355_v41 = vpop.eup %4354  ;;  %v1859_v42 = vmul.f32 0.17087276, %v4353_v40 }
0x156a   :  { %v1858_v43 = vmul.f32 0.17087276, %v4355_v41 }
0x156b   :  { %v1861_v44 = vadd.f32 -0.82215226, %v1859_v42 }
0x156c   :  { %v1860_v45 = vadd.f32 -0.82215226, %v1858_v43  ;;  %v1844_v43 = vmul.f32 0.5, %v5049_v35 }
0x156d   :  { %v1863_v46 = vmul.f32 %v4353_v40, %v1861_v44 }
0x156e   :  { %v1862_v47 = vmul.f32 %v4355_v41, %v1860_v45 }
0x156f   :  { %v1865_v48 = vadd.f32 1.4885159, %v1863_v46 }
0x1570   :  { %v1864_v49 = vadd.f32 1.4885159, %v1862_v47 }
0x1571   :  { %v1867_v50 = vmul.f32 %v4353_v40, %v1865_v48 }
0x1572   :  { %v1866_v51 = vmul.f32 %v4355_v41, %v1864_v49 }
0x1573   :  { %v1869_v53 = vadd.f32 -1.135204, %v1867_v50 }
0x1574   :  { %v1868_v54 = vadd.f32 -1.135204, %v1866_v51 }
0x1575   :  { %v1871_v55 = vmul.f32 %v4353_v40, %v1869_v53 }
0x1576   :  { %v1870_v56 = vmul.f32 %v4355_v41, %v1868_v54 }
0x1577   :  { %v1873_v59 = vadd.f32 0.27886808, %v1871_v55 }
0x1578   :  { %v1872_v60 = vadd.f32 0.27886808, %v1870_v56 }
0x1579   :  { %v1875_v61 = vmul.f32 %v4353_v40, %v1873_v59 }
0x157a   :  { %v1874_v62 = vmul.f32 %v4355_v41, %v1872_v60 }
0x157b   :  { %v1877_v63 = vadd.f32 -0.18628806, %v1875_v61  ;;  %v3372_v61 = vld [vmem:[%s5370_s6 + $0x40] sm:$0xff] }
0x157c   :  { %v1876_v57 = vadd.f32 -0.18628806, %v1874_v62  ;;  %v3373_v62 = vld [vmem:[%s5370_s6 + $0x48] sm:$0xff] }
0x157d   :  { %v1879_v0 = vmul.f32 %v4353_v40, %v1877_v63  ;;  %v4110_v63 = vpack.c.bf16 %v3373_v62, %v3372_v61 }
0x157e   :  { %v1878_v58 = vmul.f32 %v4355_v41, %v1876_v57  ;;  %v3374_v57 = vld [vmem:[%s5370_s6 + $0x50] sm:$0xff] }
0x157f   :  { %v1881_v1 = vadd.f32 0.09678418, %v1879_v0  ;;  %v3375_v0 = vld [vmem:[%s5370_s6 + $0x58] sm:$0xff]  ;;  %4111 = vmatprep.subr.bf16.mxu1 %v4110_v63 }
0x1580   :  { %v1880_v2 = vadd.f32 0.09678418, %v1878_v58  ;;  %v4114_v58 = vpack.c.bf16 %v3375_v0, %v3374_v57  ;;  %4113 = vmatpush3.bf16.msra.mxu1 %v4110_v63 }
0x1581   :  { %v1883_v4 = vmul.f32 %v4353_v40, %v1881_v1 }
0x1582   :  { %v1882_v6 = vmul.f32 %v4355_v41, %v1880_v2  ;;  %4115 = vmatprep.subr.bf16.mxu1 %v4114_v58 }
0x1583   :  { %v1885_v7 = vadd.f32 0.37409195, %v1883_v4 }
0x1584   :  { %v1884_v8 = vadd.f32 0.37409195, %v1882_v6  ;;  %4117 = vmatpush3.bf16.msra.mxu1 %v4114_v58 }
0x1585   :  { %v1887_v11 = vmul.f32 %v4353_v40, %v1885_v7 }
0x1586   :  { %v1886_v13 = vmul.f32 %v4355_v41, %v1884_v8 }
0x1587   :  { %v1889_v17 = vadd.f32 1.0000237, %v1887_v11 }
0x1588   :  { %v1888_v19 = vadd.f32 1.0000237, %v1886_v13  ;;  %v3370_v13 = vld [vmem:[%s5406_s28 + $0x2] ss:$0 sm:$0xff] }
0x1589   :  { %v1891_v23 = vmul.f32 %v4353_v40, %v1889_v17 }
0x158a   :  { %v1890_v24 = vmul.f32 %v4355_v41, %v1888_v19 }
0x158b   :  { %v1893_v5 = vadd.f32 -1.2655122, %v1891_v23 }
0x158c   :  { %v1892_v25 = vadd.f32 -1.2655122, %v1890_v24 }
0x158d   :  { %v1899_v27 = vadd.f32 %v1897_v3, %v1893_v5 }
0x158e   :  { %v1898_v28 = vadd.f32 %v1896_v26, %v1892_v25  ;;  %v3377_v25 = vld [vmem:[%s5371_s7 + $0x2] ss:$0 sm:$0xff] }
0x158f   :  { %v1902_v29 = vmul.f32 1.442695, %v1899_v27 }
0x1590   :  { %v1900_v21 = vmul.f32 1.442695, %v1898_v28 }
0x1591   :  { %4356 = vpow2.f32 %v1902_v29 }
0x1592   :  { %4358 = vpow2.f32 %v1900_v21 }
0x159b   :  { %v4357_v15 = vpop.eup %4356 }
0x159c   :  { %v4359_v22 = vpop.eup %4358  ;;  %v1905_v30 = vmul.f32 %v4357_v15, %v4353_v40 }
0x159d   :  { %v1904_v16 = vmul.f32 %v4359_v22, %v4355_v41 }
0x159e   :  { %v1907_v34 = vsub.f32 1.0, %v1905_v30 }
0x159f   :  { %v1906_v12 = vsub.f32 1.0, %v1904_v16 }
0x15a0   :  { %v1911_v31 = vsub.f32 0.0, %v1907_v34 }
0x15a1   :  { %v1910_v38 = vsub.f32 0.0, %v1906_v12 }
0x15a2   :  { %v1913_v39 = vsel %vm1909_vm5, %v1907_v34, %v1911_v31  ;;  %v4392_v31 = vld [vmem:[#allocation2] sm:$0xff] }
0x15a3   :  { %v1915_v37 = vadd.f32 1.0, %v1913_v39  ;;  %v1912_v42 = vsel %vm1908_vm6, %v1906_v12, %v1910_v38  ;;  %v4393_v39 = vld [vmem:[#allocation2 + $0x8] sm:$0xff] }
0x15a4   :  { %v1914_v44 = vadd.f32 1.0, %v1912_v42 }
0x15a5   :  { %v1917_v45 = vmul.f32 %v1915_v37, %v1845_v10 }
0x15a6   :  { %v1916_v46 = vmul.f32 %v1914_v44, %v1844_v43 }
0x15a8   :  { %3806 = vmatprep.mubr.f32.mxu0 %v1916_v46 }
0x15a9   :  { %3807 = vmatmul.mubr.f32.vlgmr.msra.gmra.mrb[14].mxu0 %v1917_v45 }
0x167c   :  { %v3808_v40 = vpop.f32.mrb[14].mxu0 }
0x167d   :  { %v2011_v41 = vadd.f32 %v3808_v40, %v4964_v32  ;;  %v2001_v47 = vpop.f32.mrb[15].mxu0 }
0x167e   :  { %v2010_v9 = vadd.f32 %v2001_v47, %v4966_v33 }
0x167f   :  { %v5068_v14 = vadd.f32 %v3367_v36, %v2011_v41 }
0x1680   :  { %v5070_v48 = vadd.f32 %v3367_v36, %v2010_v9 }
0x1681   :  { %v2029_v35 = vsel %vm105_vm0, %v5068_v14, 0.0 }
0x1682   :  { %2030 = vadd.xlane.f32.xlu1 %v2029_v35  ;;  %v2026_v49 = vsel %vm105_vm0, %v5070_v48, 0.0 }
0x1683   :  { %2027 = vadd.xlane.f32.xlu0 %v2026_v49 }
0x170f   :  { %v2031_v50 = vpop.xlane.xlu1 %2030 }
0x1710   :  { %v2033_v51 = vmul.f32 0.03125, %v2031_v50  ;;  %v2028_v53 = vpop.xlane.xlu0 %2027 }
0x1711   :  { %v2032_v54 = vmul.f32 0.03125, %v2028_v53 }
0x1712   :  { %v2035_v32 = vsub.f32 %v5068_v14, %v2033_v51 }
0x1713   :  { %v2034_v33 = vsub.f32 %v5070_v48, %v2032_v54 }
0x1714   :  { %v2037_v55 = vmul.f32 %v2035_v32, %v2035_v32 }
0x1715   :  { %v2036_v56 = vmul.f32 %v2034_v33, %v2034_v33 }
0x1716   :  { %v2041_v59 = vsel %vm105_vm0, %v2037_v55, 0.0 }
0x1717   :  { %2042 = vadd.xlane.f32.xlu1 %v2041_v59  ;;  %v2038_v60 = vsel %vm105_vm0, %v2036_v56, 0.0 }
0x1718   :  { %2039 = vadd.xlane.f32.xlu0 %v2038_v60 }
0x17a4   :  { %v2043_v1 = vpop.xlane.xlu1 %2042 }
0x17a5   :  { %v2045_v2 = vmul.f32 0.03125, %v2043_v1  ;;  %v2040_v4 = vpop.xlane.xlu0 %2039 }
0x17a6   :  { %v2044_v6 = vmul.f32 0.03125, %v2040_v4 }
0x17a7   :  { %v2047_v7 = vadd.f32 1e-05, %v2045_v2 }
0x17a8   :  { %v2046_v8 = vadd.f32 1e-05, %v2044_v6 }
0x17a9   :  { %4360 = vrsqrt.f32 %v2047_v7 }
0x17aa   :  { %4362 = vrsqrt.f32 %v2046_v8 }
0x17b3   :  { %v4361_v11 = vpop.eup %4360 }
0x17b4   :  { %v4363_v17 = vpop.eup %4362  ;;  %v2051_v18 = vmul.f32 %v4361_v11, %v2035_v32 }
0x17b5   :  { %v2050_v19 = vmul.f32 %v4363_v17, %v2034_v33 }
0x17b6   :  { %v2059_v23 = vmul.f32 %v3370_v13, %v2051_v18 }
0x17b7   :  { %v2058_v24 = vmul.f32 %v3370_v13, %v2050_v19 }
0x17b8   :  { %v2067_v3 = vadd.f32 %v3371_v20, %v2059_v23 }
0x17b9   :  { %v2066_v5 = vadd.f32 %v3371_v20, %v2058_v24 }
0x17bb   :  { %3817 = vmatprep.mubr.msk.f32.mxu1 %vm105_vm0, %v2066_v5 }
0x17bc   :  { %3818 = vmatmul.mubr.msk.f32.vlgmr.msra.gmra.mrb[16].mxu1 %vm105_vm0, %v2067_v3 }
0x188f   :  { %v3819_v26 = vpop.f32.mrb[16].mxu1 }
0x1890   :  { %v2159_v27 = vadd.f32 %v3819_v26, %v3377_v25  ;;  %v2153_v28 = vpop.f32.mrb[17].mxu1 }
0x1891   :  { %v2154_v29 = vadd.f32 %v3377_v25, %v2153_v28 }
0x1893   :  { %3824 = vmatprep.mubr.msk.f32.mxu1 %vm247_vm1, %v2154_v29  ;;  %v5104_v21 = vpack.i.bf16 %v2159_v27, %v2154_v29 }
0x1895   :  { %4277 = vrot.lane.b32.xlu0 %v5104_v21, %s4495_s5 }
0x1899   :  { %4287 = vrot.lane.b32.xlu0 %v5104_v21, %s4494_s30 }
0x189d   :  { %2360 = vrot.lane.b32.xlu0 %v2154_v29, %s4496_s25 }
0x18a1   :  { %2362 = vrot.lane.b32.xlu0 %v2159_v27, %s4496_s25 }
0x1907   :  { %v4278_v15 = vpop.permute.xlu0 %4277 }
0x1908   :  { %v4280_v22 = vunpack.i.h.bf16 %v4278_v15  ;;  %v4279_v30 = vunpack.i.l.bf16 %v4278_v15 }
0x190a   :  { %v4118_v16 = vpack.c.bf16 %v4280_v22, %v4279_v30 }
0x190b   :  { %v4288_v51 = vpop.permute.xlu0 %4287 }
0x190c   :  { %4120 = vmatprep.subr.msk.bf16.mxu1 %vm4700_vm2, %v4118_v16  ;;  %v4290_v54 = vunpack.i.h.bf16 %v4288_v51  ;;  %v4289_v32 = vunpack.i.l.bf16 %v4288_v51 }
0x190d   :  { %4123 = vmatpush3.bf16.xpose.msk.msra.mxu1 %vm4700_vm2, %v4118_v16 }
0x190e   :  { %v4128_v59 = vpack.c.bf16 %v4290_v54, %v4289_v32 }
0x190f   :  { %v2361_v57 = vpop.permute.xlu0 %2360 }
0x1913   :  { %v2363_v0 = vpop.permute.xlu0 %2362 }
0x1914   :  { %3825 = vmatmul.mubr.msk.f32.vlgmr.msra.gmra.mrb[18].mxu1 %vm247_vm1, %v2159_v27 }
0x19e7   :  { %v3826_v34 = vpop.f32.mrb[18].mxu1 }
0x19e8   :  { %v2242_v12 = vpop.f32.mrb[19].mxu1  ;;  %v2248_v10 = vadd.f32 %v4393_v39, %v3826_v34  ;;  %v3392_v34 = vld [vmem:[%s5372_s8 + $0x40] sm:$0xff] }
0x19e9   :  { %v2243_v38 = vadd.f32 %v4392_v31, %v2242_v12  ;;  %v3393_v12 = vld [vmem:[%s5372_s8 + $0x48] sm:$0xff] }
0x19ea   :  { %v2254_v42 = vsel %vm247_vm1, %v2248_v10, -inf }
0x19eb   :  { %v2251_v37 = vsel %vm247_vm1, %v2243_v38, -inf }
0x19ec   :  { %2252 = vmax.xlane.f32.xlu1 %v2251_v37 }
0x19f0   :  { %2255 = vmax.xlane.f32.xlu1 %v2254_v42 }
0x1a79   :  { %v2253_v43 = vpop.xlane.xlu1 %2252 }
0x1a7a   :  { %v2257_v44 = vsub.f32 %v2243_v38, %v2253_v43  ;;  %v4138_v38 = vpack.c.bf16 %v3393_v12, %v3392_v34  ;;  %v3420_v12 = vld [vmem:[%s5378_s14 + $0x140] sm:$0xff] }
0x1a7c   :  { %v2259_v40 = vmul.f32 1.442695, %v2257_v44  ;;  %4139 = vmatprep.subr.bf16.mxu0 %v4138_v38 }
0x1a7d   :  { %v2256_v45 = vpop.xlane.xlu1 %2255  ;;  %4141 = vmatpush3.bf16.msra.mxu0 %v4138_v38 }
0x1a7e   :  { %v2258_v46 = vsub.f32 %v2248_v10, %v2256_v45 }
0x1a80   :  { %v2261_v36 = vmul.f32 1.442695, %v2258_v46 }
0x1a82   :  { %4364 = vpow2.f32 %v2261_v36  ;;  %v3399_v36 = vld [vmem:[%s5373_s9 + $0x2] ss:$0 sm:$0xff] }
0x1a83   :  { %4366 = vpow2.f32 %v2259_v40 }
0x1a8c   :  { %v4365_v41 = vpop.eup %4364 }
0x1a8d   :  { %v2266_v47 = vsel %vm247_vm1, %v4365_v41, 0.0  ;;  %v4367_v9 = vpop.eup %4366 }
0x1a8e   :  { %2267 = vadd.xlane.f32.xlu1 %v2266_v47  ;;  %v2263_v35 = vsel %vm247_vm1, %v4367_v9, 0.0 }
0x1a92   :  { %2264 = vadd.xlane.f32.xlu1 %v2263_v35 }
0x1aa3   :  { %4282 = vrot.lane.b32.xlu1 %v5104_v21, %s4498_s1 }
0x1b1b   :  { %v2268_v49 = vpop.xlane.xlu1 %2267 }
0x1b1c   :  { %4368 = vrcp.f32 %v2268_v49 }
0x1b1f   :  { %v2265_v50 = vpop.xlane.xlu1 %2264 }
0x1b20   :  { %4370 = vrcp.f32 %v2265_v50 }
0x1b23   :  { %v4283_v53 = vpop.permute.xlu1 %4282 }
0x1b24   :  { %v4285_v33 = vunpack.i.h.bf16 %v4283_v53  ;;  %v4284_v55 = vunpack.i.l.bf16 %v4283_v53 }
0x1b26   :  { %v4124_v56 = vpack.c.bf16 %v4285_v33, %v4284_v55  ;;  %v4369_v60 = vpop.eup %4368 }
0x1b27   :  { %v2272_v63 = vmul.f32 %v4369_v60, %v4365_v41 }
0x1b28   :  { %4125 = vmatprep.subr.bf16.mxu1 %v4124_v56 }
0x1b29   :  { %4127 = vmatpush3.bf16.msra.mxu1 %v4124_v56 }
0x1b2a   :  { %v4371_v61 = vpop.eup %4370  ;;  %4130 = vmatprep.subr.msk.bf16.mxu1 %vm4700_vm2, %v4128_v59 }
0x1b2b   :  { %v2270_v62 = vmul.f32 %v4371_v61, %v4367_v9  ;;  %v3404_v61 = vld [vmem:[%s5376_s12 + $0x40] sm:$0xff] }
0x1b2d   :  { %3831 = vmatprep.mubr.msk.f32.mxu1 %vm247_vm1, %v2270_v62  ;;  %v3405_v62 = vld [vmem:[%s5376_s12 + $0x48] sm:$0xff] }
0x1b2e   :  { %3832 = vmatmul.mubr.msk.f32.vlgmr.msra.gmra.mrb[20].mxu1 %vm247_vm1, %v2272_v63  ;;  %v4146_v63 = vpack.c.bf16 %v3405_v62, %v3404_v61 }
0x1b2f   :  { %3838 = vmatprep.mubr.msk.f32.mxu1 %vm247_vm1, %v2361_v57  ;;  %v3406_v57 = vld [vmem:[%s5376_s12 + $0x50] sm:$0xff] }
0x1b32   :  { %4133 = vmatpush3.bf16.xpose.msk.msra.mxu1 %vm4700_vm2, %v4128_v59 }
0x1b39   :  { %3839 = vmatmul.mubr.msk.f32.vlgmr.msra.gmra.mrb[22].mxu1 %vm247_vm1, %v2363_v0  ;;  %v3407_v0 = vld [vmem:[%s5376_s12 + $0x58] sm:$0xff] }
0x1c01   :  { %v3833_v58 = vpop.f32.mrb[20].mxu1 }
0x1c02   :  { %v2351_v1 = vpop.f32.mrb[21].mxu1 }
0x1c0c   :  { %v3840_v2 = vpop.f32.mrb[22].mxu1 }
0x1c0d   :  { %v2448_v4 = vadd.f32 %v4393_v39, %v3840_v2  ;;  %v2442_v6 = vpop.f32.mrb[23].mxu1  ;;  %v3395_v39 = vld [vmem:[%s5372_s8 + $0x58] sm:$0xff] }
0x1c0e   :  { %v2443_v7 = vadd.f32 %v4392_v31, %v2442_v6  ;;  %v3394_v31 = vld [vmem:[%s5372_s8 + $0x50] sm:$0xff] }
0x1c0f   :  { %v2454_v8 = vsel %vm247_vm1, %v2448_v4, -inf  ;;  %v4142_v10 = vpack.c.bf16 %v3395_v39, %v3394_v31  ;;  %v3421_v31 = vld [vmem:[%s5378_s14 + $0x148] sm:$0xff]  ;;  %v3422_v39 = vld [vmem:[%s5378_s14 + $0x150] sm:$0xff] }
0x1c10   :  { %2455 = vmax.xlane.f32.xlu0 %v2454_v8  ;;  %v2451_v11 = vsel %vm247_vm1, %v2443_v7, -inf  ;;  %v4170_v38 = vpack.c.bf16 %v3421_v31, %v3420_v12 }
0x1c11   :  { %2452 = vmax.xlane.f32.xlu1 %v2451_v11  ;;  %4143 = vmatprep.subr.bf16.mxu0 %v4142_v10 }
0x1c12   :  { %4145 = vmatpush3.bf16.msra.mxu0 %v4142_v10  ;;  %v3423_v10 = vld [vmem:[%s5378_s14 + $0x158] sm:$0xff] }
0x1c22   :  { %4292 = vrot.lane.b32.xlu1 %v5104_v21, %s4497_s3 }
0x1c9d   :  { %v2456_v52 = vpop.xlane.xlu0 %2455 }
0x1c9e   :  { %v2458_v13 = vsub.f32 %v2448_v4, %v2456_v52  ;;  %v2453_v17 = vpop.xlane.xlu1 %2452  ;;  %v3402_v52 = vld [vmem:[%s5374_s10 + $0x2] ss:$0 sm:$0xff] }
0x1c9f   :  { %v2457_v18 = vsub.f32 %v2443_v7, %v2453_v17 }
0x1ca0   :  { %v2461_v19 = vmul.f32 1.442695, %v2458_v13 }
0x1ca1   :  { %v2459_v20 = vmul.f32 1.442695, %v2457_v18 }
0x1ca2   :  { %v4293_v23 = vpop.permute.xlu1 %4292 }
0x1ca3   :  { %4372 = vpow2.f32 %v2459_v20  ;;  %v4295_v24 = vunpack.i.h.bf16 %v4293_v23  ;;  %v4294_v5 = vunpack.i.l.bf16 %v4293_v23 }
0x1ca4   :  { %4374 = vpow2.f32 %v2461_v19  ;;  %v3403_v19 = vld [vmem:[%s5375_s11 + $0x2] ss:$0 sm:$0xff] }
0x1ca5   :  { %v4134_v3 = vpack.c.bf16 %v4295_v24, %v4294_v5 }
0x1ca7   :  { %4135 = vmatprep.subr.bf16.mxu1 %v4134_v3 }
0x1ca8   :  { %4137 = vmatpush3.bf16.msra.mxu1 %v4134_v3  ;;  %v3412_v3 = vld [vmem:[%s5378_s14 + $0x100] sm:$0xff] }
0x1ca9   :  { %4147 = vmatprep.subr.bf16.mxu1 %v4146_v63 }
0x1cad   :  { %v4373_v25 = vpop.eup %4372 }
0x1cae   :  { %v2463_v26 = vsel %vm247_vm1, %v4373_v25, 0.0  ;;  %v4375_v27 = vpop.eup %4374 }
0x1caf   :  { %2464 = vadd.xlane.f32.xlu0 %v2463_v26  ;;  %v2466_v28 = vsel %vm247_vm1, %v4375_v27, 0.0 }
0x1cb3   :  { %2467 = vadd.xlane.f32.xlu0 %v2466_v28  ;;  %v3415_v28 = vld [vmem:[%s5378_s14 + $0x118] sm:$0xff] }
0x1d3c   :  { %v2465_v29 = vpop.xlane.xlu0 %2464 }
0x1d3d   :  { %4376 = vrcp.f32 %v2465_v29 }
0x1d40   :  { %v2468_v21 = vpop.xlane.xlu0 %2467 }
0x1d41   :  { %4378 = vrcp.f32 %v2468_v21  ;;  %v3416_v21 = vld [vmem:[%s5378_s14 + $0x120] sm:$0xff] }
0x1d47   :  { %v4377_v15 = vpop.eup %4376 }
0x1d48   :  { %v2470_v22 = vmul.f32 %v4377_v15, %v4373_v25  ;;  %v3413_v25 = vld [vmem:[%s5378_s14 + $0x108] sm:$0xff] }
0x1d49   :  { %v4154_v26 = vpack.c.bf16 %v3413_v25, %v3412_v3  ;;  %v3417_v15 = vld [vmem:[%s5378_s14 + $0x128] sm:$0xff] }
0x1d4a   :  { %3845 = vmatprep.mubr.msk.f32.mxu1 %vm247_vm1, %v2470_v22  ;;  %v4162_v22 = vpack.c.bf16 %v3417_v15, %v3416_v21 }
0x1d4b   :  { %v4379_v30 = vpop.eup %4378  ;;  %4155 = vmatprep.subr.bf16.mxu0 %v4154_v26 }
0x1d4c   :  { %v2472_v16 = vmul.f32 %v4379_v30, %v4375_v27  ;;  %v3414_v27 = vld [vmem:[%s5378_s14 + $0x110] sm:$0xff] }
0x1d4d   :  { %v4158_v29 = vpack.c.bf16 %v3415_v28, %v3414_v27  ;;  %v3418_v30 = vld [vmem:[%s5378_s14 + $0x130] sm:$0xff] }
0x1d4e   :  { %3846 = vmatmul.mubr.msk.f32.vlgmr.msra.gmra.mrb[24].mxu1 %vm247_vm1, %v2472_v16  ;;  %v3419_v16 = vld [vmem:[%s5378_s14 + $0x138] sm:$0xff] }
0x1d4f   :  { %4149 = vmatpush3.bf16.msra.mxu1 %v4146_v63  ;;  %v4166_v34 = vpack.c.bf16 %v3419_v16, %v3418_v30 }
0x1e21   :  { %v3847_v37 = vpop.f32.mrb[24].mxu1 }
0x1e22   :  { %2564 = vrot.lane.b32.xlu1 %v3847_v37, %s4499_s21  ;;  %v2551_v42 = vpop.f32.mrb[25].mxu1  ;;  %v4174_v37 = vpack.c.bf16 %v3423_v10, %v3422_v39 }
0x1e23   :  { %2562 = vrot.lane.b32.xlu0 %v2551_v42, %s4499_s21  ;;  %v3424_v42 = vld [vmem:[%s5378_s14 + $0x160] sm:$0xff] }
0x1e94   :  { %v2565_v43 = vpop.permute.xlu1 %2564 }
0x1e95   :  { %v2563_v44 = vpop.permute.xlu0 %2562  ;;  %v2569_v46 = vsel %vm247_vm1, %v3833_v58, %v2565_v43  ;;  %v4150_v58 = vpack.c.bf16 %v3407_v0, %v3406_v57  ;;  %v3425_v43 = vld [vmem:[%s5378_s14 + $0x168] sm:$0xff] }
0x1e96   :  { %v2568_v45 = vsel %vm247_vm1, %v2351_v1, %v2563_v44  ;;  %v4178_v44 = vpack.c.bf16 %v3425_v43, %v3424_v42 }
0x1e97   :  { %3856 = vmatprep.mubr.msk.f32.mxu0 %vm105_vm0, %v2568_v45  ;;  %4151 = vmatprep.subr.bf16.mxu1 %v4150_v58  ;;  %v3426_v45 = vld [vmem:[%s5378_s14 + $0x170] sm:$0xff] }
0x1e98   :  { %3857 = vmatmul.mubr.msk.f32.vlgmr.msra.gmra.mrb[16].mxu0 %vm105_vm0, %v2569_v46  ;;  %4153 = vmatpush3.bf16.msra.mxu1 %v4150_v58  ;;  %v3427_v46 = vld [vmem:[%s5378_s14 + $0x178] sm:$0xff] }
0x1e99   :  { %4157 = vmatpush3.bf16.msra.mxu0 %v4154_v26 }
0x1e9a   :  { %4159 = vmatprep.subr.bf16.mxu0 %v4158_v29 }
0x1e9d   :  { %4161 = vmatpush3.bf16.msra.mxu0 %v4158_v29 }
0x1e9e   :  { %4163 = vmatprep.subr.bf16.mxu0 %v4162_v22 }
0x1ea1   :  { %4165 = vmatpush3.bf16.msra.mxu0 %v4162_v22 }
0x1ea2   :  { %4167 = vmatprep.subr.bf16.mxu0 %v4166_v34 }
0x1ea5   :  { %4169 = vmatpush3.bf16.msra.mxu0 %v4166_v34 }
0x1ea6   :  { %4171 = vmatprep.subr.bf16.mxu0 %v4170_v38 }
0x1ea9   :  { %4173 = vmatpush3.bf16.msra.mxu0 %v4170_v38 }
0x1eaa   :  { %4175 = vmatprep.subr.bf16.mxu0 %v4174_v37 }
0x1ead   :  { %4177 = vmatpush3.bf16.msra.mxu0 %v4174_v37 }
0x1eae   :  { %4179 = vmatprep.subr.bf16.mxu0 %v4178_v44 }
0x1eb1   :  { %4181 = vmatpush3.bf16.msra.mxu0 %v4178_v44 }
0x1f6b   :  { %v3858_v40 = vpop.f32.mrb[16].mxu0 }
0x1f6c   :  { %v2657_v41 = vadd.f32 %v3858_v40, %v5068_v14  ;;  %v2647_v47 = vpop.f32.mrb[17].mxu0  ;;  %v4182_v40 = vpack.c.bf16 %v3427_v46, %v3426_v45 }
0x1f6d   :  { %v2656_v9 = vadd.f32 %v2647_v47, %v5070_v48 }
0x1f6e   :  { %v5162_v35 = vadd.f32 %v3399_v36, %v2657_v41  ;;  %4183 = vmatprep.subr.bf16.mxu0 %v4182_v40  ;;  %v2987_v41 = vld [vmem:[%s5380_s16 + $0x8] sm:$0xff] }
0x1f6f   :  { %v5164_v49 = vadd.f32 %v3399_v36, %v2656_v9  ;;  %4185 = vmatpush3.bf16.msra.mxu0 %v4182_v40  ;;  %v2986_v36 = vld [vmem:[%s5380_s16] sm:$0xff] }
0x1f70   :  { %v2675_v50 = vsel %vm105_vm0, %v5162_v35, 0.0  ;;  %v4186_v47 = vpack.c.bf16 %v2987_v41, %v2986_v36  ;;  %v3409_v9 = vld [vmem:[%s5377_s13 + $0x2] ss:$0 sm:$0xff] }
0x1f71   :  { %2676 = vadd.xlane.f32.xlu0 %v2675_v50  ;;  %v2672_v51 = vsel %vm105_vm0, %v5164_v49, 0.0 }
0x1f72   :  { %2673 = vadd.xlane.f32.xlu1 %v2672_v51  ;;  %4187 = vmatprep.subr.bf16.mxu1 %v4186_v47 }
0x1ffe   :  { %v2677_v53 = vpop.xlane.xlu0 %2676 }
0x1fff   :  { %v2679_v54 = vmul.f32 0.03125, %v2677_v53  ;;  %v2674_v32 = vpop.xlane.xlu1 %2673 }
0x2000   :  { %v2678_v33 = vmul.f32 0.03125, %v2674_v32 }
0x2001   :  { %v2681_v14 = vsub.f32 %v5162_v35, %v2679_v54 }
0x2002   :  { %v2680_v48 = vsub.f32 %v5164_v49, %v2678_v33 }
0x2003   :  { %v2683_v55 = vmul.f32 %v2681_v14, %v2681_v14 }
0x2004   :  { %v2682_v56 = vmul.f32 %v2680_v48, %v2680_v48 }
0x2005   :  { %v2687_v59 = vsel %vm105_vm0, %v2683_v55, 0.0 }
0x2006   :  { %2688 = vadd.xlane.f32.xlu1 %v2687_v59  ;;  %v2684_v60 = vsel %vm105_vm0, %v2682_v56, 0.0 }
0x2007   :  { %2685 = vadd.xlane.f32.xlu0 %v2684_v60 }
0x2093   :  { %v2689_v1 = vpop.xlane.xlu1 %2688 }
0x2094   :  { %v2691_v2 = vmul.f32 0.03125, %v2689_v1  ;;  %v2686_v4 = vpop.xlane.xlu0 %2685 }
0x2095   :  { %v2690_v6 = vmul.f32 0.03125, %v2686_v4 }
0x2096   :  { %v2693_v7 = vadd.f32 1e-05, %v2691_v2 }
0x2097   :  { %v2692_v8 = vadd.f32 1e-05, %v2690_v6 }
0x2098   :  { %4380 = vrsqrt.f32 %v2693_v7 }
0x2099   :  { %4382 = vrsqrt.f32 %v2692_v8 }
0x20a2   :  { %v4381_v11 = vpop.eup %4380 }
0x20a3   :  { %v4383_v13 = vpop.eup %4382  ;;  %v2697_v17 = vmul.f32 %v4381_v11, %v2681_v14 }
0x20a4   :  { %v2696_v18 = vmul.f32 %v4383_v13, %v2680_v48 }
0x20a5   :  { %v2705_v20 = vmul.f32 %v3402_v52, %v2697_v17 }
0x20a6   :  { %v2704_v23 = vmul.f32 %v3402_v52, %v2696_v18 }
0x20a7   :  { %v2713_v5 = vadd.f32 %v3403_v19, %v2705_v20 }
0x20a8   :  { %v2712_v24 = vadd.f32 %v3403_v19, %v2704_v23 }
0x20aa   :  { %3867 = vmatprep.mubr.msk.f32.mxu1 %vm105_vm0, %v2712_v24 }
0x20ab   :  { %3868 = vmatmul.mubr.msk.f32.vlgmr.msra.gmra.mrb[26].mxu1 %vm105_vm0, %v2713_v5 }
0x20ac   :  { %4189 = vmatpush3.bf16.msra.mxu1 %v4186_v47 }
0x217e   :  { %v3869_v50 = vpop.f32.mrb[26].mxu1 }
0x217f   :  { %v5251_v51 = vadd.f32 %v3869_v50, %v3409_v9  ;;  %v2799_v53 = vpop.f32.mrb[27].mxu1 }
0x2180   :  { %v5253_v54 = vadd.f32 %v3409_v9, %v2799_v53 }
0x2181   :  { %v5256_v32 = vmul.f32 0.70710677, %v5251_v51 }
0x2182   :  { %v5259_v33 = vmul.f32 0.70710677, %v5253_v54 }
0x2183   :  { %v2813_v14 = vand.u32 2147483647, %v5256_v32  ;;  %vm2873_vm7 = vcmp.ge.f32.partialorder %v5256_v32, 0.0  ;;  %v2989_v32 = vld [vmem:[%s5380_s16 + $0x18] sm:$0xff] }
0x2184   :  { %v2812_v48 = vand.u32 2147483647, %v5259_v33  ;;  %vm2872_vm8 = vcmp.ge.f32.partialorder %v5259_v33, 0.0 }
0x2185   :  { %v2815_v55 = vmul.f32 0.5, %v2813_v14  ;;  %v2859_v34 = vsub.f32 0.0, %v2813_v14 }
0x2186   :  { %v2814_v56 = vmul.f32 0.5, %v2812_v48  ;;  %v2858_v31 = vsub.f32 0.0, %v2812_v48 }
0x2187   :  { %v2817_v59 = vadd.f32 1.0, %v2815_v55  ;;  %v2861_v37 = vmul.f32 %v2859_v34, %v2813_v14  ;;  %v2809_v14 = vmul.f32 0.5, %v5251_v51  ;;  %v3165_v34 = vld [vmem:[%s5382_s18 + $0x58] sm:$0xff] }
0x2188   :  { %v2816_v60 = vadd.f32 1.0, %v2814_v56  ;;  %v2860_v43 = vmul.f32 %v2858_v31, %v2812_v48  ;;  %v3166_v31 = vld [vmem:[%s5382_s18 + $0x60] sm:$0xff] }
0x2189   :  { %4384 = vrcp.f32 %v2817_v59 }
0x218a   :  { %4386 = vrcp.f32 %v2816_v60 }
0x2193   :  { %v4385_v61 = vpop.eup %4384 }
0x2194   :  { %v4387_v62 = vpop.eup %4386  ;;  %v2823_v63 = vmul.f32 0.17087276, %v4385_v61 }
0x2195   :  { %v2822_v57 = vmul.f32 0.17087276, %v4387_v62 }
0x2196   :  { %v2825_v0 = vadd.f32 -0.82215226, %v2823_v63  ;;  %v2808_v63 = vmul.f32 0.5, %v5253_v54  ;;  %v3429_v54 = vld [vmem:[%s5379_s15 + $0x2] ss:$0 sm:$0xff] }
0x2197   :  { %v2824_v58 = vadd.f32 -0.82215226, %v2822_v57 }
0x2198   :  { %v2827_v1 = vmul.f32 %v4385_v61, %v2825_v0 }
0x2199   :  { %v2826_v2 = vmul.f32 %v4387_v62, %v2824_v58 }
0x219a   :  { %v2829_v4 = vadd.f32 1.4885159, %v2827_v1 }
0x219b   :  { %v2828_v6 = vadd.f32 1.4885159, %v2826_v2 }
0x219c   :  { %v2831_v7 = vmul.f32 %v4385_v61, %v2829_v4 }
0x219d   :  { %v2830_v8 = vmul.f32 %v4387_v62, %v2828_v6 }
0x219e   :  { %v2833_v11 = vadd.f32 -1.135204, %v2831_v7  ;;  %v4500_v7 = vmov 0.0|0.0  }
0x219f   :  { %v2832_v52 = vadd.f32 -1.135204, %v2830_v8  ;;  %v4502_v8 = vmov 0.0  }
0x21a0   :  { %v2835_v13 = vmul.f32 %v4385_v61, %v2833_v11 }
0x21a1   :  { %v2834_v17 = vmul.f32 %v4387_v62, %v2832_v52 }
0x21a2   :  { %v2837_v18 = vadd.f32 0.27886808, %v2835_v13 }
0x21a3   :  { %v2836_v19 = vadd.f32 0.27886808, %v2834_v17  ;;  %v3154_v17 = vld [vmem:[%s5382_s18] sm:$0xff] }
0x21a4   :  { %v2839_v20 = vmul.f32 %v4385_v61, %v2837_v18  ;;  %v3155_v18 = vld [vmem:[%s5382_s18 + $0x8] sm:$0xff] }
0x21a5   :  { %v2838_v23 = vmul.f32 %v4387_v62, %v2836_v19 }
0x21a6   :  { %v2841_v24 = vadd.f32 -0.18628806, %v2839_v20  ;;  %v3080_v20 = vld [vmem:[#allocation5] sm:$0x3] }
0x21a7   :  { %v2840_v5 = vadd.f32 -0.18628806, %v2838_v23  ;;  %v4198_v23 = vpack.c.bf16 %v3155_v18, %v3154_v17 }
0x21a8   :  { %v2843_v3 = vmul.f32 %v4385_v61, %v2841_v24  ;;  %v3156_v24 = vld [vmem:[%s5382_s18 + $0x10] sm:$0xff] }
0x21a9   :  { %v2842_v25 = vmul.f32 %v4387_v62, %v2840_v5  ;;  %v3157_v5 = vld [vmem:[%s5382_s18 + $0x18] sm:$0xff] }
0x21aa   :  { %v2845_v26 = vadd.f32 0.09678418, %v2843_v3  ;;  %v4201_v3 = vpack.c.bf16 %v3157_v5, %v3156_v24 }
0x21ab   :  { %v2844_v27 = vadd.f32 0.09678418, %v2842_v25  ;;  %v3158_v25 = vld [vmem:[%s5382_s18 + $0x20] sm:$0xff] }
0x21ac   :  { %v2847_v28 = vmul.f32 %v4385_v61, %v2845_v26  ;;  %v3159_v26 = vld [vmem:[%s5382_s18 + $0x28] sm:$0xff] }
0x21ad   :  { %v2846_v29 = vmul.f32 %v4387_v62, %v2844_v27  ;;  %v4204_v27 = vpack.c.bf16 %v3159_v26, %v3158_v25 }
0x21ae   :  { %v2849_v21 = vadd.f32 0.37409195, %v2847_v28  ;;  %v3160_v28 = vld [vmem:[%s5382_s18 + $0x30] sm:$0xff] }
0x21af   :  { %v2848_v15 = vadd.f32 0.37409195, %v2846_v29  ;;  %v3161_v29 = vld [vmem:[%s5382_s18 + $0x38] sm:$0xff] }
0x21b0   :  { %v2851_v22 = vmul.f32 %v4385_v61, %v2849_v21  ;;  %v4207_v21 = vpack.c.bf16 %v3161_v29, %v3160_v28 }
0x21b1   :  { %v2850_v30 = vmul.f32 %v4387_v62, %v2848_v15  ;;  %v3162_v15 = vld [vmem:[%s5382_s18 + $0x40] sm:$0xff] }
0x21b2   :  { %v2853_v16 = vadd.f32 1.0000237, %v2851_v22  ;;  %v3163_v22 = vld [vmem:[%s5382_s18 + $0x48] sm:$0xff] }
0x21b3   :  { %v2852_v12 = vadd.f32 1.0000237, %v2850_v30  ;;  %v4210_v30 = vpack.c.bf16 %v3163_v22, %v3162_v15 }
0x21b4   :  { %v2855_v38 = vmul.f32 %v4385_v61, %v2853_v16  ;;  %v3164_v16 = vld [vmem:[%s5382_s18 + $0x50] sm:$0xff] }
0x21b5   :  { %v2854_v39 = vmul.f32 %v4387_v62, %v2852_v12  ;;  %v4213_v12 = vpack.c.bf16 %v3165_v34, %v3164_v16 }
0x21b6   :  { %v2857_v10 = vadd.f32 -1.2655122, %v2855_v38  ;;  %v3167_v38 = vld [vmem:[%s5382_s18 + $0x68] sm:$0xff] }
0x21b7   :  { %v2856_v42 = vadd.f32 -1.2655122, %v2854_v39  ;;  %v4216_v39 = vpack.c.bf16 %v3167_v38, %v3166_v31 }
0x21b8   :  { %v2863_v44 = vadd.f32 %v2861_v37, %v2857_v10  ;;  %v3168_v10 = vld [vmem:[%s5382_s18 + $0x70] sm:$0xff]  ;;  %v3169_v37 = vld [vmem:[%s5382_s18 + $0x78] sm:$0xff] }
0x21b9   :  { %v2862_v45 = vadd.f32 %v2860_v43, %v2856_v42  ;;  %v4219_v42 = vpack.c.bf16 %v3169_v37, %v3168_v10 }
0x21ba   :  { %v2866_v46 = vmul.f32 1.442695, %v2863_v44 }
0x21bb   :  { %v2864_v40 = vmul.f32 1.442695, %v2862_v45 }
0x21bc   :  { %4388 = vpow2.f32 %v2866_v46 }
0x21bd   :  { %4390 = vpow2.f32 %v2864_v40 }
0x21c6   :  { %v4389_v36 = vpop.eup %4388 }
0x21c7   :  { %v4391_v41 = vpop.eup %4390  ;;  %v2869_v47 = vmul.f32 %v4389_v36, %v4385_v61  ;;  %v2988_v61 = vld [vmem:[%s5380_s16 + $0x10] sm:$0xff] }
0x21c8   :  { %v2868_v9 = vmul.f32 %v4391_v41, %v4387_v62  ;;  %v4190_v33 = vpack.c.bf16 %v2989_v32, %v2988_v61 }
0x21c9   :  { %v2871_v50 = vsub.f32 1.0, %v2869_v47 }
0x21ca   :  { %v2870_v53 = vsub.f32 1.0, %v2868_v9  ;;  %4191 = vmatprep.subr.bf16.mxu1 %v4190_v33 }
0x21cb   :  { %v2875_v55 = vsub.f32 0.0, %v2871_v50  ;;  %4193 = vmatpush3.bf16.msra.mxu1 %v4190_v33 }
0x21cc   :  { %v2874_v56 = vsub.f32 0.0, %v2870_v53  ;;  %4194 = vmatprep.subr.bf16.mxu1 %v4500_v7 }
0x21cd   :  { %v2877_v59 = vsel %vm2873_vm7, %v2871_v50, %v2875_v55 }
0x21ce   :  { %v2879_v48 = vadd.f32 1.0, %v2877_v59  ;;  %v2876_v60 = vsel %vm2872_vm8, %v2870_v53, %v2874_v56 }
0x21cf   :  { %v2878_v57 = vadd.f32 1.0, %v2876_v60 }
0x21d0   :  { %v2881_v0 = vmul.f32 %v2879_v48, %v2809_v14 }
0x21d1   :  { %v2880_v58 = vmul.f32 %v2878_v57, %v2808_v63 }
0x21d3   :  { %3902 = vmatprep.mubr.f32.mxu0 %v2880_v58 }
0x21d4   :  { %3903 = vmatmul.mubr.f32.vlgmr.msra.gmra.mrb[18].mxu0 %v2881_v0 }
0x22a7   :  { %v3904_v51 = vpop.f32.mrb[18].mxu0 }
0x22a8   :  { %v2975_v62 = vadd.f32 %v3904_v51, %v5162_v35  ;;  %v2965_v1 = vpop.f32.mrb[19].mxu0  ;;  %v3430_v35 = vld [vmem:[%s5381_s17] ss:$0 sm:$0xff]  ;;  %s4503_s17 = smov [#allocation7]  }
0x22a9   :  { %v2974_v2 = vadd.f32 %v2965_v1, %v5164_v49  ;;  %s3253_s28 = sshll.u32 %s4503_s17, 4  ;;  %s3254_s28 = int_to_ptr.vmem [resolvable:$true] %s3253_s28 }
0x22aa   :  { %v2985_v6 = vadd.f32 %v3429_v54, %v2975_v62  ;;  %s4438_s26 = scalar_lea.vmem %s3254_s28, 256  ;;  %p4443_p3 = scmp.lt.s32.totalorder %s3254_s28, %s3254_s28 }
0x22ab   :  { %v2984_v4 = vadd.f32 %v3429_v54, %v2974_v2  ;;  %p4439_p2 = scmp.ne.s32.totalorder %s3254_s28, %s4438_s26  ;;  %p4444_p4 = scmp.lt.s32.totalorder %s4438_s26, %s4438_s26 }
0x22ad   :  { %3913 = vmatprep.mubr.msk.f32.mxu1 %vm105_vm0, %v2984_v4  ;;  %p4445_p5 = por %p4444_p4, %p4443_p3 }
0x22ae   :  { %3914 = vmatmul.mubr.msk.f32.vlgmr.msra.gmra.mrb[28].mxu1 %vm105_vm0, %v2985_v6 }
0x22af   :  { %3920 = vmatprep.mubr.msk.f32.mxu1 %vm4501_vm9, %v4502_v8  ;;  %p4446_p6 = pnand %p4445_p5, %p4439_p2 }
0x2381   :  { %v3915_v11 = vpop.f32.mrb[28].mxu1 }
0x2382   :  { %v3075_v52 = vadd.f32 %v3915_v11, %v3430_v35  ;;  %v3069_v13 = vpop.f32.mrb[29].mxu1 }
0x2383   :  { %v3070_v49 = vadd.f32 %v3430_v35, %v3069_v13 }
0x2384   :  { %3079 = vst [vmem:[#allocation7 + $0x8] sm:$0xff] %v3075_v52 }
0x2385   :  { %3078 = vst [vmem:[#allocation7] sm:$0xff] %v3070_v49  ;;  %v4195_v19 = vpack.c.bf16 %v3075_v52, %v3070_v49 }
0x2387   :  { %4196 = vmatpush3.bf16.msra.mxu1 %v4195_v19 }
0x2388   :  { %4197 = vmatprep.subr.bf16.mxu1 %v4500_v7 }
0x238a   :  { %3921 = vmatmul.mubr.msk.f32.vlgmr.msra.gmra.mrb[30].mxu1 %vm247_vm1, %v3080_v20 }
0x238b   :  { %4199 = vmatpush3.bf16.msra.mxu1 %v4198_v23  ;;  %3955 = vmatprep.mubr.msk.f32.mxu1 %vm4501_vm9, %v4502_v8 }
0x238c   :  { %4200 = vmatprep.subr.bf16.mxu1 %v4500_v7 }
0x238f   :  { %4202 = vmatpush3.bf16.msra.mxu1 %v4201_v3 }
0x2390   :  { %4203 = vmatprep.subr.bf16.mxu1 %v4500_v7 }
0x2393   :  { %4205 = vmatpush3.bf16.msra.mxu1 %v4204_v27 }
0x2394   :  { %4206 = vmatprep.subr.bf16.mxu1 %v4500_v7 }
0x2397   :  { %4208 = vmatpush3.bf16.msra.mxu1 %v4207_v21 }
0x2398   :  { %4209 = vmatprep.subr.bf16.mxu1 %v4500_v7 }
0x239b   :  { %4211 = vmatpush3.bf16.msra.mxu1 %v4210_v30 }
0x239c   :  { %4212 = vmatprep.subr.bf16.mxu1 %v4500_v7 }
0x239f   :  { %4214 = vmatpush3.bf16.msra.mxu1 %v4213_v12 }
0x23a0   :  { %4215 = vmatprep.subr.bf16.mxu1 %v4500_v7 }
0x23a3   :  { %4217 = vmatpush3.bf16.msra.mxu1 %v4216_v39 }
0x23a4   :  { %4218 = vmatprep.subr.bf16.mxu1 %v4500_v7 }
0x23a7   :  { %4220 = vmatpush3.bf16.msra.mxu1 %v4219_v42 }
0x245d   :  { %v3150_v43 = vpop.f32.mrb[30].mxu1 }
0x245e   :  { %v3922_v44 = vpop.f32.mrb[31].mxu1  ;;  %3956 = vmatmul.mubr.f32.vlgmr.msra.gmra.mrb[32].mxu1 %v3150_v43 }
0x245f   :  { %4449 = shalt.err (!%p4446_p6)
}
0x2460   :  { %s4450_s18 = scalar_lea.hbm %s5384_s20, 256 }
0x2461   :  { %p4451_p7 = scmp.ne.s32.totalorder %s5384_s20, %s4450_s18  ;;  %p4454_p8 = scmp.lt.u32.totalorder %s4450_s18, %s5384_s20 }
0x2463   :  { %p4456_p9 = pnand %p4454_p8, %p4451_p7 }
0x2465   :  { %4459 = shalt.err (!%p4456_p9)
}
0x2466   :  { %s5410_s1 = smov 128   ;;  %s5411_s24 = sld [smem:[#allocation20_spill]] }
0x2467   :  { %3259 = dma.vmem_to_hbm [thread:$0]  %s3254_s28, 256, %s5384_s20, [#allocation4], %s5410_s1, %s5410_s1, %s4492_s23  }
0x2468   :  { %s4504_s2 = smov [#allocation8]  }
0x2469   :  { %s3266_s13 = sshll.u32 %s4504_s2, 4  ;;  %s3267_s13 = int_to_ptr.vmem [resolvable:$true] %s3266_s13 }
0x246a   :  { %s4460_s14 = scalar_lea.vmem %s3267_s13, 32  ;;  %p4465_p11 = scmp.lt.s32.totalorder %s3267_s13, %s3267_s13 }
0x246b   :  { %p4461_p10 = scmp.ne.s32.totalorder %s3267_s13, %s4460_s14  ;;  %p4466_p12 = scmp.lt.s32.totalorder %s4460_s14, %s4460_s14 }
0x246c   :  { %v3434_v45 = vld [vmem:[%s5411_s24] ss:$0 sm:$0xff] }
0x246d   :  { %p4467_p13 = por %p4466_p12, %p4465_p11 }
0x246f   :  { %p4468_p0 = pnand %p4467_p13, %p4461_p10 }
0x2531   :  { %v3243_v46 = vpop.f32.mrb[32].mxu1 }
0x2532   :  { %v3244_v40 = vadd.f32 %v3434_v45, %v3243_v46  ;;  %v3957_v36 = vpop.f32.mrb[33].mxu1 }
0x2534   :  { %3247 = vst [vmem:[#allocation8] sm:$0x3] %v3244_v40 }
0x2535   :  { %4471 = shalt.err (!%p4468_p0)
}
0x2536   :  { %s5412_s23 = sld [smem:[#allocation21_spill]] }
0x253c   :  { %s4472_s19 = scalar_lea.hbm %s5412_s23, 32 }
0x253d   :  { %p4473_p1 = scmp.ne.s32.totalorder %s5412_s23, %s4472_s19  ;;  %p4476_p2 = scmp.lt.u32.totalorder %s4472_s19, %s5412_s23 }
0x253f   :  { %p4478_p3 = pnand %p4476_p2, %p4473_p1 }
0x2541   :  { %4481 = shalt.err (!%p4478_p3)
}
0x2542   :  { %3269 = dma.vmem_to_hbm [thread:$0]  %s3267_s13, 32, %s5412_s23, [#allocation9]  }
0x2543   :  { %4486 = dma.done.wait [#allocation4], 256  }
0x2544   :  { %4487 = vsyncadd [#allocation4], 4294967040 }
0x2545   :  { %4488 = dma.done.wait [#allocation9], 32  }
0x2546   :  { %4489 = vsyncadd [#allocation9], 4294967264 }
0x2547   :  { %3276 = vsyncpa [#allocation3], 1 }
0x2548   :  { %3277 = vsyncpa [#allocation6], 1 }
0x2549   :  { %3278 = vsyncpa [#allocation4], 1 }
0x254a   :  { %3279 = vsyncpa [#allocation9], 1 }

</bundles_post_ra>
